<compile_context>
chip_gen: v5e
topology: v5e:2x2
jax: 0.10.0
libtpu: 0.0.40
codegen_flags: <defaults>
</compile_context>

<pallas_src>
import math
import numpy as np
import jax
import jax.numpy as jnp
from jax import lax
from jax.experimental import pallas as pl
from jax.experimental.pallas import tpu as pltpu

# --------------------------------------------------------------------------
# ConvAttention hyper-parameters (module defaults, input_dim = 64)
# --------------------------------------------------------------------------
C_IN = 64                                               # input_dim
ATT_K = 7                                               # att_kernel
ATT_S = 4                                               # att_stride
HEAD_DIM_MUL = 1.0
NUM_HEADS = int(max(1, C_IN * HEAD_DIM_MUL // 30))      # 2
HEAD_DIM = int(C_IN // NUM_HEADS * HEAD_DIM_MUL)        # 32
NUM_KEYS = 3                                            # full=True
TOTAL_DIM = HEAD_DIM * NUM_HEADS * NUM_KEYS             # 192
O_IN = HEAD_DIM * NUM_HEADS                             # o_proj input dim, 64
UP_K = ATT_S * 2                                        # dconvkernel=True -> 8
UP_PAD = ATT_S // 2                                     # 2
BN_EPS = 1e-5
KKC = ATT_K * ATT_K * C_IN                              # 3136


def _phase_taps(r):
    """ConvTranspose2d(k=8, s=4, p=2) polyphase taps for output phase r in [0,4).

    Returns [(row_offset_into_1-padded_input, kernel_row), ...]; each output
    pixel of phase r receives exactly these two row contributions (x2 for
    columns = 4 taps total).  Out-of-range inputs hit the zero border.
    """
    if r < 2:
        return [(1, r + 2), (0, r + 6)]
    return [(1, r + 2), (2, r - 2)]


def _vmem_capacity_bytes():
    try:
        return int(pltpu.get_tpu_info().vmem_capacity_bytes)
    except Exception:
        return None


# --------------------------------------------------------------------------
# Wrapper: NCHW in, NCHW out (matches the PyTorch forward)
# --------------------------------------------------------------------------
def conv_attention_forward(x_nchw, params):
    (w_dw, bn_gamma, bn_beta, bn_mean, bn_var,
     w_pw, w_o, b_o, w_up, b_up) = params

    N, C, H, W = x_nchw.shape
    assert C == C_IN
    pad = ATT_K // 2
    h = (H + 2 * pad - ATT_K) // ATT_S + 1
    w = (W + 2 * pad - ATT_K) // ATT_S + 1
    hw = h * w
    assert hw % 8 == 0, "rows per image must align to sublanes"
    assert ATT_S * h >= H and ATT_S * w >= W   # final crop is valid

    # ---- im2col (glue), bf16 end-to-end: rows = (n, i, j), cols = (tap, c)
    # TODO(synk): build the 49-tap patch slab in a VMEM scratch from the padded
    # input tile instead of materializing it in HBM (remaining ~3x HBM traffic).
    x = jnp.transpose(x_nchw, (0, 2, 3, 1)).astype(jnp.bfloat16)
    xp = jnp.pad(x, ((0, 0), (pad, pad), (pad, pad), (0, 0)))
    taps = []
    for kh in range(ATT_K):
        for kw in range(ATT_K):
            taps.append(xp[:, kh:kh + ATT_S * (h - 1) + 1:ATT_S,
                           kw:kw + ATT_S * (w - 1) + 1:ATT_S, :])
    patches = jnp.stack(taps, axis=3).reshape(N * hw, KKC)         # bf16

    # ---- fold depthwise * BN(eval) * pointwise into one GEMM weight (glue)
    inv_std = bn_gamma / jnp.sqrt(bn_var + BN_EPS)
    bn_shift = bn_beta - bn_mean * inv_std                                  # (C,)
    dw = jnp.transpose(w_dw[:, 0], (1, 2, 0)).reshape(ATT_K * ATT_K, C)    # (49,C)
    dw_bn = dw * inv_std[None, :]
    pw_T = jnp.transpose(w_pw)                                             # (C,192)
    w_comb = (dw_bn[:, :, None] * pw_T[None, :, :]).reshape(KKC, TOTAL_DIM)
    qkv_bias = bn_shift @ pw_T                                             # (192,)

    # fold the 1/sqrt(head_dim) attention scale into the q columns
    col_scale = np.ones((TOTAL_DIM,), np.float32)
    for hd in range(NUM_HEADS):
        base = hd * NUM_KEYS * HEAD_DIM
        col_scale[base:base + HEAD_DIM] = 1.0 / math.sqrt(HEAD_DIM)
    col_scale = jnp.asarray(col_scale)
    w_comb = (w_comb * col_scale[None, :]).astype(jnp.bfloat16)
    qkv_bias = (qkv_bias * col_scale).reshape(1, TOTAL_DIM).astype(jnp.float32)

    o_wT = jnp.transpose(w_o).astype(jnp.bfloat16)                         # (64, C)
    o_bias = b_o.reshape(1, C).astype(jnp.float32)
    wup = jnp.transpose(w_up[:, 0], (1, 2, 0)).reshape(UP_K * UP_K, C)
    wup = wup.astype(jnp.float32)                                          # (64, C)
    up_bias = b_up.reshape(1, C).astype(jnp.float32)

    # ---- fused kernel: GEMM + attention + o_proj + polyphase upsample ------
    def fused_kernel(p_ref, wc_ref, qb_ref, ow_ref, ob_ref, wu_ref, ub_ref,
                     out_ref, opad_ref):
        # one bf16 MXU GEMM for this image: (hw, 49*C) @ (49*C, 192) -> f32
        qkv = jnp.dot(p_ref[...], wc_ref[...],
                      preferred_element_type=jnp.float32) + qb_ref[...]
        # TODO(synk): for hw >> 1024 tile the hw axis with a flash-style online
        # softmax so (hw, hw) logits never materialize; not needed here.
        o_acc = jnp.zeros((hw, C_IN), jnp.float32)
        for hd in range(NUM_HEADS):
            base = hd * NUM_KEYS * HEAD_DIM
            q = qkv[:, base:base + HEAD_DIM].astype(jnp.bfloat16)
            k = qkv[:, base + HEAD_DIM:base + 2 * HEAD_DIM].astype(jnp.bfloat16)
            v = qkv[:, base + 2 * HEAD_DIM:base + 3 * HEAD_DIM].astype(jnp.bfloat16)
            # scale already folded into the q columns of w_comb
            logits = lax.dot_general(q, k, (((1,), (1,)), ((), ())),
                                     preferred_element_type=jnp.float32)   # (hw,hw)
            m = jnp.max(logits, axis=-1, keepdims=True)
            p = jnp.exp(logits - m)
            s = jnp.sum(p, axis=-1, keepdims=True)
            attn = (p * pl.reciprocal(s, approx=True)).astype(jnp.bfloat16)
            pv = jnp.dot(attn, v,
                         preferred_element_type=jnp.float32).astype(jnp.bfloat16)
            # per-head o_proj partial sum (no lane-concat of head values)
            o_acc = o_acc + jnp.dot(
                pv, ow_ref[hd * HEAD_DIM:(hd + 1) * HEAD_DIM, :],
                preferred_element_type=jnp.float32)
        o_acc = o_acc + ob_ref[...]                                        # (hw, C)

        # in-VMEM zero padding of the attention output (no HBM round trip)
        opad_ref[...] = jnp.zeros((h + 2, w + 2, C_IN), jnp.float32)
        for i in range(h):
            opad_ref[1 + i, 1:1 + w, :] = o_acc[i * w:(i + 1) * w, :]

        # polyphase ConvTranspose2d(k=8, s=4, p=2): 16 phases x 4 taps each,
        # only 9 distinct shifted windows.  Weights/bias hoisted out of loops.
        wu = wu_ref[...]                                                   # (64, C)
        ub = ub_ref[...]                                                   # (1, C)
        win = {}
        for ro in range(3):
            for co in range(3):
                win[(ro, co)] = opad_ref[ro:ro + h, co:co + w, :]
        for r in range(ATT_S):
            row_taps = _phase_taps(r)
            cols = []
            for s_ph in range(ATT_S):
                col_taps = _phase_taps(s_ph)
                acc = jnp.zeros((h, w, C_IN), jnp.float32)
                for (ro, kh) in row_taps:
                    for (co, kw) in col_taps:
                        acc = acc + win[(ro, co)] * wu[kh * UP_K + kw:
                                                       kh * UP_K + kw + 1, :]
                cols.append(acc + ub)
            # lane-concat the 4 column phases -> one 256-lane-wide store
            out_ref[0, r] = jnp.concatenate(cols, axis=-1)                 # (h,w,4C)

    cap = _vmem_capacity_bytes()
    big_vmem = cap is not None and cap >= 100 * (1 << 20)        # v5e/v6e: 128 MiB
    vmem_limit = (96 if big_vmem else 48) * (1 << 20)            # v7x: 64 MiB/TC

    patches_spec = pl.BlockSpec((hw, KKC), lambda n: (n, 0))
    if big_vmem and N >= 4 and hasattr(pl, "Buffered"):
        try:   # deeper input pipelining where VMEM is plentiful (v5e/v6e)
            patches_spec = pl.BlockSpec((hw, KKC), lambda n: (n, 0),
                                        pipeline_mode=pl.Buffered(3))
        except TypeError:
            pass

    out = pl.pallas_call(
        fused_kernel,
        out_shape=jax.ShapeDtypeStruct((N, ATT_S, h, w, ATT_S * C_IN), jnp.float32),
        grid=(N,),
        in_specs=[
            patches_spec,
            pl.BlockSpec((KKC, TOTAL_DIM), lambda n: (0, 0)),
            pl.BlockSpec((1, TOTAL_DIM), lambda n: (0, 0)),
            pl.BlockSpec((O_IN, C_IN), lambda n: (0, 0)),
            pl.BlockSpec((1, C_IN), lambda n: (0, 0)),
            pl.BlockSpec((UP_K * UP_K, C_IN), lambda n: (0, 0)),
            pl.BlockSpec((1, C_IN), lambda n: (0, 0)),
        ],
        out_specs=pl.BlockSpec((1, ATT_S, h, w, ATT_S * C_IN),
                               lambda n: (n, 0, 0, 0, 0)),
        scratch_shapes=[pltpu.VMEM((h + 2, w + 2, C_IN), jnp.float32)],
        compiler_params=pltpu.CompilerParams(
            dimension_semantics=("parallel",),
            vmem_limit_bytes=vmem_limit),
    )(patches, w_comb, qkv_bias, o_wT, o_bias, wup, up_bias)

    # out[n, r, i, j, s*C + c] = output pixel (4i + r, 4j + s, c).
    # Free reshape to split the phases, then the single unavoidable NCHW
    # transpose (no separate phase-interleave pass).
    y = out.reshape(N, ATT_S, h, w, ATT_S, C_IN)
    y = jnp.transpose(y, (0, 5, 2, 1, 3, 4)).reshape(N, C_IN, ATT_S * h, ATT_S * w)
    return y[:, :, :H, :W]


# --------------------------------------------------------------------------
# Pure-numpy reference implementing the PyTorch forward semantics
# --------------------------------------------------------------------------
def reference_forward_np(x, params):
    (w_dw, bn_gamma, bn_beta, bn_mean, bn_var,
     w_pw, w_o, b_o, w_up, b_up) = [np.asarray(p) for p in params]
    x = np.asarray(x)
    N, C, H, W = x.shape
    pad = ATT_K // 2
    xp = np.pad(x, ((0, 0), (0, 0), (pad, pad), (pad, pad)))
    h = (H + 2 * pad - ATT_K) // ATT_S + 1
    w = (W + 2 * pad - ATT_K) // ATT_S + 1

    dw = np.zeros((N, C, h, w), np.float32)
    for i in range(h):
        for j in range(w):
            patch = xp[:, :, i * ATT_S:i * ATT_S + ATT_K, j * ATT_S:j * ATT_S + ATT_K]
            dw[:, :, i, j] = (patch * w_dw[:, 0][None]).sum(axis=(-1, -2))

    scale = bn_gamma / np.sqrt(bn_var + BN_EPS)
    y = (dw - bn_mean[None, :, None, None]) * scale[None, :, None, None] \
        + bn_beta[None, :, None, None]

    qkv = np.einsum('nchw,dc->ndhw', y, w_pw)
    qkv = qkv.reshape(N, NUM_HEADS, NUM_KEYS * HEAD_DIM, h * w).transpose(0, 1, 3, 2)
    q = qkv[..., :HEAD_DIM]
    k = qkv[..., HEAD_DIM:2 * HEAD_DIM]
    v = qkv[..., 2 * HEAD_DIM:]
    logits = np.matmul(q, k.transpose(0, 1, 3, 2)) / math.sqrt(HEAD_DIM)
    logits = logits - logits.max(axis=-1, keepdims=True)
    attn = np.exp(logits)
    attn = attn / attn.sum(axis=-1, keepdims=True)
    vals = np.matmul(attn, v)                                    # (N, heads, hw, hd)

    vals = vals.transpose(0, 1, 3, 2).reshape(N, O_IN, h, w)
    o = np.einsum('nehw,ce->nchw', vals, w_o) + b_o[None, :, None, None]

    H_out = (h - 1) * ATT_S - 2 * UP_PAD + UP_K
    W_out = (w - 1) * ATT_S - 2 * UP_PAD + UP_K
    out = np.tile(b_up[None, :, None, None], (N, 1, H_out, W_out)).astype(np.float32)
    for i in range(h):
        for j in range(w):
            for kh in range(UP_K):
                for kw in range(UP_K):
                    oh = i * ATT_S - UP_PAD + kh
                    ow = j * ATT_S - UP_PAD + kw
                    if 0 <= oh < H_out and 0 <= ow < W_out:
                        out[:, :, oh, ow] += o[:, :, i, j] * w_up[:, 0, kh, kw][None]
    return out[:N, :C, :H, :W]


if __name__ == "__main__":
    key = jax.random.PRNGKey(0)
    ks = jax.random.split(key, 12)

    # deterministic synthetic parameters (shapes from ConvAttention.__init__)
    params = (
        0.1 * jax.random.normal(ks[1], (C_IN, 1, ATT_K, ATT_K), jnp.float32),  # conv_proj depthwise weight
        1.0 + 0.1 * jax.random.normal(ks[2], (C_IN,), jnp.float32),            # BN gamma
        0.1 * jax.random.normal(ks[3], (C_IN,), jnp.float32),                  # BN beta
        0.1 * jax.random.normal(ks[4], (C_IN,), jnp.float32),                  # BN running_mean
        0.5 + jnp.abs(jax.random.normal(ks[5], (C_IN,), jnp.float32)),         # BN running_var
        0.1 * jax.random.normal(ks[6], (TOTAL_DIM, C_IN), jnp.float32),        # pwise 1x1 weight
        0.1 * jax.random.normal(ks[7], (C_IN, O_IN), jnp.float32),             # o_proj 1x1 weight
        0.1 * jax.random.normal(ks[8], (C_IN,), jnp.float32),                  # o_proj bias
        0.1 * jax.random.normal(ks[9], (C_IN, 1, UP_K, UP_K), jnp.float32),    # upsampling (ConvTranspose2d) weight
        0.1 * jax.random.normal(ks[10], (C_IN,), jnp.float32),                 # upsampling bias
    )
    # TODO(synk): BatchNorm is implemented in eval mode (running stats); training-mode
    # batch statistics are not reproduced.

    fwd = jax.jit(conv_attention_forward)

    # main case
    x = jax.random.normal(ks[0], (2, C_IN, 16, 16), jnp.float32)
    out = jax.block_until_ready(fwd(x, params))
    ref = reference_forward_np(x, params)
    # bf16 MXU inputs + approx-reciprocal softmax: tolerance widened to 1e-2
    np.testing.assert_allclose(np.asarray(out), ref, rtol=1e-2, atol=1e-2)

    # asymmetric spatial case (h != w) exercising the polyphase mapping
    x2 = jax.random.normal(ks[11], (1, C_IN, 16, 32), jnp.float32)
    out2 = jax.block_until_ready(fwd(x2, params))
    ref2 = reference_forward_np(x2, params)
    np.testing.assert_allclose(np.asarray(out2), ref2, rtol=1e-2, atol=1e-2)

    print("KERNEL_OK")
</pallas_src>

<mosaic_0001>
module attributes {stable_mosaic.version = 11 : i64} {
  func.func @fused_kernel(%arg0: i32, %arg1: memref<16x3136xbf16, #tpu.memory_space<vmem>>, %arg2: memref<3136x192xbf16, #tpu.memory_space<vmem>>, %arg3: memref<1x192xf32, #tpu.memory_space<vmem>>, %arg4: memref<64x64xbf16, #tpu.memory_space<vmem>>, %arg5: memref<1x64xf32, #tpu.memory_space<vmem>>, %arg6: memref<64x64xf32, #tpu.memory_space<vmem>>, %arg7: memref<1x64xf32, #tpu.memory_space<vmem>>, %arg8: memref<1x4x4x4x256xf32, #tpu.memory_space<vmem>>, %arg9: memref<6x6x64xf32, #tpu.memory_space<vmem>>) attributes {dimension_semantics = [#tpu.dimension_semantics<parallel>], iteration_bounds = array<i64: 2>, scalar_prefetch = 0 : i64, scratch_operands = 1 : i64, tpu.core_type = #tpu.core_type<tc>, window_params = [{transform_indices = @transform_0, window_bounds = array<i64: 16, 3136>}, {pipeline_mode = #tpu.pipeline_mode<synchronous>, transform_indices = @transform_1, window_bounds = array<i64: 3136, 192>}, {pipeline_mode = #tpu.pipeline_mode<synchronous>, transform_indices = @transform_2, window_bounds = array<i64: 1, 192>}, {pipeline_mode = #tpu.pipeline_mode<synchronous>, transform_indices = @transform_3, window_bounds = array<i64: 64, 64>}, {pipeline_mode = #tpu.pipeline_mode<synchronous>, transform_indices = @transform_4, window_bounds = array<i64: 1, 64>}, {pipeline_mode = #tpu.pipeline_mode<synchronous>, transform_indices = @transform_5, window_bounds = array<i64: 64, 64>}, {pipeline_mode = #tpu.pipeline_mode<synchronous>, transform_indices = @transform_6, window_bounds = array<i64: 1, 64>}, {transform_indices = @transform_7, window_bounds = array<i64: 1, 4, 4, 4, 256>}]} {
    %c0 = arith.constant 0 : index
    %c0_0 = arith.constant 0 : index
    %0 = vector.load %arg1[%c0, %c0_0] : memref<16x3136xbf16, #tpu.memory_space<vmem>>, vector<16x3136xbf16>
    %c0_1 = arith.constant 0 : index
    %c0_2 = arith.constant 0 : index
    %1 = vector.load %arg2[%c0_1, %c0_2] : memref<3136x192xbf16, #tpu.memory_space<vmem>>, vector<3136x192xbf16>
    %cst = arith.constant dense<0.000000e+00> : vector<16x192xf32>
    %2 = tpu.matmul %0, %1, %cst {dimension_numbers = #tpu.dot_dimension_numbers<[1], [0], [0], [1], [0, 0, 1, 1], [], []>} : vector<16x3136xbf16>, vector<3136x192xbf16>, vector<16x192xf32> -> vector<16x192xf32>
    %c0_3 = arith.constant 0 : index
    %c0_4 = arith.constant 0 : index
    %3 = vector.load %arg3[%c0_3, %c0_4] : memref<1x192xf32, #tpu.memory_space<vmem>>, vector<1x192xf32>
    %4 = vector.broadcast %3 : vector<1x192xf32> to vector<16x192xf32>
    %5 = arith.addf %2, %4 : vector<16x192xf32>
    %cst_5 = arith.constant 0.000000e+00 : f32
    %6 = vector.broadcast %cst_5 : f32 to vector<16x64xf32>
    %7 = vector.extract_strided_slice %5 {offsets = [0, 0], sizes = [16, 32], strides = [1, 1]} : vector<16x192xf32> to vector<16x32xf32>
    %8 = arith.truncf %7 : vector<16x32xf32> to vector<16x32xbf16>
    %9 = vector.extract_strided_slice %5 {offsets = [0, 32], sizes = [16, 32], strides = [1, 1]} : vector<16x192xf32> to vector<16x32xf32>
    %10 = arith.truncf %9 : vector<16x32xf32> to vector<16x32xbf16>
    %11 = vector.extract_strided_slice %5 {offsets = [0, 64], sizes = [16, 32], strides = [1, 1]} : vector<16x192xf32> to vector<16x32xf32>
    %12 = arith.truncf %11 : vector<16x32xf32> to vector<16x32xbf16>
    %cst_6 = arith.constant dense<0.000000e+00> : vector<16x16xf32>
    %13 = tpu.matmul %8, %10, %cst_6 {dimension_numbers = #tpu.dot_dimension_numbers<[1], [1], [0], [0], [0, 0, 1, 0], [], []>} : vector<16x32xbf16>, vector<16x32xbf16>, vector<16x16xf32> -> vector<16x16xf32>
    %cst_7 = arith.constant dense<0xFF800000> : vector<16xf32>
    %14 = vector.multi_reduction <maximumf>, %13, %cst_7 [1] : vector<16x16xf32> to vector<16xf32>
    %15 = vector.shape_cast %14 : vector<16xf32> to vector<16x1xf32>
    %16 = vector.broadcast %15 : vector<16x1xf32> to vector<16x16xf32>
    %17 = arith.subf %13, %16 : vector<16x16xf32>
    %18 = math.exp %17 : vector<16x16xf32>
    %cst_8 = arith.constant dense<0.000000e+00> : vector<16xf32>
    %19 = vector.multi_reduction <add>, %18, %cst_8 [1] : vector<16x16xf32> to vector<16xf32>
    %20 = vector.shape_cast %19 : vector<16xf32> to vector<16x1xf32>
    %21 = tpu.reciprocal %20 {approx = true} : vector<16x1xf32> -> vector<16x1xf32>
    %22 = vector.broadcast %21 : vector<16x1xf32> to vector<16x16xf32>
    %23 = arith.mulf %18, %22 : vector<16x16xf32>
    %24 = arith.truncf %23 : vector<16x16xf32> to vector<16x16xbf16>
    %cst_9 = arith.constant dense<0.000000e+00> : vector<16x32xf32>
    %25 = tpu.matmul %24, %12, %cst_9 {dimension_numbers = #tpu.dot_dimension_numbers<[1], [0], [0], [1], [0, 0, 1, 1], [], []>} : vector<16x16xbf16>, vector<16x32xbf16>, vector<16x32xf32> -> vector<16x32xf32>
    %26 = arith.truncf %25 : vector<16x32xf32> to vector<16x32xbf16>
    %c0_10 = arith.constant 0 : index
    %c0_11 = arith.constant 0 : index
    %27 = vector.load %arg4[%c0_10, %c0_11] : memref<64x64xbf16, #tpu.memory_space<vmem>>, vector<32x64xbf16>
    %cst_12 = arith.constant dense<0.000000e+00> : vector<16x64xf32>
    %28 = tpu.matmul %26, %27, %cst_12 {dimension_numbers = #tpu.dot_dimension_numbers<[1], [0], [0], [1], [0, 0, 1, 1], [], []>} : vector<16x32xbf16>, vector<32x64xbf16>, vector<16x64xf32> -> vector<16x64xf32>
    %29 = arith.addf %6, %28 : vector<16x64xf32>
    %30 = vector.extract_strided_slice %5 {offsets = [0, 96], sizes = [16, 32], strides = [1, 1]} : vector<16x192xf32> to vector<16x32xf32>
    %31 = arith.truncf %30 : vector<16x32xf32> to vector<16x32xbf16>
    %32 = vector.extract_strided_slice %5 {offsets = [0, 128], sizes = [16, 32], strides = [1, 1]} : vector<16x192xf32> to vector<16x32xf32>
    %33 = arith.truncf %32 : vector<16x32xf32> to vector<16x32xbf16>
    %34 = vector.extract_strided_slice %5 {offsets = [0, 160], sizes = [16, 32], strides = [1, 1]} : vector<16x192xf32> to vector<16x32xf32>
    %35 = arith.truncf %34 : vector<16x32xf32> to vector<16x32xbf16>
    %cst_13 = arith.constant dense<0.000000e+00> : vector<16x16xf32>
    %36 = tpu.matmul %31, %33, %cst_13 {dimension_numbers = #tpu.dot_dimension_numbers<[1], [1], [0], [0], [0, 0, 1, 0], [], []>} : vector<16x32xbf16>, vector<16x32xbf16>, vector<16x16xf32> -> vector<16x16xf32>
    %cst_14 = arith.constant dense<0xFF800000> : vector<16xf32>
    %37 = vector.multi_reduction <maximumf>, %36, %cst_14 [1] : vector<16x16xf32> to vector<16xf32>
    %38 = vector.shape_cast %37 : vector<16xf32> to vector<16x1xf32>
    %39 = vector.broadcast %38 : vector<16x1xf32> to vector<16x16xf32>
    %40 = arith.subf %36, %39 : vector<16x16xf32>
    %41 = math.exp %40 : vector<16x16xf32>
    %cst_15 = arith.constant dense<0.000000e+00> : vector<16xf32>
    %42 = vector.multi_reduction <add>, %41, %cst_15 [1] : vector<16x16xf32> to vector<16xf32>
    %43 = vector.shape_cast %42 : vector<16xf32> to vector<16x1xf32>
    %44 = tpu.reciprocal %43 {approx = true} : vector<16x1xf32> -> vector<16x1xf32>
    %45 = vector.broadcast %44 : vector<16x1xf32> to vector<16x16xf32>
    %46 = arith.mulf %41, %45 : vector<16x16xf32>
    %47 = arith.truncf %46 : vector<16x16xf32> to vector<16x16xbf16>
    %cst_16 = arith.constant dense<0.000000e+00> : vector<16x32xf32>
    %48 = tpu.matmul %47, %35, %cst_16 {dimension_numbers = #tpu.dot_dimension_numbers<[1], [0], [0], [1], [0, 0, 1, 1], [], []>} : vector<16x16xbf16>, vector<16x32xbf16>, vector<16x32xf32> -> vector<16x32xf32>
    %49 = arith.truncf %48 : vector<16x32xf32> to vector<16x32xbf16>
    %c32 = arith.constant 32 : index
    %c0_17 = arith.constant 0 : index
    %50 = vector.load %arg4[%c32, %c0_17] : memref<64x64xbf16, #tpu.memory_space<vmem>>, vector<32x64xbf16>
    %cst_18 = arith.constant dense<0.000000e+00> : vector<16x64xf32>
    %51 = tpu.matmul %49, %50, %cst_18 {dimension_numbers = #tpu.dot_dimension_numbers<[1], [0], [0], [1], [0, 0, 1, 1], [], []>} : vector<16x32xbf16>, vector<32x64xbf16>, vector<16x64xf32> -> vector<16x64xf32>
    %52 = arith.addf %29, %51 : vector<16x64xf32>
    %c0_19 = arith.constant 0 : index
    %c0_20 = arith.constant 0 : index
    %53 = vector.load %arg5[%c0_19, %c0_20] : memref<1x64xf32, #tpu.memory_space<vmem>>, vector<1x64xf32>
    %54 = vector.broadcast %53 : vector<1x64xf32> to vector<16x64xf32>
    %55 = arith.addf %52, %54 : vector<16x64xf32>
    %cst_21 = arith.constant 0.000000e+00 : f32
    %56 = vector.broadcast %cst_21 : f32 to vector<6x6x64xf32>
    %c0_22 = arith.constant 0 : index
    %c0_23 = arith.constant 0 : index
    %c0_24 = arith.constant 0 : index
    %57 = vector.load %arg9[%c0_22, %c0_23, %c0_24] : memref<6x6x64xf32, #tpu.memory_space<vmem>>, vector<6x6x64xf32>
    tpu.vector_store %arg9[%c0_22, %c0_23, %c0_24], %56 {strides = array<i32>} : memref<6x6x64xf32, #tpu.memory_space<vmem>>, vector<6x6x64xf32>,
    %58 = vector.extract_strided_slice %55 {offsets = [0, 0], sizes = [4, 64], strides = [1, 1]} : vector<16x64xf32> to vector<4x64xf32>
    %c1 = arith.constant 1 : index
    %c1_25 = arith.constant 1 : index
    %c0_26 = arith.constant 0 : index
    %59 = vector.load %arg9[%c1, %c1_25, %c0_26] : memref<6x6x64xf32, #tpu.memory_space<vmem>>, vector<1x4x64xf32>
    %60 = vector.shape_cast %59 : vector<1x4x64xf32> to vector<4x64xf32>
    %61 = vector.shape_cast %58 : vector<4x64xf32> to vector<1x4x64xf32>
    tpu.vector_store %arg9[%c1, %c1_25, %c0_26], %61 {strides = array<i32>} : memref<6x6x64xf32, #tpu.memory_space<vmem>>, vector<1x4x64xf32>,
    %62 = vector.extract_strided_slice %55 {offsets = [4, 0], sizes = [4, 64], strides = [1, 1]} : vector<16x64xf32> to vector<4x64xf32>
    %c2 = arith.constant 2 : index
    %c1_27 = arith.constant 1 : index
    %c0_28 = arith.constant 0 : index
    %63 = vector.load %arg9[%c2, %c1_27, %c0_28] : memref<6x6x64xf32, #tpu.memory_space<vmem>>, vector<1x4x64xf32>
    %64 = vector.shape_cast %63 : vector<1x4x64xf32> to vector<4x64xf32>
    %65 = vector.shape_cast %62 : vector<4x64xf32> to vector<1x4x64xf32>
    tpu.vector_store %arg9[%c2, %c1_27, %c0_28], %65 {strides = array<i32>} : memref<6x6x64xf32, #tpu.memory_space<vmem>>, vector<1x4x64xf32>,
    %66 = vector.extract_strided_slice %55 {offsets = [8, 0], sizes = [4, 64], strides = [1, 1]} : vector<16x64xf32> to vector<4x64xf32>
    %c3 = arith.constant 3 : index
    %c1_29 = arith.constant 1 : index
    %c0_30 = arith.constant 0 : index
    %67 = vector.load %arg9[%c3, %c1_29, %c0_30] : memref<6x6x64xf32, #tpu.memory_space<vmem>>, vector<1x4x64xf32>
    %68 = vector.shape_cast %67 : vector<1x4x64xf32> to vector<4x64xf32>
    %69 = vector.shape_cast %66 : vector<4x64xf32> to vector<1x4x64xf32>
    tpu.vector_store %arg9[%c3, %c1_29, %c0_30], %69 {strides = array<i32>} : memref<6x6x64xf32, #tpu.memory_space<vmem>>, vector<1x4x64xf32>,
    %70 = vector.extract_strided_slice %55 {offsets = [12, 0], sizes = [4, 64], strides = [1, 1]} : vector<16x64xf32> to vector<4x64xf32>
    %c4 = arith.constant 4 : index
    %c1_31 = arith.constant 1 : index
    %c0_32 = arith.constant 0 : index
    %71 = vector.load %arg9[%c4, %c1_31, %c0_32] : memref<6x6x64xf32, #tpu.memory_space<vmem>>, vector<1x4x64xf32>
    %72 = vector.shape_cast %71 : vector<1x4x64xf32> to vector<4x64xf32>
    %73 = vector.shape_cast %70 : vector<4x64xf32> to vector<1x4x64xf32>
    tpu.vector_store %arg9[%c4, %c1_31, %c0_32], %73 {strides = array<i32>} : memref<6x6x64xf32, #tpu.memory_space<vmem>>, vector<1x4x64xf32>,
    %c0_33 = arith.constant 0 : index
    %c0_34 = arith.constant 0 : index
    %74 = vector.load %arg6[%c0_33, %c0_34] : memref<64x64xf32, #tpu.memory_space<vmem>>, vector<64x64xf32>
    %c0_35 = arith.constant 0 : index
    %c0_36 = arith.constant 0 : index
    %75 = vector.load %arg7[%c0_35, %c0_36] : memref<1x64xf32, #tpu.memory_space<vmem>>, vector<1x64xf32>
    %c0_37 = arith.constant 0 : index
    %c0_38 = arith.constant 0 : index
    %c0_39 = arith.constant 0 : index
    %76 = vector.load %arg9[%c0_37, %c0_38, %c0_39] : memref<6x6x64xf32, #tpu.memory_space<vmem>>, vector<4x4x64xf32>
    %c0_40 = arith.constant 0 : index
    %c1_41 = arith.constant 1 : index
    %c0_42 = arith.constant 0 : index
    %77 = vector.load %arg9[%c0_40, %c1_41, %c0_42] : memref<6x6x64xf32, #tpu.memory_space<vmem>>, vector<4x4x64xf32>
    %c0_43 = arith.constant 0 : index
    %c2_44 = arith.constant 2 : index
    %c0_45 = arith.constant 0 : index
    %78 = vector.load %arg9[%c0_43, %c2_44, %c0_45] : memref<6x6x64xf32, #tpu.memory_space<vmem>>, vector<4x4x64xf32>
    %c1_46 = arith.constant 1 : index
    %c0_47 = arith.constant 0 : index
    %c0_48 = arith.constant 0 : index
    %79 = vector.load %arg9[%c1_46, %c0_47, %c0_48] : memref<6x6x64xf32, #tpu.memory_space<vmem>>, vector<4x4x64xf32>
    %c1_49 = arith.constant 1 : index
    %c1_50 = arith.constant 1 : index
    %c0_51 = arith.constant 0 : index
    %80 = vector.load %arg9[%c1_49, %c1_50, %c0_51] : memref<6x6x64xf32, #tpu.memory_space<vmem>>, vector<4x4x64xf32>
    %c1_52 = arith.constant 1 : index
    %c2_53 = arith.constant 2 : index
    %c0_54 = arith.constant 0 : index
    %81 = vector.load %arg9[%c1_52, %c2_53, %c0_54] : memref<6x6x64xf32, #tpu.memory_space<vmem>>, vector<4x4x64xf32>
    %c2_55 = arith.constant 2 : index
    %c0_56 = arith.constant 0 : index
    %c0_57 = arith.constant 0 : index
    %82 = vector.load %arg9[%c2_55, %c0_56, %c0_57] : memref<6x6x64xf32, #tpu.memory_space<vmem>>, vector<4x4x64xf32>
    %c2_58 = arith.constant 2 : index
    %c1_59 = arith.constant 1 : index
    %c0_60 = arith.constant 0 : index
    %83 = vector.load %arg9[%c2_58, %c1_59, %c0_60] : memref<6x6x64xf32, #tpu.memory_space<vmem>>, vector<4x4x64xf32>
    %c2_61 = arith.constant 2 : index
    %c2_62 = arith.constant 2 : index
    %c0_63 = arith.constant 0 : index
    %84 = vector.load %arg9[%c2_61, %c2_62, %c0_63] : memref<6x6x64xf32, #tpu.memory_space<vmem>>, vector<4x4x64xf32>
    %cst_64 = arith.constant 0.000000e+00 : f32
    %85 = vector.broadcast %cst_64 : f32 to vector<4x4x64xf32>
    %86 = vector.extract_strided_slice %74 {offsets = [18, 0], sizes = [1, 64], strides = [1, 1]} : vector<64x64xf32> to vector<1x64xf32>
    %87 = vector.shape_cast %86 : vector<1x64xf32> to vector<1x1x64xf32>
    %88 = vector.broadcast %87 : vector<1x1x64xf32> to vector<4x4x64xf32>
    %89 = arith.mulf %80, %88 : vector<4x4x64xf32>
    %90 = arith.addf %85, %89 : vector<4x4x64xf32>
    %91 = vector.extract_strided_slice %74 {offsets = [22, 0], sizes = [1, 64], strides = [1, 1]} : vector<64x64xf32> to vector<1x64xf32>
    %92 = vector.shape_cast %91 : vector<1x64xf32> to vector<1x1x64xf32>
    %93 = vector.broadcast %92 : vector<1x1x64xf32> to vector<4x4x64xf32>
    %94 = arith.mulf %79, %93 : vector<4x4x64xf32>
    %95 = arith.addf %90, %94 : vector<4x4x64xf32>
    %96 = vector.extract_strided_slice %74 {offsets = [50, 0], sizes = [1, 64], strides = [1, 1]} : vector<64x64xf32> to vector<1x64xf32>
    %97 = vector.shape_cast %96 : vector<1x64xf32> to vector<1x1x64xf32>
    %98 = vector.broadcast %97 : vector<1x1x64xf32> to vector<4x4x64xf32>
    %99 = arith.mulf %77, %98 : vector<4x4x64xf32>
    %100 = arith.addf %95, %99 : vector<4x4x64xf32>
    %101 = vector.extract_strided_slice %74 {offsets = [54, 0], sizes = [1, 64], strides = [1, 1]} : vector<64x64xf32> to vector<1x64xf32>
    %102 = vector.shape_cast %101 : vector<1x64xf32> to vector<1x1x64xf32>
    %103 = vector.broadcast %102 : vector<1x1x64xf32> to vector<4x4x64xf32>
    %104 = arith.mulf %76, %103 : vector<4x4x64xf32>
    %105 = arith.addf %100, %104 : vector<4x4x64xf32>
    %106 = vector.shape_cast %75 : vector<1x64xf32> to vector<1x1x64xf32>
    %107 = vector.broadcast %106 : vector<1x1x64xf32> to vector<4x4x64xf32>
    %108 = arith.addf %105, %107 : vector<4x4x64xf32>
    %cst_65 = arith.constant 0.000000e+00 : f32
    %109 = vector.broadcast %cst_65 : f32 to vector<4x4x64xf32>
    %110 = vector.extract_strided_slice %74 {offsets = [19, 0], sizes = [1, 64], strides = [1, 1]} : vector<64x64xf32> to vector<1x64xf32>
    %111 = vector.shape_cast %110 : vector<1x64xf32> to vector<1x1x64xf32>
    %112 = vector.broadcast %111 : vector<1x1x64xf32> to vector<4x4x64xf32>
    %113 = arith.mulf %80, %112 : vector<4x4x64xf32>
    %114 = arith.addf %109, %113 : vector<4x4x64xf32>
    %115 = vector.extract_strided_slice %74 {offsets = [23, 0], sizes = [1, 64], strides = [1, 1]} : vector<64x64xf32> to vector<1x64xf32>
    %116 = vector.shape_cast %115 : vector<1x64xf32> to vector<1x1x64xf32>
    %117 = vector.broadcast %116 : vector<1x1x64xf32> to vector<4x4x64xf32>
    %118 = arith.mulf %79, %117 : vector<4x4x64xf32>
    %119 = arith.addf %114, %118 : vector<4x4x64xf32>
    %120 = vector.extract_strided_slice %74 {offsets = [51, 0], sizes = [1, 64], strides = [1, 1]} : vector<64x64xf32> to vector<1x64xf32>
    %121 = vector.shape_cast %120 : vector<1x64xf32> to vector<1x1x64xf32>
    %122 = vector.broadcast %121 : vector<1x1x64xf32> to vector<4x4x64xf32>
    %123 = arith.mulf %77, %122 : vector<4x4x64xf32>
    %124 = arith.addf %119, %123 : vector<4x4x64xf32>
    %125 = vector.extract_strided_slice %74 {offsets = [55, 0], sizes = [1, 64], strides = [1, 1]} : vector<64x64xf32> to vector<1x64xf32>
    %126 = vector.shape_cast %125 : vector<1x64xf32> to vector<1x1x64xf32>
    %127 = vector.broadcast %126 : vector<1x1x64xf32> to vector<4x4x64xf32>
    %128 = arith.mulf %76, %127 : vector<4x4x64xf32>
    %129 = arith.addf %124, %128 : vector<4x4x64xf32>
    %130 = vector.shape_cast %75 : vector<1x64xf32> to vector<1x1x64xf32>
    %131 = vector.broadcast %130 : vector<1x1x64xf32> to vector<4x4x64xf32>
    %132 = arith.addf %129, %131 : vector<4x4x64xf32>
    %cst_66 = arith.constant 0.000000e+00 : f32
    %133 = vector.broadcast %cst_66 : f32 to vector<4x4x64xf32>
    %134 = vector.extract_strided_slice %74 {offsets = [20, 0], sizes = [1, 64], strides = [1, 1]} : vector<64x64xf32> to vector<1x64xf32>
    %135 = vector.shape_cast %134 : vector<1x64xf32> to vector<1x1x64xf32>
    %136 = vector.broadcast %135 : vector<1x1x64xf32> to vector<4x4x64xf32>
    %137 = arith.mulf %80, %136 : vector<4x4x64xf32>
    %138 = arith.addf %133, %137 : vector<4x4x64xf32>
    %139 = vector.extract_strided_slice %74 {offsets = [16, 0], sizes = [1, 64], strides = [1, 1]} : vector<64x64xf32> to vector<1x64xf32>
    %140 = vector.shape_cast %139 : vector<1x64xf32> to vector<1x1x64xf32>
    %141 = vector.broadcast %140 : vector<1x1x64xf32> to vector<4x4x64xf32>
    %142 = arith.mulf %81, %141 : vector<4x4x64xf32>
    %143 = arith.addf %138, %142 : vector<4x4x64xf32>
    %144 = vector.extract_strided_slice %74 {offsets = [52, 0], sizes = [1, 64], strides = [1, 1]} : vector<64x64xf32> to vector<1x64xf32>
    %145 = vector.shape_cast %144 : vector<1x64xf32> to vector<1x1x64xf32>
    %146 = vector.broadcast %145 : vector<1x1x64xf32> to vector<4x4x64xf32>
    %147 = arith.mulf %77, %146 : vector<4x4x64xf32>
    %148 = arith.addf %143, %147 : vector<4x4x64xf32>
    %149 = vector.extract_strided_slice %74 {offsets = [48, 0], sizes = [1, 64], strides = [1, 1]} : vector<64x64xf32> to vector<1x64xf32>
    %150 = vector.shape_cast %149 : vector<1x64xf32> to vector<1x1x64xf32>
    %151 = vector.broadcast %150 : vector<1x1x64xf32> to vector<4x4x64xf32>
    %152 = arith.mulf %78, %151 : vector<4x4x64xf32>
    %153 = arith.addf %148, %152 : vector<4x4x64xf32>
    %154 = vector.shape_cast %75 : vector<1x64xf32> to vector<1x1x64xf32>
    %155 = vector.broadcast %154 : vector<1x1x64xf32> to vector<4x4x64xf32>
    %156 = arith.addf %153, %155 : vector<4x4x64xf32>
    %cst_67 = arith.constant 0.000000e+00 : f32
    %157 = vector.broadcast %cst_67 : f32 to vector<4x4x64xf32>
    %158 = vector.extract_strided_slice %74 {offsets = [21, 0], sizes = [1, 64], strides = [1, 1]} : vector<64x64xf32> to vector<1x64xf32>
    %159 = vector.shape_cast %158 : vector<1x64xf32> to vector<1x1x64xf32>
    %160 = vector.broadcast %159 : vector<1x1x64xf32> to vector<4x4x64xf32>
    %161 = arith.mulf %80, %160 : vector<4x4x64xf32>
    %162 = arith.addf %157, %161 : vector<4x4x64xf32>
    %163 = vector.extract_strided_slice %74 {offsets = [17, 0], sizes = [1, 64], strides = [1, 1]} : vector<64x64xf32> to vector<1x64xf32>
    %164 = vector.shape_cast %163 : vector<1x64xf32> to vector<1x1x64xf32>
    %165 = vector.broadcast %164 : vector<1x1x64xf32> to vector<4x4x64xf32>
    %166 = arith.mulf %81, %165 : vector<4x4x64xf32>
    %167 = arith.addf %162, %166 : vector<4x4x64xf32>
    %168 = vector.extract_strided_slice %74 {offsets = [53, 0], sizes = [1, 64], strides = [1, 1]} : vector<64x64xf32> to vector<1x64xf32>
    %169 = vector.shape_cast %168 : vector<1x64xf32> to vector<1x1x64xf32>
    %170 = vector.broadcast %169 : vector<1x1x64xf32> to vector<4x4x64xf32>
    %171 = arith.mulf %77, %170 : vector<4x4x64xf32>
    %172 = arith.addf %167, %171 : vector<4x4x64xf32>
    %173 = vector.extract_strided_slice %74 {offsets = [49, 0], sizes = [1, 64], strides = [1, 1]} : vector<64x64xf32> to vector<1x64xf32>
    %174 = vector.shape_cast %173 : vector<1x64xf32> to vector<1x1x64xf32>
    %175 = vector.broadcast %174 : vector<1x1x64xf32> to vector<4x4x64xf32>
    %176 = arith.mulf %78, %175 : vector<4x4x64xf32>
    %177 = arith.addf %172, %176 : vector<4x4x64xf32>
    %178 = vector.shape_cast %75 : vector<1x64xf32> to vector<1x1x64xf32>
    %179 = vector.broadcast %178 : vector<1x1x64xf32> to vector<4x4x64xf32>
    %180 = arith.addf %177, %179 : vector<4x4x64xf32>
    %181 = tpu.concatenate %108, %132, %156, %180 in 2 : vector<4x4x64xf32>, vector<4x4x64xf32>, vector<4x4x64xf32>, vector<4x4x64xf32> -> vector<4x4x256xf32>
    %c0_68 = arith.constant 0 : index
    %c0_69 = arith.constant 0 : index
    %c0_70 = arith.constant 0 : index
    %c0_71 = arith.constant 0 : index
    %c0_72 = arith.constant 0 : index
    %182 = vector.load %arg8[%c0_68, %c0_69, %c0_70, %c0_71, %c0_72] : memref<1x4x4x4x256xf32, #tpu.memory_space<vmem>>, vector<1x1x4x4x256xf32>
    %183 = vector.shape_cast %182 : vector<1x1x4x4x256xf32> to vector<4x4x256xf32>
    %184 = vector.shape_cast %181 : vector<4x4x256xf32> to vector<1x1x4x4x256xf32>
    tpu.vector_store %arg8[%c0_68, %c0_69, %c0_70, %c0_71, %c0_72], %184 {strides = array<i32>} : memref<1x4x4x4x256xf32, #tpu.memory_space<vmem>>, vector<1x1x4x4x256xf32>,
    %cst_73 = arith.constant 0.000000e+00 : f32
    %185 = vector.broadcast %cst_73 : f32 to vector<4x4x64xf32>
    %186 = vector.extract_strided_slice %74 {offsets = [26, 0], sizes = [1, 64], strides = [1, 1]} : vector<64x64xf32> to vector<1x64xf32>
    %187 = vector.shape_cast %186 : vector<1x64xf32> to vector<1x1x64xf32>
    %188 = vector.broadcast %187 : vector<1x1x64xf32> to vector<4x4x64xf32>
    %189 = arith.mulf %80, %188 : vector<4x4x64xf32>
    %190 = arith.addf %185, %189 : vector<4x4x64xf32>
    %191 = vector.extract_strided_slice %74 {offsets = [30, 0], sizes = [1, 64], strides = [1, 1]} : vector<64x64xf32> to vector<1x64xf32>
    %192 = vector.shape_cast %191 : vector<1x64xf32> to vector<1x1x64xf32>
    %193 = vector.broadcast %192 : vector<1x1x64xf32> to vector<4x4x64xf32>
    %194 = arith.mulf %79, %193 : vector<4x4x64xf32>
    %195 = arith.addf %190, %194 : vector<4x4x64xf32>
    %196 = vector.extract_strided_slice %74 {offsets = [58, 0], sizes = [1, 64], strides = [1, 1]} : vector<64x64xf32> to vector<1x64xf32>
    %197 = vector.shape_cast %196 : vector<1x64xf32> to vector<1x1x64xf32>
    %198 = vector.broadcast %197 : vector<1x1x64xf32> to vector<4x4x64xf32>
    %199 = arith.mulf %77, %198 : vector<4x4x64xf32>
    %200 = arith.addf %195, %199 : vector<4x4x64xf32>
    %201 = vector.extract_strided_slice %74 {offsets = [62, 0], sizes = [1, 64], strides = [1, 1]} : vector<64x64xf32> to vector<1x64xf32>
    %202 = vector.shape_cast %201 : vector<1x64xf32> to vector<1x1x64xf32>
    %203 = vector.broadcast %202 : vector<1x1x64xf32> to vector<4x4x64xf32>
    %204 = arith.mulf %76, %203 : vector<4x4x64xf32>
    %205 = arith.addf %200, %204 : vector<4x4x64xf32>
    %206 = vector.shape_cast %75 : vector<1x64xf32> to vector<1x1x64xf32>
    %207 = vector.broadcast %206 : vector<1x1x64xf32> to vector<4x4x64xf32>
    %208 = arith.addf %205, %207 : vector<4x4x64xf32>
    %cst_74 = arith.constant 0.000000e+00 : f32
    %209 = vector.broadcast %cst_74 : f32 to vector<4x4x64xf32>
    %210 = vector.extract_strided_slice %74 {offsets = [27, 0], sizes = [1, 64], strides = [1, 1]} : vector<64x64xf32> to vector<1x64xf32>
    %211 = vector.shape_cast %210 : vector<1x64xf32> to vector<1x1x64xf32>
    %212 = vector.broadcast %211 : vector<1x1x64xf32> to vector<4x4x64xf32>
    %213 = arith.mulf %80, %212 : vector<4x4x64xf32>
    %214 = arith.addf %209, %213 : vector<4x4x64xf32>
    %215 = vector.extract_strided_slice %74 {offsets = [31, 0], sizes = [1, 64], strides = [1, 1]} : vector<64x64xf32> to vector<1x64xf32>
    %216 = vector.shape_cast %215 : vector<1x64xf32> to vector<1x1x64xf32>
    %217 = vector.broadcast %216 : vector<1x1x64xf32> to vector<4x4x64xf32>
    %218 = arith.mulf %79, %217 : vector<4x4x64xf32>
    %219 = arith.addf %214, %218 : vector<4x4x64xf32>
    %220 = vector.extract_strided_slice %74 {offsets = [59, 0], sizes = [1, 64], strides = [1, 1]} : vector<64x64xf32> to vector<1x64xf32>
    %221 = vector.shape_cast %220 : vector<1x64xf32> to vector<1x1x64xf32>
    %222 = vector.broadcast %221 : vector<1x1x64xf32> to vector<4x4x64xf32>
    %223 = arith.mulf %77, %222 : vector<4x4x64xf32>
    %224 = arith.addf %219, %223 : vector<4x4x64xf32>
    %225 = vector.extract_strided_slice %74 {offsets = [63, 0], sizes = [1, 64], strides = [1, 1]} : vector<64x64xf32> to vector<1x64xf32>
    %226 = vector.shape_cast %225 : vector<1x64xf32> to vector<1x1x64xf32>
    %227 = vector.broadcast %226 : vector<1x1x64xf32> to vector<4x4x64xf32>
    %228 = arith.mulf %76, %227 : vector<4x4x64xf32>
    %229 = arith.addf %224, %228 : vector<4x4x64xf32>
    %230 = vector.shape_cast %75 : vector<1x64xf32> to vector<1x1x64xf32>
    %231 = vector.broadcast %230 : vector<1x1x64xf32> to vector<4x4x64xf32>
    %232 = arith.addf %229, %231 : vector<4x4x64xf32>
    %cst_75 = arith.constant 0.000000e+00 : f32
    %233 = vector.broadcast %cst_75 : f32 to vector<4x4x64xf32>
    %234 = vector.extract_strided_slice %74 {offsets = [28, 0], sizes = [1, 64], strides = [1, 1]} : vector<64x64xf32> to vector<1x64xf32>
    %235 = vector.shape_cast %234 : vector<1x64xf32> to vector<1x1x64xf32>
    %236 = vector.broadcast %235 : vector<1x1x64xf32> to vector<4x4x64xf32>
    %237 = arith.mulf %80, %236 : vector<4x4x64xf32>
    %238 = arith.addf %233, %237 : vector<4x4x64xf32>
    %239 = vector.extract_strided_slice %74 {offsets = [24, 0], sizes = [1, 64], strides = [1, 1]} : vector<64x64xf32> to vector<1x64xf32>
    %240 = vector.shape_cast %239 : vector<1x64xf32> to vector<1x1x64xf32>
    %241 = vector.broadcast %240 : vector<1x1x64xf32> to vector<4x4x64xf32>
    %242 = arith.mulf %81, %241 : vector<4x4x64xf32>
    %243 = arith.addf %238, %242 : vector<4x4x64xf32>
    %244 = vector.extract_strided_slice %74 {offsets = [60, 0], sizes = [1, 64], strides = [1, 1]} : vector<64x64xf32> to vector<1x64xf32>
    %245 = vector.shape_cast %244 : vector<1x64xf32> to vector<1x1x64xf32>
    %246 = vector.broadcast %245 : vector<1x1x64xf32> to vector<4x4x64xf32>
    %247 = arith.mulf %77, %246 : vector<4x4x64xf32>
    %248 = arith.addf %243, %247 : vector<4x4x64xf32>
    %249 = vector.extract_strided_slice %74 {offsets = [56, 0], sizes = [1, 64], strides = [1, 1]} : vector<64x64xf32> to vector<1x64xf32>
    %250 = vector.shape_cast %249 : vector<1x64xf32> to vector<1x1x64xf32>
    %251 = vector.broadcast %250 : vector<1x1x64xf32> to vector<4x4x64xf32>
    %252 = arith.mulf %78, %251 : vector<4x4x64xf32>
    %253 = arith.addf %248, %252 : vector<4x4x64xf32>
    %254 = vector.shape_cast %75 : vector<1x64xf32> to vector<1x1x64xf32>
    %255 = vector.broadcast %254 : vector<1x1x64xf32> to vector<4x4x64xf32>
    %256 = arith.addf %253, %255 : vector<4x4x64xf32>
    %cst_76 = arith.constant 0.000000e+00 : f32
    %257 = vector.broadcast %cst_76 : f32 to vector<4x4x64xf32>
    %258 = vector.extract_strided_slice %74 {offsets = [29, 0], sizes = [1, 64], strides = [1, 1]} : vector<64x64xf32> to vector<1x64xf32>
    %259 = vector.shape_cast %258 : vector<1x64xf32> to vector<1x1x64xf32>
    %260 = vector.broadcast %259 : vector<1x1x64xf32> to vector<4x4x64xf32>
    %261 = arith.mulf %80, %260 : vector<4x4x64xf32>
    %262 = arith.addf %257, %261 : vector<4x4x64xf32>
    %263 = vector.extract_strided_slice %74 {offsets = [25, 0], sizes = [1, 64], strides = [1, 1]} : vector<64x64xf32> to vector<1x64xf32>
    %264 = vector.shape_cast %263 : vector<1x64xf32> to vector<1x1x64xf32>
    %265 = vector.broadcast %264 : vector<1x1x64xf32> to vector<4x4x64xf32>
    %266 = arith.mulf %81, %265 : vector<4x4x64xf32>
    %267 = arith.addf %262, %266 : vector<4x4x64xf32>
    %268 = vector.extract_strided_slice %74 {offsets = [61, 0], sizes = [1, 64], strides = [1, 1]} : vector<64x64xf32> to vector<1x64xf32>
    %269 = vector.shape_cast %268 : vector<1x64xf32> to vector<1x1x64xf32>
    %270 = vector.broadcast %269 : vector<1x1x64xf32> to vector<4x4x64xf32>
    %271 = arith.mulf %77, %270 : vector<4x4x64xf32>
    %272 = arith.addf %267, %271 : vector<4x4x64xf32>
    %273 = vector.extract_strided_slice %74 {offsets = [57, 0], sizes = [1, 64], strides = [1, 1]} : vector<64x64xf32> to vector<1x64xf32>
    %274 = vector.shape_cast %273 : vector<1x64xf32> to vector<1x1x64xf32>
    %275 = vector.broadcast %274 : vector<1x1x64xf32> to vector<4x4x64xf32>
    %276 = arith.mulf %78, %275 : vector<4x4x64xf32>
    %277 = arith.addf %272, %276 : vector<4x4x64xf32>
    %278 = vector.shape_cast %75 : vector<1x64xf32> to vector<1x1x64xf32>
    %279 = vector.broadcast %278 : vector<1x1x64xf32> to vector<4x4x64xf32>
    %280 = arith.addf %277, %279 : vector<4x4x64xf32>
    %281 = tpu.concatenate %208, %232, %256, %280 in 2 : vector<4x4x64xf32>, vector<4x4x64xf32>, vector<4x4x64xf32>, vector<4x4x64xf32> -> vector<4x4x256xf32>
    %c0_77 = arith.constant 0 : index
    %c1_78 = arith.constant 1 : index
    %c0_79 = arith.constant 0 : index
    %c0_80 = arith.constant 0 : index
    %c0_81 = arith.constant 0 : index
    %282 = vector.load %arg8[%c0_77, %c1_78, %c0_79, %c0_80, %c0_81] : memref<1x4x4x4x256xf32, #tpu.memory_space<vmem>>, vector<1x1x4x4x256xf32>
    %283 = vector.shape_cast %282 : vector<1x1x4x4x256xf32> to vector<4x4x256xf32>
    %284 = vector.shape_cast %281 : vector<4x4x256xf32> to vector<1x1x4x4x256xf32>
    tpu.vector_store %arg8[%c0_77, %c1_78, %c0_79, %c0_80, %c0_81], %284 {strides = array<i32>} : memref<1x4x4x4x256xf32, #tpu.memory_space<vmem>>, vector<1x1x4x4x256xf32>,
    %cst_82 = arith.constant 0.000000e+00 : f32
    %285 = vector.broadcast %cst_82 : f32 to vector<4x4x64xf32>
    %286 = vector.extract_strided_slice %74 {offsets = [34, 0], sizes = [1, 64], strides = [1, 1]} : vector<64x64xf32> to vector<1x64xf32>
    %287 = vector.shape_cast %286 : vector<1x64xf32> to vector<1x1x64xf32>
    %288 = vector.broadcast %287 : vector<1x1x64xf32> to vector<4x4x64xf32>
    %289 = arith.mulf %80, %288 : vector<4x4x64xf32>
    %290 = arith.addf %285, %289 : vector<4x4x64xf32>
    %291 = vector.extract_strided_slice %74 {offsets = [38, 0], sizes = [1, 64], strides = [1, 1]} : vector<64x64xf32> to vector<1x64xf32>
    %292 = vector.shape_cast %291 : vector<1x64xf32> to vector<1x1x64xf32>
    %293 = vector.broadcast %292 : vector<1x1x64xf32> to vector<4x4x64xf32>
    %294 = arith.mulf %79, %293 : vector<4x4x64xf32>
    %295 = arith.addf %290, %294 : vector<4x4x64xf32>
    %296 = vector.extract_strided_slice %74 {offsets = [2, 0], sizes = [1, 64], strides = [1, 1]} : vector<64x64xf32> to vector<1x64xf32>
    %297 = vector.shape_cast %296 : vector<1x64xf32> to vector<1x1x64xf32>
    %298 = vector.broadcast %297 : vector<1x1x64xf32> to vector<4x4x64xf32>
    %299 = arith.mulf %83, %298 : vector<4x4x64xf32>
    %300 = arith.addf %295, %299 : vector<4x4x64xf32>
    %301 = vector.extract_strided_slice %74 {offsets = [6, 0], sizes = [1, 64], strides = [1, 1]} : vector<64x64xf32> to vector<1x64xf32>
    %302 = vector.shape_cast %301 : vector<1x64xf32> to vector<1x1x64xf32>
    %303 = vector.broadcast %302 : vector<1x1x64xf32> to vector<4x4x64xf32>
    %304 = arith.mulf %82, %303 : vector<4x4x64xf32>
    %305 = arith.addf %300, %304 : vector<4x4x64xf32>
    %306 = vector.shape_cast %75 : vector<1x64xf32> to vector<1x1x64xf32>
    %307 = vector.broadcast %306 : vector<1x1x64xf32> to vector<4x4x64xf32>
    %308 = arith.addf %305, %307 : vector<4x4x64xf32>
    %cst_83 = arith.constant 0.000000e+00 : f32
    %309 = vector.broadcast %cst_83 : f32 to vector<4x4x64xf32>
    %310 = vector.extract_strided_slice %74 {offsets = [35, 0], sizes = [1, 64], strides = [1, 1]} : vector<64x64xf32> to vector<1x64xf32>
    %311 = vector.shape_cast %310 : vector<1x64xf32> to vector<1x1x64xf32>
    %312 = vector.broadcast %311 : vector<1x1x64xf32> to vector<4x4x64xf32>
    %313 = arith.mulf %80, %312 : vector<4x4x64xf32>
    %314 = arith.addf %309, %313 : vector<4x4x64xf32>
    %315 = vector.extract_strided_slice %74 {offsets = [39, 0], sizes = [1, 64], strides = [1, 1]} : vector<64x64xf32> to vector<1x64xf32>
    %316 = vector.shape_cast %315 : vector<1x64xf32> to vector<1x1x64xf32>
    %317 = vector.broadcast %316 : vector<1x1x64xf32> to vector<4x4x64xf32>
    %318 = arith.mulf %79, %317 : vector<4x4x64xf32>
    %319 = arith.addf %314, %318 : vector<4x4x64xf32>
    %320 = vector.extract_strided_slice %74 {offsets = [3, 0], sizes = [1, 64], strides = [1, 1]} : vector<64x64xf32> to vector<1x64xf32>
    %321 = vector.shape_cast %320 : vector<1x64xf32> to vector<1x1x64xf32>
    %322 = vector.broadcast %321 : vector<1x1x64xf32> to vector<4x4x64xf32>
    %323 = arith.mulf %83, %322 : vector<4x4x64xf32>
    %324 = arith.addf %319, %323 : vector<4x4x64xf32>
    %325 = vector.extract_strided_slice %74 {offsets = [7, 0], sizes = [1, 64], strides = [1, 1]} : vector<64x64xf32> to vector<1x64xf32>
    %326 = vector.shape_cast %325 : vector<1x64xf32> to vector<1x1x64xf32>
    %327 = vector.broadcast %326 : vector<1x1x64xf32> to vector<4x4x64xf32>
    %328 = arith.mulf %82, %327 : vector<4x4x64xf32>
    %329 = arith.addf %324, %328 : vector<4x4x64xf32>
    %330 = vector.shape_cast %75 : vector<1x64xf32> to vector<1x1x64xf32>
    %331 = vector.broadcast %330 : vector<1x1x64xf32> to vector<4x4x64xf32>
    %332 = arith.addf %329, %331 : vector<4x4x64xf32>
    %cst_84 = arith.constant 0.000000e+00 : f32
    %333 = vector.broadcast %cst_84 : f32 to vector<4x4x64xf32>
    %334 = vector.extract_strided_slice %74 {offsets = [36, 0], sizes = [1, 64], strides = [1, 1]} : vector<64x64xf32> to vector<1x64xf32>
    %335 = vector.shape_cast %334 : vector<1x64xf32> to vector<1x1x64xf32>
    %336 = vector.broadcast %335 : vector<1x1x64xf32> to vector<4x4x64xf32>
    %337 = arith.mulf %80, %336 : vector<4x4x64xf32>
    %338 = arith.addf %333, %337 : vector<4x4x64xf32>
    %339 = vector.extract_strided_slice %74 {offsets = [32, 0], sizes = [1, 64], strides = [1, 1]} : vector<64x64xf32> to vector<1x64xf32>
    %340 = vector.shape_cast %339 : vector<1x64xf32> to vector<1x1x64xf32>
    %341 = vector.broadcast %340 : vector<1x1x64xf32> to vector<4x4x64xf32>
    %342 = arith.mulf %81, %341 : vector<4x4x64xf32>
    %343 = arith.addf %338, %342 : vector<4x4x64xf32>
    %344 = vector.extract_strided_slice %74 {offsets = [4, 0], sizes = [1, 64], strides = [1, 1]} : vector<64x64xf32> to vector<1x64xf32>
    %345 = vector.shape_cast %344 : vector<1x64xf32> to vector<1x1x64xf32>
    %346 = vector.broadcast %345 : vector<1x1x64xf32> to vector<4x4x64xf32>
    %347 = arith.mulf %83, %346 : vector<4x4x64xf32>
    %348 = arith.addf %343, %347 : vector<4x4x64xf32>
    %349 = vector.extract_strided_slice %74 {offsets = [0, 0], sizes = [1, 64], strides = [1, 1]} : vector<64x64xf32> to vector<1x64xf32>
    %350 = vector.shape_cast %349 : vector<1x64xf32> to vector<1x1x64xf32>
    %351 = vector.broadcast %350 : vector<1x1x64xf32> to vector<4x4x64xf32>
    %352 = arith.mulf %84, %351 : vector<4x4x64xf32>
    %353 = arith.addf %348, %352 : vector<4x4x64xf32>
    %354 = vector.shape_cast %75 : vector<1x64xf32> to vector<1x1x64xf32>
    %355 = vector.broadcast %354 : vector<1x1x64xf32> to vector<4x4x64xf32>
    %356 = arith.addf %353, %355 : vector<4x4x64xf32>
    %cst_85 = arith.constant 0.000000e+00 : f32
    %357 = vector.broadcast %cst_85 : f32 to vector<4x4x64xf32>
    %358 = vector.extract_strided_slice %74 {offsets = [37, 0], sizes = [1, 64], strides = [1, 1]} : vector<64x64xf32> to vector<1x64xf32>
    %359 = vector.shape_cast %358 : vector<1x64xf32> to vector<1x1x64xf32>
    %360 = vector.broadcast %359 : vector<1x1x64xf32> to vector<4x4x64xf32>
    %361 = arith.mulf %80, %360 : vector<4x4x64xf32>
    %362 = arith.addf %357, %361 : vector<4x4x64xf32>
    %363 = vector.extract_strided_slice %74 {offsets = [33, 0], sizes = [1, 64], strides = [1, 1]} : vector<64x64xf32> to vector<1x64xf32>
    %364 = vector.shape_cast %363 : vector<1x64xf32> to vector<1x1x64xf32>
    %365 = vector.broadcast %364 : vector<1x1x64xf32> to vector<4x4x64xf32>
    %366 = arith.mulf %81, %365 : vector<4x4x64xf32>
    %367 = arith.addf %362, %366 : vector<4x4x64xf32>
    %368 = vector.extract_strided_slice %74 {offsets = [5, 0], sizes = [1, 64], strides = [1, 1]} : vector<64x64xf32> to vector<1x64xf32>
    %369 = vector.shape_cast %368 : vector<1x64xf32> to vector<1x1x64xf32>
    %370 = vector.broadcast %369 : vector<1x1x64xf32> to vector<4x4x64xf32>
    %371 = arith.mulf %83, %370 : vector<4x4x64xf32>
    %372 = arith.addf %367, %371 : vector<4x4x64xf32>
    %373 = vector.extract_strided_slice %74 {offsets = [1, 0], sizes = [1, 64], strides = [1, 1]} : vector<64x64xf32> to vector<1x64xf32>
    %374 = vector.shape_cast %373 : vector<1x64xf32> to vector<1x1x64xf32>
    %375 = vector.broadcast %374 : vector<1x1x64xf32> to vector<4x4x64xf32>
    %376 = arith.mulf %84, %375 : vector<4x4x64xf32>
    %377 = arith.addf %372, %376 : vector<4x4x64xf32>
    %378 = vector.shape_cast %75 : vector<1x64xf32> to vector<1x1x64xf32>
    %379 = vector.broadcast %378 : vector<1x1x64xf32> to vector<4x4x64xf32>
    %380 = arith.addf %377, %379 : vector<4x4x64xf32>
    %381 = tpu.concatenate %308, %332, %356, %380 in 2 : vector<4x4x64xf32>, vector<4x4x64xf32>, vector<4x4x64xf32>, vector<4x4x64xf32> -> vector<4x4x256xf32>
    %c0_86 = arith.constant 0 : index
    %c2_87 = arith.constant 2 : index
    %c0_88 = arith.constant 0 : index
    %c0_89 = arith.constant 0 : index
    %c0_90 = arith.constant 0 : index
    %382 = vector.load %arg8[%c0_86, %c2_87, %c0_88, %c0_89, %c0_90] : memref<1x4x4x4x256xf32, #tpu.memory_space<vmem>>, vector<1x1x4x4x256xf32>
    %383 = vector.shape_cast %382 : vector<1x1x4x4x256xf32> to vector<4x4x256xf32>
    %384 = vector.shape_cast %381 : vector<4x4x256xf32> to vector<1x1x4x4x256xf32>
    tpu.vector_store %arg8[%c0_86, %c2_87, %c0_88, %c0_89, %c0_90], %384 {strides = array<i32>} : memref<1x4x4x4x256xf32, #tpu.memory_space<vmem>>, vector<1x1x4x4x256xf32>,
    %cst_91 = arith.constant 0.000000e+00 : f32
    %385 = vector.broadcast %cst_91 : f32 to vector<4x4x64xf32>
    %386 = vector.extract_strided_slice %74 {offsets = [42, 0], sizes = [1, 64], strides = [1, 1]} : vector<64x64xf32> to vector<1x64xf32>
    %387 = vector.shape_cast %386 : vector<1x64xf32> to vector<1x1x64xf32>
    %388 = vector.broadcast %387 : vector<1x1x64xf32> to vector<4x4x64xf32>
    %389 = arith.mulf %80, %388 : vector<4x4x64xf32>
    %390 = arith.addf %385, %389 : vector<4x4x64xf32>
    %391 = vector.extract_strided_slice %74 {offsets = [46, 0], sizes = [1, 64], strides = [1, 1]} : vector<64x64xf32> to vector<1x64xf32>
    %392 = vector.shape_cast %391 : vector<1x64xf32> to vector<1x1x64xf32>
    %393 = vector.broadcast %392 : vector<1x1x64xf32> to vector<4x4x64xf32>
    %394 = arith.mulf %79, %393 : vector<4x4x64xf32>
    %395 = arith.addf %390, %394 : vector<4x4x64xf32>
    %396 = vector.extract_strided_slice %74 {offsets = [10, 0], sizes = [1, 64], strides = [1, 1]} : vector<64x64xf32> to vector<1x64xf32>
    %397 = vector.shape_cast %396 : vector<1x64xf32> to vector<1x1x64xf32>
    %398 = vector.broadcast %397 : vector<1x1x64xf32> to vector<4x4x64xf32>
    %399 = arith.mulf %83, %398 : vector<4x4x64xf32>
    %400 = arith.addf %395, %399 : vector<4x4x64xf32>
    %401 = vector.extract_strided_slice %74 {offsets = [14, 0], sizes = [1, 64], strides = [1, 1]} : vector<64x64xf32> to vector<1x64xf32>
    %402 = vector.shape_cast %401 : vector<1x64xf32> to vector<1x1x64xf32>
    %403 = vector.broadcast %402 : vector<1x1x64xf32> to vector<4x4x64xf32>
    %404 = arith.mulf %82, %403 : vector<4x4x64xf32>
    %405 = arith.addf %400, %404 : vector<4x4x64xf32>
    %406 = vector.shape_cast %75 : vector<1x64xf32> to vector<1x1x64xf32>
    %407 = vector.broadcast %406 : vector<1x1x64xf32> to vector<4x4x64xf32>
    %408 = arith.addf %405, %407 : vector<4x4x64xf32>
    %cst_92 = arith.constant 0.000000e+00 : f32
    %409 = vector.broadcast %cst_92 : f32 to vector<4x4x64xf32>
    %410 = vector.extract_strided_slice %74 {offsets = [43, 0], sizes = [1, 64], strides = [1, 1]} : vector<64x64xf32> to vector<1x64xf32>
    %411 = vector.shape_cast %410 : vector<1x64xf32> to vector<1x1x64xf32>
    %412 = vector.broadcast %411 : vector<1x1x64xf32> to vector<4x4x64xf32>
    %413 = arith.mulf %80, %412 : vector<4x4x64xf32>
    %414 = arith.addf %409, %413 : vector<4x4x64xf32>
    %415 = vector.extract_strided_slice %74 {offsets = [47, 0], sizes = [1, 64], strides = [1, 1]} : vector<64x64xf32> to vector<1x64xf32>
    %416 = vector.shape_cast %415 : vector<1x64xf32> to vector<1x1x64xf32>
    %417 = vector.broadcast %416 : vector<1x1x64xf32> to vector<4x4x64xf32>
    %418 = arith.mulf %79, %417 : vector<4x4x64xf32>
    %419 = arith.addf %414, %418 : vector<4x4x64xf32>
    %420 = vector.extract_strided_slice %74 {offsets = [11, 0], sizes = [1, 64], strides = [1, 1]} : vector<64x64xf32> to vector<1x64xf32>
    %421 = vector.shape_cast %420 : vector<1x64xf32> to vector<1x1x64xf32>
    %422 = vector.broadcast %421 : vector<1x1x64xf32> to vector<4x4x64xf32>
    %423 = arith.mulf %83, %422 : vector<4x4x64xf32>
    %424 = arith.addf %419, %423 : vector<4x4x64xf32>
    %425 = vector.extract_strided_slice %74 {offsets = [15, 0], sizes = [1, 64], strides = [1, 1]} : vector<64x64xf32> to vector<1x64xf32>
    %426 = vector.shape_cast %425 : vector<1x64xf32> to vector<1x1x64xf32>
    %427 = vector.broadcast %426 : vector<1x1x64xf32> to vector<4x4x64xf32>
    %428 = arith.mulf %82, %427 : vector<4x4x64xf32>
    %429 = arith.addf %424, %428 : vector<4x4x64xf32>
    %430 = vector.shape_cast %75 : vector<1x64xf32> to vector<1x1x64xf32>
    %431 = vector.broadcast %430 : vector<1x1x64xf32> to vector<4x4x64xf32>
    %432 = arith.addf %429, %431 : vector<4x4x64xf32>
    %cst_93 = arith.constant 0.000000e+00 : f32
    %433 = vector.broadcast %cst_93 : f32 to vector<4x4x64xf32>
    %434 = vector.extract_strided_slice %74 {offsets = [44, 0], sizes = [1, 64], strides = [1, 1]} : vector<64x64xf32> to vector<1x64xf32>
    %435 = vector.shape_cast %434 : vector<1x64xf32> to vector<1x1x64xf32>
    %436 = vector.broadcast %435 : vector<1x1x64xf32> to vector<4x4x64xf32>
    %437 = arith.mulf %80, %436 : vector<4x4x64xf32>
    %438 = arith.addf %433, %437 : vector<4x4x64xf32>
    %439 = vector.extract_strided_slice %74 {offsets = [40, 0], sizes = [1, 64], strides = [1, 1]} : vector<64x64xf32> to vector<1x64xf32>
    %440 = vector.shape_cast %439 : vector<1x64xf32> to vector<1x1x64xf32>
    %441 = vector.broadcast %440 : vector<1x1x64xf32> to vector<4x4x64xf32>
    %442 = arith.mulf %81, %441 : vector<4x4x64xf32>
    %443 = arith.addf %438, %442 : vector<4x4x64xf32>
    %444 = vector.extract_strided_slice %74 {offsets = [12, 0], sizes = [1, 64], strides = [1, 1]} : vector<64x64xf32> to vector<1x64xf32>
    %445 = vector.shape_cast %444 : vector<1x64xf32> to vector<1x1x64xf32>
    %446 = vector.broadcast %445 : vector<1x1x64xf32> to vector<4x4x64xf32>
    %447 = arith.mulf %83, %446 : vector<4x4x64xf32>
    %448 = arith.addf %443, %447 : vector<4x4x64xf32>
    %449 = vector.extract_strided_slice %74 {offsets = [8, 0], sizes = [1, 64], strides = [1, 1]} : vector<64x64xf32> to vector<1x64xf32>
    %450 = vector.shape_cast %449 : vector<1x64xf32> to vector<1x1x64xf32>
    %451 = vector.broadcast %450 : vector<1x1x64xf32> to vector<4x4x64xf32>
    %452 = arith.mulf %84, %451 : vector<4x4x64xf32>
    %453 = arith.addf %448, %452 : vector<4x4x64xf32>
    %454 = vector.shape_cast %75 : vector<1x64xf32> to vector<1x1x64xf32>
    %455 = vector.broadcast %454 : vector<1x1x64xf32> to vector<4x4x64xf32>
    %456 = arith.addf %453, %455 : vector<4x4x64xf32>
    %cst_94 = arith.constant 0.000000e+00 : f32
    %457 = vector.broadcast %cst_94 : f32 to vector<4x4x64xf32>
    %458 = vector.extract_strided_slice %74 {offsets = [45, 0], sizes = [1, 64], strides = [1, 1]} : vector<64x64xf32> to vector<1x64xf32>
    %459 = vector.shape_cast %458 : vector<1x64xf32> to vector<1x1x64xf32>
    %460 = vector.broadcast %459 : vector<1x1x64xf32> to vector<4x4x64xf32>
    %461 = arith.mulf %80, %460 : vector<4x4x64xf32>
    %462 = arith.addf %457, %461 : vector<4x4x64xf32>
    %463 = vector.extract_strided_slice %74 {offsets = [41, 0], sizes = [1, 64], strides = [1, 1]} : vector<64x64xf32> to vector<1x64xf32>
    %464 = vector.shape_cast %463 : vector<1x64xf32> to vector<1x1x64xf32>
    %465 = vector.broadcast %464 : vector<1x1x64xf32> to vector<4x4x64xf32>
    %466 = arith.mulf %81, %465 : vector<4x4x64xf32>
    %467 = arith.addf %462, %466 : vector<4x4x64xf32>
    %468 = vector.extract_strided_slice %74 {offsets = [13, 0], sizes = [1, 64], strides = [1, 1]} : vector<64x64xf32> to vector<1x64xf32>
    %469 = vector.shape_cast %468 : vector<1x64xf32> to vector<1x1x64xf32>
    %470 = vector.broadcast %469 : vector<1x1x64xf32> to vector<4x4x64xf32>
    %471 = arith.mulf %83, %470 : vector<4x4x64xf32>
    %472 = arith.addf %467, %471 : vector<4x4x64xf32>
    %473 = vector.extract_strided_slice %74 {offsets = [9, 0], sizes = [1, 64], strides = [1, 1]} : vector<64x64xf32> to vector<1x64xf32>
    %474 = vector.shape_cast %473 : vector<1x64xf32> to vector<1x1x64xf32>
    %475 = vector.broadcast %474 : vector<1x1x64xf32> to vector<4x4x64xf32>
    %476 = arith.mulf %84, %475 : vector<4x4x64xf32>
    %477 = arith.addf %472, %476 : vector<4x4x64xf32>
    %478 = vector.shape_cast %75 : vector<1x64xf32> to vector<1x1x64xf32>
    %479 = vector.broadcast %478 : vector<1x1x64xf32> to vector<4x4x64xf32>
    %480 = arith.addf %477, %479 : vector<4x4x64xf32>
    %481 = tpu.concatenate %408, %432, %456, %480 in 2 : vector<4x4x64xf32>, vector<4x4x64xf32>, vector<4x4x64xf32>, vector<4x4x64xf32> -> vector<4x4x256xf32>
    %c0_95 = arith.constant 0 : index
    %c3_96 = arith.constant 3 : index
    %c0_97 = arith.constant 0 : index
    %c0_98 = arith.constant 0 : index
    %c0_99 = arith.constant 0 : index
    %482 = vector.load %arg8[%c0_95, %c3_96, %c0_97, %c0_98, %c0_99] : memref<1x4x4x4x256xf32, #tpu.memory_space<vmem>>, vector<1x1x4x4x256xf32>
    %483 = vector.shape_cast %482 : vector<1x1x4x4x256xf32> to vector<4x4x256xf32>
    %484 = vector.shape_cast %481 : vector<4x4x256xf32> to vector<1x1x4x4x256xf32>
    tpu.vector_store %arg8[%c0_95, %c3_96, %c0_97, %c0_98, %c0_99], %484 {strides = array<i32>} : memref<1x4x4x4x256xf32, #tpu.memory_space<vmem>>, vector<1x1x4x4x256xf32>,
    return
  }
  func.func @transform_0(%arg0: i32) -> (i32, i32) {
    %c0_i32 = arith.constant 0 : i32
    %c0_i32_0 = arith.constant 0 : i32
    return %arg0, %c0_i32 : i32, i32
  }
  func.func @transform_1(%arg0: i32) -> (i32, i32) {
    %c0_i32 = arith.constant 0 : i32
    %c0_i32_0 = arith.constant 0 : i32
    %c0_i32_1 = arith.constant 0 : i32
    return %c0_i32, %c0_i32_0 : i32, i32
  }
  func.func @transform_2(%arg0: i32) -> (i32, i32) {
    %c0_i32 = arith.constant 0 : i32
    %c0_i32_0 = arith.constant 0 : i32
    %c0_i32_1 = arith.constant 0 : i32
    return %c0_i32, %c0_i32_0 : i32, i32
  }
  func.func @transform_3(%arg0: i32) -> (i32, i32) {
    %c0_i32 = arith.constant 0 : i32
    %c0_i32_0 = arith.constant 0 : i32
    %c0_i32_1 = arith.constant 0 : i32
    return %c0_i32, %c0_i32_0 : i32, i32
  }
  func.func @transform_4(%arg0: i32) -> (i32, i32) {
    %c0_i32 = arith.constant 0 : i32
    %c0_i32_0 = arith.constant 0 : i32
    %c0_i32_1 = arith.constant 0 : i32
    return %c0_i32, %c0_i32_0 : i32, i32
  }
  func.func @transform_5(%arg0: i32) -> (i32, i32) {
    %c0_i32 = arith.constant 0 : i32
    %c0_i32_0 = arith.constant 0 : i32
    %c0_i32_1 = arith.constant 0 : i32
    return %c0_i32, %c0_i32_0 : i32, i32
  }
  func.func @transform_6(%arg0: i32) -> (i32, i32) {
    %c0_i32 = arith.constant 0 : i32
    %c0_i32_0 = arith.constant 0 : i32
    %c0_i32_1 = arith.constant 0 : i32
    return %c0_i32, %c0_i32_0 : i32, i32
  }
  func.func @transform_7(%arg0: i32) -> (i32, i32, i32, i32, i32) {
    %c0_i32 = arith.constant 0 : i32
    %c0_i32_0 = arith.constant 0 : i32
    %c0_i32_1 = arith.constant 0 : i32
    %c0_i32_2 = arith.constant 0 : i32
    %c0_i32_3 = arith.constant 0 : i32
    return %arg0, %c0_i32, %c0_i32_0, %c0_i32_1, %c0_i32_2 : i32, i32, i32, i32, i32
  }
}

</mosaic_0001>

<bundles_post_ra>
// kernel: mul.3
= control target key start
LH: loop header
LB: loop body
LE: loop exit
PB: predicated region body
PF: predicated region fallthrough
CT: control target
= control target key end

     0   :  { %s100_s0 = inlined_call_operand.vmem [shape: f32[3136], index: 0, kind: input, shape index: {}]   ;;  %s101_s1 = inlined_call_operand.vmem [shape: f32[3136], index: 1, kind: input, shape index: {}]   ;;  %s102_s2 = inlined_call_operand.vmem [shape: f32[3136], index: 2, kind: output, shape index: {}]  }
   0x1   :  { %v3_v0 = vld [vmem:[%s100_s0] sm:$0xff]  ;;  %v40_v2 = vld [vmem:[%s100_s0 + $0x8] sm:$0xff]  ;;  %v43_v5 = vld [vmem:[%s100_s0 + $0x10] sm:$0xff] }
   0x2   :  { %v4_v1 = vld [vmem:[%s101_s1] sm:$0xff]  ;;  %v41_v4 = vld [vmem:[%s101_s1 + $0x8] sm:$0xff]  ;;  %v44_v6 = vld [vmem:[%s101_s1 + $0x10] sm:$0xff] }
   0x3   :  { %v7_v3 = vmul.f32 %v4_v1, %v3_v0  ;;  %v16_v7 = vmul.f32 %v41_v4, %v40_v2  ;;  %v26_v8 = vmul.f32 %v44_v6, %v43_v5  ;;  %v46_v9 = vld [vmem:[%s100_s0 + $0x18] sm:$0xff] }
   0x4   :  { %v47_v10 = vld [vmem:[%s101_s1 + $0x18] sm:$0xff] }
   0x5   :  { %9 = vst [vmem:[%s102_s2] sm:$0xff] %v7_v3  ;;  %v36_v11 = vmul.f32 %v47_v10, %v46_v9 }
   0x6   :  { %42 = vst [vmem:[%s102_s2 + $0x8] sm:$0xff] %v16_v7 }
   0x7   :  { %45 = vst [vmem:[%s102_s2 + $0x10] sm:$0xff] %v26_v8 }
   0x8   :  { %48 = vst [vmem:[%s102_s2 + $0x18] sm:$0xff] %v36_v11 }

// kernel: mul.4
= control target key start
LH: loop header
LB: loop body
LE: loop exit
PB: predicated region body
PF: predicated region fallthrough
CT: control target
= control target key end

     0   :  { %s34_s0 = inlined_call_operand.vmem [shape: f32[192], index: 0, kind: input, shape index: {}]   ;;  %s35_s1 = inlined_call_operand.vmem [shape: f32[192], index: 1, kind: input, shape index: {}]   ;;  %s36_s2 = inlined_call_operand.vmem [shape: f32[192], index: 2, kind: output, shape index: {}]  }
   0x1   :  { %v3_v0 = vld [vmem:[%s34_s0] sm:$0x3] }
   0x2   :  { %v4_v1 = vld [vmem:[%s35_s1] sm:$0x3] }
   0x3   :  { %v7_v2 = vmul.f32 %v4_v1, %v3_v0 }
   0x5   :  { %9 = vst [vmem:[%s36_s2] sm:$0x3] %v7_v2 }

// kernel: conv_attention_forward.1
= control target key start
LH: loop header
LB: loop body
LE: loop exit
PB: predicated region body
PF: predicated region fallthrough
CT: control target
= control target key end

     0   :  { %s6961_s24 = smov 0   ;;  %s10677_s0 = inlined_call_operand.vmem [shape: bf16[32,3136], index: 0, kind: input, shape index: {}]   ;;  %s10678_s1 = inlined_call_operand.vmem [shape: bf16[3136,192], index: 1, kind: input, shape index: {}]   ;;  %s10679_s2 = inlined_call_operand.vmem [shape: f32[1,192], index: 2, kind: input, shape index: {}]   ;;  %s10680_s3 = inlined_call_operand.vmem [shape: bf16[64,64], index: 3, kind: input, shape index: {}]   ;;  %s10681_s4 = inlined_call_operand.vmem [shape: f32[1,64], index: 4, kind: input, shape index: {}]   ;;  %s10682_s5 = inlined_call_operand.vmem [shape: f32[64,64], index: 5, kind: input, shape index: {}]   ;;  %s10683_s6 = inlined_call_operand.vmem [shape: f32[1,64], index: 6, kind: input, shape index: {}]   ;;  %s10684_s7 = inlined_call_operand.vmem [shape: f32[2,4,4,4,256], index: 7, kind: output, shape index: {}]  }
   0x1 LB: > { %s6967_s25 = sadd.s32 4294967295, %s6915_s24   ;;  %p4732_p0 = scmp.ge.s32.totalorder %s6915_s24, 1  ;;  %s6915_s24 = sphi %s6961_s24, %s17_s24  }
   0x2   : > { %p239_p1 = scmp.lt.s32.totalorder %s6915_s24, 3 }
   0x4   : > { %p240_p2 = pnand %p4732_p0, %p239_p1 }
   0x6   : > { %243 = sbr.rel (%p240_p2) target bundleno = 1465 (0x5b9), region = 48 }
   0xb   : > { %v4895_v0 = vld [vmem:[%s10678_s1 + $0x70] sm:$0xf]  ;;  %v6484_v1 = vld [vmem:[%s10678_s1 + $0x74] sm:$0xf0]  ;;  %v4887_v11 = vld [vmem:[%s10678_s1 + $0x60] sm:$0xf] }
   0xc   : > { %v4959_v2 = vld [vmem:[%s10678_s1 + $0xf0] sm:$0xf]  ;;  %v4896_v3 = vor.u32 %v6484_v1, %v4895_v0  ;;  %v6500_v4 = vld [vmem:[%s10678_s1 + $0xf4] sm:$0xf0]  ;;  %v6482_v13 = vld [vmem:[%s10678_s1 + $0x64] sm:$0xf0] }
   0xd   : > { %v5023_v5 = vld [vmem:[%s10678_s1 + $0x170] sm:$0xf]  ;;  %v6516_v6 = vld [vmem:[%s10678_s1 + $0x174] sm:$0xf0]  ;;  %v4960_v7 = vor.u32 %v6500_v4, %v4959_v2  ;;  %v4951_v14 = vld [vmem:[%s10678_s1 + $0xe0] sm:$0xf]  ;;  %v4888_v16 = vor.u32 %v6482_v13, %v4887_v11 }
   0xe   : > { %v5024_v8 = vor.u32 %v6516_v6, %v5023_v5  ;;  %v5087_v9 = vld [vmem:[%s10678_s1 + $0x1f0] sm:$0xf]  ;;  %v6532_v10 = vld [vmem:[%s10678_s1 + $0x1f4] sm:$0xf0]  ;;  %2798 = vmatpush.bf16.msra.mxu0 %v4896_v3  ;;  %v6498_v15 = vld [vmem:[%s10678_s1 + $0xe4] sm:$0xf0] }
   0xf   : > { %v5088_v12 = vor.u32 %v6532_v10, %v5087_v9  ;;  %2812 = vmatpush.bf16.msra.mxu1 %v4960_v7  ;;  %v4952_v17 = vor.u32 %v6498_v15, %v4951_v14  ;;  %v5015_v18 = vld [vmem:[%s10678_s1 + $0x160] sm:$0xf]  ;;  %v6514_v19 = vld [vmem:[%s10678_s1 + $0x164] sm:$0xf0]  ;;  %v4879_v23 = vld [vmem:[%s10678_s1 + $0x50] sm:$0xf] }
  0x10   : > { %2826 = vmatpush.bf16.msra.mxu2 %v5024_v8  ;;  %v5079_v20 = vld [vmem:[%s10678_s1 + $0x1e0] sm:$0xf]  ;;  %v5016_v21 = vor.u32 %v6514_v19, %v5015_v18  ;;  %v6530_v22 = vld [vmem:[%s10678_s1 + $0x1e4] sm:$0xf0]  ;;  %v6480_v24 = vld [vmem:[%s10678_s1 + $0x54] sm:$0xf0] }
  0x11   : > { %2840 = vmatpush.bf16.msra.mxu3 %v5088_v12  ;;  %v5080_v25 = vor.u32 %v6530_v22, %v5079_v20  ;;  %v4943_v26 = vld [vmem:[%s10678_s1 + $0xd0] sm:$0xf]  ;;  %v6496_v27 = vld [vmem:[%s10678_s1 + $0xd4] sm:$0xf0]  ;;  %v4880_v29 = vor.u32 %v6480_v24, %v4879_v23  ;;  %v4871_v35 = vld [vmem:[%s10678_s1 + $0x40] sm:$0xf] }
  0x12   : > { %v5007_v28 = vld [vmem:[%s10678_s1 + $0x150] sm:$0xf]  ;;  %2799 = vmatpush.bf16.msra.mxu0 %v4888_v16  ;;  %v6512_v30 = vld [vmem:[%s10678_s1 + $0x154] sm:$0xf0]  ;;  %v4944_v33 = vor.u32 %v6496_v27, %v4943_v26  ;;  %v6478_v36 = vld [vmem:[%s10678_s1 + $0x44] sm:$0xf0] }
  0x13   : > { %v5071_v31 = vld [vmem:[%s10678_s1 + $0x1d0] sm:$0xf]  ;;  %v6528_v32 = vld [vmem:[%s10678_s1 + $0x1d4] sm:$0xf0]  ;;  %2813 = vmatpush.bf16.msra.mxu1 %v4952_v17  ;;  %v5008_v34 = vor.u32 %v6512_v30, %v5007_v28  ;;  %v4935_v37 = vld [vmem:[%s10678_s1 + $0xc0] sm:$0xf]  ;;  %v4872_v44 = vor.u32 %v6478_v36, %v4871_v35 }
  0x14   : > { %2827 = vmatpush.bf16.msra.mxu2 %v5016_v21  ;;  %v5072_v38 = vor.u32 %v6528_v32, %v5071_v31  ;;  %v6494_v39 = vld [vmem:[%s10678_s1 + $0xc4] sm:$0xf0]  ;;  %v4999_v40 = vld [vmem:[%s10678_s1 + $0x140] sm:$0xf]  ;;  %v4863_v47 = vld [vmem:[%s10678_s1 + $0x30] sm:$0xf] }
  0x15   : > { %2841 = vmatpush.bf16.msra.mxu3 %v5080_v25  ;;  %v6510_v41 = vld [vmem:[%s10678_s1 + $0x144] sm:$0xf0]  ;;  %v5063_v42 = vld [vmem:[%s10678_s1 + $0x1c0] sm:$0xf]  ;;  %v4936_v45 = vor.u32 %v6494_v39, %v4935_v37  ;;  %v6476_v48 = vld [vmem:[%s10678_s1 + $0x34] sm:$0xf0] }
  0x16   : > { %v6526_v43 = vld [vmem:[%s10678_s1 + $0x1c4] sm:$0xf0]  ;;  %2800 = vmatpush.bf16.msra.mxu0 %v4880_v29  ;;  %v5000_v46 = vor.u32 %v6510_v41, %v4999_v40  ;;  %v4927_v49 = vld [vmem:[%s10678_s1 + $0xb0] sm:$0xf]  ;;  %v6492_v51 = vld [vmem:[%s10678_s1 + $0xb4] sm:$0xf0]  ;;  %v4864_v56 = vor.u32 %v6476_v48, %v4863_v47 }
  0x17   : > { %2814 = vmatpush.bf16.msra.mxu1 %v4944_v33  ;;  %v5064_v50 = vor.u32 %v6526_v43, %v5063_v42  ;;  %v4991_v52 = vld [vmem:[%s10678_s1 + $0x130] sm:$0xf]  ;;  %v6508_v53 = vld [vmem:[%s10678_s1 + $0x134] sm:$0xf0]  ;;  %v4928_v57 = vor.u32 %v6492_v51, %v4927_v49  ;;  %v4855_v59 = vld [vmem:[%s10678_s1 + $0x20] sm:$0xf] }
  0x18   : > { %2828 = vmatpush.bf16.msra.mxu2 %v5008_v34  ;;  %v5055_v54 = vld [vmem:[%s10678_s1 + $0x1b0] sm:$0xf]  ;;  %v6524_v55 = vld [vmem:[%s10678_s1 + $0x1b4] sm:$0xf0]  ;;  %v4992_v58 = vor.u32 %v6508_v53, %v4991_v52  ;;  %v6474_v60 = vld [vmem:[%s10678_s1 + $0x24] sm:$0xf0] }
  0x19   : > { %2842 = vmatpush.bf16.msra.mxu3 %v5072_v38  ;;  %v4919_v61 = vld [vmem:[%s10678_s1 + $0xa0] sm:$0xf]  ;;  %v5056_v62 = vor.u32 %v6524_v55, %v5055_v54  ;;  %v6490_v63 = vld [vmem:[%s10678_s1 + $0xa4] sm:$0xf0]  ;;  %v4856_v4 = vor.u32 %v6474_v60, %v4855_v59  ;;  %v4847_v7 = vld [vmem:[%s10678_s1 + $0x10] sm:$0xf] }
  0x1a   : > { %2801 = vmatpush.bf16.msra.mxu0 %v4872_v44  ;;  %v4983_v0 = vld [vmem:[%s10678_s1 + $0x120] sm:$0xf]  ;;  %v6506_v1 = vld [vmem:[%s10678_s1 + $0x124] sm:$0xf0]  ;;  %v4920_v5 = vor.u32 %v6490_v63, %v4919_v61  ;;  %v6472_v8 = vld [vmem:[%s10678_s1 + $0x14] sm:$0xf0] }
  0x1b   : > { %2815 = vmatpush.bf16.msra.mxu1 %v4936_v45  ;;  %v5047_v2 = vld [vmem:[%s10678_s1 + $0x1a0] sm:$0xf]  ;;  %v6522_v3 = vld [vmem:[%s10678_s1 + $0x1a4] sm:$0xf0]  ;;  %v4984_v6 = vor.u32 %v6506_v1, %v4983_v0  ;;  %v4911_v9 = vld [vmem:[%s10678_s1 + $0x90] sm:$0xf]  ;;  %v4848_v16 = vor.u32 %v6472_v8, %v4847_v7 }
  0x1c   : > { %2829 = vmatpush.bf16.msra.mxu2 %v5000_v46  ;;  %v5048_v10 = vor.u32 %v6522_v3, %v5047_v2  ;;  %v6488_v11 = vld [vmem:[%s10678_s1 + $0x94] sm:$0xf0]  ;;  %v4975_v12 = vld [vmem:[%s10678_s1 + $0x110] sm:$0xf]  ;;  %v4839_v17 = vld [vmem:[%s10678_s1] sm:$0xf] }
  0x1d   : > { %2843 = vmatpush.bf16.msra.mxu3 %v5064_v50  ;;  %v6504_v13 = vld [vmem:[%s10678_s1 + $0x114] sm:$0xf0]  ;;  %v5039_v14 = vld [vmem:[%s10678_s1 + $0x190] sm:$0xf]  ;;  %v6470_v18 = vld [vmem:[%s10678_s1 + $0x4] sm:$0xf0]  ;;  %v4912_v19 = vor.u32 %v6488_v11, %v4911_v9 }
  0x1e   : > { %2802 = vmatpush.bf16.msra.mxu0 %v4864_v56  ;;  %v6520_v15 = vld [vmem:[%s10678_s1 + $0x194] sm:$0xf0]  ;;  %v4976_v20 = vor.u32 %v6504_v13, %v4975_v12  ;;  %v4903_v21 = vld [vmem:[%s10678_s1 + $0x80] sm:$0xf]  ;;  %v6486_v22 = vld [vmem:[%s10678_s1 + $0x84] sm:$0xf0]  ;;  %v4840_v31 = vor.u32 %v6470_v18, %v4839_v17 }
  0x1f   : > { %2816 = vmatpush.bf16.msra.mxu1 %v4928_v57  ;;  %v4967_v23 = vld [vmem:[%s10678_s1 + $0x100] sm:$0xf]  ;;  %v5040_v24 = vor.u32 %v6520_v15, %v5039_v14  ;;  %v6502_v25 = vld [vmem:[%s10678_s1 + $0x104] sm:$0xf0]  ;;  %v5151_v28 = vld [vmem:[%s10678_s1 + $0x270] sm:$0xf]  ;;  %v4904_v35 = vor.u32 %v6486_v22, %v4903_v21 }
  0x20   : > { %2830 = vmatpush.bf16.msra.mxu2 %v4992_v58  ;;  %v5031_v26 = vld [vmem:[%s10678_s1 + $0x180] sm:$0xf]  ;;  %v6518_v27 = vld [vmem:[%s10678_s1 + $0x184] sm:$0xf0]  ;;  %v6548_v29 = vld [vmem:[%s10678_s1 + $0x274] sm:$0xf0]  ;;  %v4968_v36 = vor.u32 %v6502_v25, %v4967_v23 }
  0x21   : > { %2844 = vmatpush.bf16.msra.mxu3 %v5056_v62  ;;  %v5215_v30 = vld [vmem:[%s10678_s1 + $0x2f0] sm:$0xf]  ;;  %v6564_v32 = vld [vmem:[%s10678_s1 + $0x2f4] sm:$0xf0]  ;;  %v5032_v39 = vor.u32 %v6518_v27, %v5031_v26  ;;  %v5152_v40 = vor.u32 %v6548_v29, %v5151_v28  ;;  %v5143_v43 = vld [vmem:[%s10678_s1 + $0x260] sm:$0xf] }
  0x22   : > { %2803 = vmatpush.bf16.msra.mxu0 %v4856_v4  ;;  %v5279_v33 = vld [vmem:[%s10678_s1 + $0x370] sm:$0xf]  ;;  %v6580_v34 = vld [vmem:[%s10678_s1 + $0x374] sm:$0xf0]  ;;  %v5216_v41 = vor.u32 %v6564_v32, %v5215_v30  ;;  %v6546_v44 = vld [vmem:[%s10678_s1 + $0x264] sm:$0xf0] }
  0x23   : > { %2817 = vmatpush.bf16.msra.mxu1 %v4920_v5  ;;  %v5343_v37 = vld [vmem:[%s10678_s1 + $0x3f0] sm:$0xf]  ;;  %v6596_v38 = vld [vmem:[%s10678_s1 + $0x3f4] sm:$0xf0]  ;;  %v5280_v42 = vor.u32 %v6580_v34, %v5279_v33  ;;  %v5207_v45 = vld [vmem:[%s10678_s1 + $0x2e0] sm:$0xf]  ;;  %v5144_v52 = vor.u32 %v6546_v44, %v5143_v43 }
  0x24   : > { %2831 = vmatpush.bf16.msra.mxu2 %v4984_v6  ;;  %v5344_v46 = vor.u32 %v6596_v38, %v5343_v37  ;;  %v6562_v47 = vld [vmem:[%s10678_s1 + $0x2e4] sm:$0xf0]  ;;  %v5271_v48 = vld [vmem:[%s10678_s1 + $0x360] sm:$0xf]  ;;  %s4733_s16 = sshll.u32 %s6967_s25, 1  ;;  %vm2794_vm0 = vcmask 523264  }
  0x25   : > { %2845 = vmatpush.bf16.msra.mxu3 %v5048_v10  ;;  %v6578_v49 = vld [vmem:[%s10678_s1 + $0x364] sm:$0xf0]  ;;  %v5335_v50 = vld [vmem:[%s10678_s1 + $0x3e0] sm:$0xf]  ;;  %v5135_v53 = vld [vmem:[%s10678_s1 + $0x250] sm:$0xf]  ;;  %v5208_v54 = vor.u32 %v6562_v47, %v5207_v45 }
  0x26   : > { %2804 = vmatpush.bf16.msra.mxu0 %v4848_v16  ;;  %v6594_v51 = vld [vmem:[%s10678_s1 + $0x3e4] sm:$0xf0]  ;;  %p273_p3 = scmp.lt.s32.totalorder %s4733_s16, 3  ;;  %v5272_v55 = vor.u32 %v6578_v49, %v5271_v48  ;;  %v6544_v56 = vld [vmem:[%s10678_s1 + $0x254] sm:$0xf0]  ;;  %s6917_s22 = smov 96  }
  0x27   : > { %2818 = vmatpush.bf16.msra.mxu1 %v4912_v19  ;;  %v5199_v57 = vld [vmem:[%s10678_s1 + $0x2d0] sm:$0xf]  ;;  %v6560_v58 = vld [vmem:[%s10678_s1 + $0x2d4] sm:$0xf0]  ;;  %v5336_v59 = vor.u32 %v6594_v51, %v5335_v50  ;;  %v5136_v0 = vor.u32 %v6544_v56, %v5135_v53  ;;  %v5127_v1 = vld [vmem:[%s10678_s1 + $0x240] sm:$0xf] }
  0x28   : > { %2832 = vmatpush.bf16.msra.mxu2 %v4976_v20  ;;  %v5263_v60 = vld [vmem:[%s10678_s1 + $0x350] sm:$0xf]  ;;  %v6576_v61 = vld [vmem:[%s10678_s1 + $0x354] sm:$0xf0]  ;;  %s10878_s16 = smov (!%p273_p3, %s4733_s16), 3  ;;  %v5200_v3 = vor.u32 %v6560_v58, %v5199_v57  ;;  %s6918_s14 = smov 32  }
  0x29   : > { %2846 = vmatpush.bf16.msra.mxu3 %v5040_v24  ;;  %v5327_v62 = vld [vmem:[%s10678_s1 + $0x3d0] sm:$0xf]  ;;  %v6592_v63 = vld [vmem:[%s10678_s1 + $0x3d4] sm:$0xf0]  ;;  %v6542_v2 = vld [vmem:[%s10678_s1 + $0x244] sm:$0xf0]  ;;  %v5264_v4 = vor.u32 %v6576_v61, %v5263_v60 }
  0x2a   : > { %2805 = vmatpush.bf16.msra.mxu0 %v4840_v31  ;;  %s6865_s17 = smul.u32 100, %s10878_s16  ;;  %v5191_v5 = vld [vmem:[%s10678_s1 + $0x2c0] sm:$0xf]  ;;  %v6558_v6 = vld [vmem:[%s10678_s1 + $0x2c4] sm:$0xf0]  ;;  %v5328_v8 = vor.u32 %v6592_v63, %v5327_v62  ;;  %v5128_v17 = vor.u32 %v6542_v2, %v5127_v1  ;;  %vm3502_vm1 = vcmask 261120  }
  0x2b   : > { %2819 = vmatpush.bf16.msra.mxu1 %v4904_v35  ;;  %v5255_v7 = vld [vmem:[%s10678_s1 + $0x340] sm:$0xf]  ;;  %v6574_v9 = vld [vmem:[%s10678_s1 + $0x344] sm:$0xf0]  ;;  %v5119_v15 = vld [vmem:[%s10678_s1 + $0x230] sm:$0xf]  ;;  %v5192_v18 = vor.u32 %v6558_v6, %v5191_v5 }
  0x2c   : > { %2833 = vmatpush.bf16.msra.mxu2 %v4968_v36  ;;  %v5319_v10 = vld [vmem:[%s10678_s1 + $0x3c0] sm:$0xf]  ;;  %v6590_v11 = vld [vmem:[%s10678_s1 + $0x3c4] sm:$0xf0]  ;;  %s7263_s10 = scalar_lea.vmem %s10677_s0, %s6865_s17  ;;  %v6540_v16 = vld [vmem:[%s10678_s1 + $0x234] sm:$0xf0]  ;;  %v5256_v23 = vor.u32 %v6574_v9, %v5255_v7 }
  0x2d   : > { %2847 = vmatpush.bf16.msra.mxu3 %v5032_v39  ;;  %v4739_v12 = vld [vmem:[%s7263_s10] sm:$0xf]  ;;  %v6456_v13 = vld [vmem:[%s7263_s10 + $0x60] sm:$0xf0]  ;;  %v4747_v14 = vld [vmem:[%s7263_s10 + $0x8] sm:$0xf]  ;;  %v5320_v29 = vor.u32 %v6590_v11, %v5319_v10  ;;  %v5120_v36 = vor.u32 %v6540_v16, %v5119_v15 }
  0x2e   : > { %2854 = vmatpush.bf16.msrb.mxu0 %v5152_v40  ;;  %v7274_v19 = vor.u32 %v6456_v13, %v4739_v12  ;;  %v6457_v20 = vld [vmem:[%s7263_s10 + $0x68] sm:$0xf0]  ;;  %v6444_v21 = vld [vmem:[%s7263_s10 + $0x4] sm:$0xf]  ;;  %v4741_v22 = vld [vmem:[%s7263_s10 + $0x64] sm:$0xf0] }
  0x2f   : > { %2868 = vmatpush.bf16.msrb.mxu1 %v5216_v41  ;;  %v7279_v24 = vor.u32 %v6457_v20, %v4747_v14  ;;  %v5183_v25 = vld [vmem:[%s10678_s1 + $0x2b0] sm:$0xf]  ;;  %v7284_v26 = vor.u32 %v6444_v21, %v4741_v22  ;;  %v6445_v27 = vld [vmem:[%s7263_s10 + $0xc] sm:$0xf]  ;;  %v6556_v30 = vld [vmem:[%s10678_s1 + $0x2b4] sm:$0xf0] }
  0x30   : > { %2882 = vmatpush.bf16.msrb.mxu2 %v5280_v42  ;;  %v4749_v28 = vld [vmem:[%s7263_s10 + $0x6c] sm:$0xf0]  ;;  %2806 = vmatmul.bf16.vlgmr.msra.gmra.mxu0 %v7274_v19  ;;  %v6572_v32 = vld [vmem:[%s10678_s1 + $0x334] sm:$0xf0]  ;;  %v5184_v37 = vor.u32 %v6556_v30, %v5183_v25  ;;  %v5111_v39 = vld [vmem:[%s10678_s1 + $0x220] sm:$0xf] }
  0x31   : > { %2896 = vmatpush.bf16.msrb.mxu3 %v5344_v46  ;;  %v5247_v31 = vld [vmem:[%s10678_s1 + $0x330] sm:$0xf]  ;;  %v7298_v33 = vor.u32 %v6445_v27, %v4749_v28  ;;  %2834 = vmatmul.bf16.vlgmr.msra.gmra.mxu2 %v7279_v24  ;;  %v6588_v35 = vld [vmem:[%s10678_s1 + $0x3b4] sm:$0xf0]  ;;  %v6538_v40 = vld [vmem:[%s10678_s1 + $0x224] sm:$0xf0] }
  0x32   : > { %2855 = vmatpush.bf16.msrb.mxu0 %v5144_v52  ;;  %v5311_v34 = vld [vmem:[%s10678_s1 + $0x3b0] sm:$0xf]  ;;  %2820 = vmatmul.bf16.vlgmr.msra.gmra.mxu1 %v7284_v26  ;;  %v5248_v38 = vor.u32 %v6572_v32, %v5247_v31  ;;  %v5175_v41 = vld [vmem:[%s10678_s1 + $0x2a0] sm:$0xf]  ;;  %v6554_v43 = vld [vmem:[%s10678_s1 + $0x2a4] sm:$0xf0]  ;;  %v5112_v48 = vor.u32 %v6538_v40, %v5111_v39 }
  0x33   : > { %2869 = vmatpush.bf16.msrb.mxu1 %v5208_v54  ;;  %2848 = vmatmul.bf16.vlgmr.msra.gmra.mxu3 %v7298_v33  ;;  %v5312_v42 = vor.u32 %v6588_v35, %v5311_v34  ;;  %v5239_v44 = vld [vmem:[%s10678_s1 + $0x320] sm:$0xf]  ;;  %v6570_v45 = vld [vmem:[%s10678_s1 + $0x324] sm:$0xf0]  ;;  %v5103_v49 = vld [vmem:[%s10678_s1 + $0x210] sm:$0xf]  ;;  %v5176_v50 = vor.u32 %v6554_v43, %v5175_v41 }
  0x34   : > { %2883 = vmatpush.bf16.msrb.mxu2 %v5272_v55  ;;  %v5303_v46 = vld [vmem:[%s10678_s1 + $0x3a0] sm:$0xf]  ;;  %v6586_v47 = vld [vmem:[%s10678_s1 + $0x3a4] sm:$0xf0]  ;;  %v5240_v51 = vor.u32 %v6570_v45, %v5239_v44  ;;  %v6536_v52 = vld [vmem:[%s10678_s1 + $0x214] sm:$0xf0] }
  0x35   : > { %2897 = vmatpush.bf16.msrb.mxu3 %v5336_v59  ;;  %v5167_v53 = vld [vmem:[%s10678_s1 + $0x290] sm:$0xf]  ;;  %v6552_v54 = vld [vmem:[%s10678_s1 + $0x294] sm:$0xf0]  ;;  %v5304_v55 = vor.u32 %v6586_v47, %v5303_v46  ;;  %v5095_v60 = vld [vmem:[%s10678_s1 + $0x200] sm:$0xf]  ;;  %v5104_v62 = vor.u32 %v6536_v52, %v5103_v49 }
  0x36   : > { %2856 = vmatpush.bf16.msrb.mxu0 %v5136_v0  ;;  %v5231_v56 = vld [vmem:[%s10678_s1 + $0x310] sm:$0xf]  ;;  %v6568_v57 = vld [vmem:[%s10678_s1 + $0x314] sm:$0xf0]  ;;  %v6534_v61 = vld [vmem:[%s10678_s1 + $0x204] sm:$0xf0] }
  0x37   : > { %2870 = vmatpush.bf16.msrb.mxu1 %v5200_v3  ;;  %v5295_v58 = vld [vmem:[%s10678_s1 + $0x390] sm:$0xf]  ;;  %v6584_v59 = vld [vmem:[%s10678_s1 + $0x394] sm:$0xf0]  ;;  %v5159_v63 = vld [vmem:[%s10678_s1 + $0x280] sm:$0xf]  ;;  %v5168_v3 = vor.u32 %v6552_v54, %v5167_v53  ;;  %v5096_v15 = vor.u32 %v6534_v61, %v5095_v60 }
  0x38   : > { %2884 = vmatpush.bf16.msrb.mxu2 %v5264_v4  ;;  %v6550_v0 = vld [vmem:[%s10678_s1 + $0x284] sm:$0xf0]  ;;  %v5223_v1 = vld [vmem:[%s10678_s1 + $0x300] sm:$0xf]  ;;  %v5232_v4 = vor.u32 %v6568_v57, %v5231_v56  ;;  %v5407_v7 = vld [vmem:[%s10678_s1 + $0x470] sm:$0xf] }
  0x39   : > { %2898 = vmatpush.bf16.msrb.mxu3 %v5328_v8  ;;  %v6566_v2 = vld [vmem:[%s10678_s1 + $0x304] sm:$0xf0]  ;;  %v5287_v5 = vld [vmem:[%s10678_s1 + $0x380] sm:$0xf]  ;;  %v5296_v8 = vor.u32 %v6584_v59, %v5295_v58  ;;  %v6612_v9 = vld [vmem:[%s10678_s1 + $0x474] sm:$0xf0]  ;;  %v5160_v20 = vor.u32 %v6550_v0, %v5159_v63 }
  0x3a   : > { %2857 = vmatpush.bf16.msrb.mxu0 %v5128_v17  ;;  %v6582_v6 = vld [vmem:[%s10678_s1 + $0x384] sm:$0xf0]  ;;  %v5471_v10 = vld [vmem:[%s10678_s1 + $0x4f0] sm:$0xf]  ;;  %v6628_v11 = vld [vmem:[%s10678_s1 + $0x4f4] sm:$0xf0]  ;;  %v5224_v21 = vor.u32 %v6566_v2, %v5223_v1  ;;  %v5408_v28 = vor.u32 %v6612_v9, %v5407_v7 }
  0x3b   : > { %2871 = vmatpush.bf16.msrb.mxu1 %v5192_v18  ;;  %v5535_v12 = vld [vmem:[%s10678_s1 + $0x570] sm:$0xf]  ;;  %v6644_v13 = vld [vmem:[%s10678_s1 + $0x574] sm:$0xf0]  ;;  %v6458_v18 = vld [vmem:[%s7263_s10 + $0x70] sm:$0xf0]  ;;  %v5288_v27 = vor.u32 %v6582_v6, %v5287_v5  ;;  %v5472_v32 = vor.u32 %v6628_v11, %v5471_v10 }
  0x3c   : > { %2885 = vmatpush.bf16.msrb.mxu2 %v5256_v23  ;;  %v5599_v14 = vld [vmem:[%s10678_s1 + $0x5f0] sm:$0xf]  ;;  %v6660_v16 = vld [vmem:[%s10678_s1 + $0x5f4] sm:$0xf0]  ;;  %v6459_v23 = vld [vmem:[%s7263_s10 + $0x78] sm:$0xf0]  ;;  %v5536_v34 = vor.u32 %v6644_v13, %v5535_v12 }
  0x3d   : > { %2899 = vmatpush.bf16.msrb.mxu3 %v5320_v29  ;;  %v4755_v17 = vld [vmem:[%s7263_s10 + $0x10] sm:$0xf]  ;;  %v4763_v22 = vld [vmem:[%s7263_s10 + $0x18] sm:$0xf]  ;;  %v6446_v25 = vld [vmem:[%s7263_s10 + $0x14] sm:$0xf] }
  0x3e   : > { %2858 = vmatpush.bf16.msrb.mxu0 %v5120_v36  ;;  %v4757_v29 = vld [vmem:[%s7263_s10 + $0x74] sm:$0xf0]  ;;  %v6447_v30 = vld [vmem:[%s7263_s10 + $0x1c] sm:$0xf]  ;;  %v4765_v31 = vld [vmem:[%s7263_s10 + $0x7c] sm:$0xf0]  ;;  %v7422_v39 = vor.u32 %v6458_v18, %v4755_v17  ;;  %v7433_v43 = vor.u32 %v6459_v23, %v4763_v22 }
  0x3f   : > { %2872 = vmatpush.bf16.msrb.mxu1 %v5184_v37  ;;  %v5399_v35 = vld [vmem:[%s10678_s1 + $0x460] sm:$0xf]  ;;  %v6610_v36 = vld [vmem:[%s10678_s1 + $0x464] sm:$0xf0]  ;;  %v7435_v44 = vor.u32 %v6446_v25, %v4757_v29  ;;  %v7443_v47 = vor.u32 %v6447_v30, %v4765_v31  ;;  %v6608_v52 = vld [vmem:[%s10678_s1 + $0x454] sm:$0xf0] }
  0x40   : > { %2886 = vmatpush.bf16.msrb.mxu2 %v5248_v38  ;;  %v5463_v37 = vld [vmem:[%s10678_s1 + $0x4e0] sm:$0xf]  ;;  %v5600_v38 = vor.u32 %v6660_v16, %v5599_v14  ;;  %v6626_v40 = vld [vmem:[%s10678_s1 + $0x4e4] sm:$0xf0]  ;;  %v5455_v53 = vld [vmem:[%s10678_s1 + $0x4d0] sm:$0xf] }
  0x41   : > { %2900 = vmatpush.bf16.msrb.mxu3 %v5312_v42  ;;  %v5527_v41 = vld [vmem:[%s10678_s1 + $0x560] sm:$0xf]  ;;  %v6642_v42 = vld [vmem:[%s10678_s1 + $0x564] sm:$0xf0]  ;;  %v5464_v49 = vor.u32 %v6626_v40, %v5463_v37  ;;  %v5519_v56 = vld [vmem:[%s10678_s1 + $0x550] sm:$0xf] }
  0x42   : > { %2859 = vmatpush.bf16.msrb.mxu0 %v5112_v48  ;;  %v5591_v45 = vld [vmem:[%s10678_s1 + $0x5e0] sm:$0xf]  ;;  %v6658_v46 = vld [vmem:[%s10678_s1 + $0x5e4] sm:$0xf0]  ;;  %v5400_v48 = vor.u32 %v6610_v36, %v5399_v35  ;;  %v6640_v57 = vld [vmem:[%s10678_s1 + $0x554] sm:$0xf0] }
  0x43   : > { %2873 = vmatpush.bf16.msrb.mxu1 %v5176_v50  ;;  %v5528_v50 = vor.u32 %v6642_v42, %v5527_v41  ;;  %v5592_v54 = vor.u32 %v6658_v46, %v5591_v45  ;;  %v5583_v58 = vld [vmem:[%s10678_s1 + $0x5d0] sm:$0xf]  ;;  %v6656_v59 = vld [vmem:[%s10678_s1 + $0x5d4] sm:$0xf0]  ;;  %v5383_v63 = vld [vmem:[%s10678_s1 + $0x440] sm:$0xf] }
  0x44   : > { %2887 = vmatpush.bf16.msrb.mxu2 %v5240_v51  ;;  %v5391_v51 = vld [vmem:[%s10678_s1 + $0x450] sm:$0xf]  ;;  %v6606_v0 = vld [vmem:[%s10678_s1 + $0x444] sm:$0xf0]  ;;  %v5447_v1 = vld [vmem:[%s10678_s1 + $0x4c0] sm:$0xf]  ;;  %v5584_v2 = vor.u32 %v6656_v59, %v5583_v58 }
  0x45   : > { %2901 = vmatpush.bf16.msrb.mxu3 %v5304_v55  ;;  %v6624_v55 = vld [vmem:[%s10678_s1 + $0x4d4] sm:$0xf0]  ;;  %v5392_v60 = vor.u32 %v6608_v52, %v5391_v51  ;;  %v6638_v5 = vld [vmem:[%s10678_s1 + $0x544] sm:$0xf0]  ;;  %v5575_v6 = vld [vmem:[%s10678_s1 + $0x5c0] sm:$0xf] }
  0x46   : > { %2860 = vmatpush.bf16.msrb.mxu0 %v5104_v62  ;;  %v5456_v61 = vor.u32 %v6624_v55, %v5455_v53  ;;  %v5520_v62 = vor.u32 %v6640_v57, %v5519_v56  ;;  %v6654_v7 = vld [vmem:[%s10678_s1 + $0x5c4] sm:$0xf0]  ;;  %v5375_v11 = vld [vmem:[%s10678_s1 + $0x430] sm:$0xf]  ;;  %v6604_v12 = vld [vmem:[%s10678_s1 + $0x434] sm:$0xf0] }
  0x47   : > { %2874 = vmatpush.bf16.msrb.mxu1 %v5168_v3  ;;  %v6622_v3 = vld [vmem:[%s10678_s1 + $0x4c4] sm:$0xf0]  ;;  %v5439_v13 = vld [vmem:[%s10678_s1 + $0x4b0] sm:$0xf]  ;;  %v5576_v14 = vor.u32 %v6654_v7, %v5575_v6  ;;  %v6636_v17 = vld [vmem:[%s10678_s1 + $0x534] sm:$0xf0] }
  0x48   : > { %2888 = vmatpush.bf16.msrb.mxu2 %v5232_v4  ;;  %v5511_v4 = vld [vmem:[%s10678_s1 + $0x540] sm:$0xf]  ;;  %v5448_v9 = vor.u32 %v6622_v3, %v5447_v1  ;;  %v5503_v16 = vld [vmem:[%s10678_s1 + $0x530] sm:$0xf]  ;;  %v6618_v30 = vld [vmem:[%s10678_s1 + $0x4a4] sm:$0xf0] }
  0x49   : > { %2902 = vmatpush.bf16.msrb.mxu3 %v5296_v8  ;;  %v5384_v8 = vor.u32 %v6606_v0, %v5383_v63  ;;  %v5512_v10 = vor.u32 %v6638_v5, %v5511_v4  ;;  %v5567_v18 = vld [vmem:[%s10678_s1 + $0x5b0] sm:$0xf]  ;;  %v5504_v23 = vor.u32 %v6636_v17, %v5503_v16  ;;  %v5367_v25 = vld [vmem:[%s10678_s1 + $0x420] sm:$0xf]  ;;  %v6650_v35 = vld [vmem:[%s10678_s1 + $0x5a4] sm:$0xf0] }
  0x4a   : > { %2861 = vmatpush.bf16.msrb.mxu0 %v5096_v15  ;;  %v6620_v15 = vld [vmem:[%s10678_s1 + $0x4b4] sm:$0xf0]  ;;  %v5495_v31 = vld [vmem:[%s10678_s1 + $0x520] sm:$0xf]  ;;  %v5359_v37 = vld [vmem:[%s10678_s1 + $0x410] sm:$0xf] }
  0x4b   : > { %2875 = vmatpush.bf16.msrb.mxu1 %v5160_v20  ;;  %v6652_v20 = vld [vmem:[%s10678_s1 + $0x5b4] sm:$0xf0]  ;;  %v5440_v22 = vor.u32 %v6620_v15, %v5439_v13  ;;  %v5423_v42 = vld [vmem:[%s10678_s1 + $0x490] sm:$0xf]  ;;  %v5351_v52 = vld [vmem:[%s10678_s1 + $0x400] sm:$0xf] }
  0x4c   : > { %2889 = vmatpush.bf16.msrb.mxu2 %v5224_v21  ;;  %v5376_v21 = vor.u32 %v6604_v12, %v5375_v11  ;;  %v5568_v29 = vor.u32 %v6652_v20, %v5567_v18  ;;  %v6600_v41 = vld [vmem:[%s10678_s1 + $0x414] sm:$0xf0]  ;;  %v6598_v53 = vld [vmem:[%s10678_s1 + $0x404] sm:$0xf0]  ;;  %v5415_v55 = vld [vmem:[%s10678_s1 + $0x480] sm:$0xf] }
  0x4d   : > { %2903 = vmatpush.bf16.msrb.mxu3 %v5288_v27  ;;  %2862 = vmatmul.bf16.vlgmr.msrb.gmra.mxu0 %v7422_v39  ;;  %v6602_v27 = vld [vmem:[%s10678_s1 + $0x424] sm:$0xf0]  ;;  %v6616_v45 = vld [vmem:[%s10678_s1 + $0x494] sm:$0xf0]  ;;  %v5479_v57 = vld [vmem:[%s10678_s1 + $0x500] sm:$0xf]  ;;  %v5352_v7 = vor.u32 %v6598_v53, %v5351_v52 }
  0x4e   : > { %2910 = vmatpush.bf16.msra.mxu0 %v5408_v28  ;;  %2876 = vmatmul.bf16.vlgmr.msrb.gmra.mxu1 %v7435_v44  ;;  %v5431_v28 = vld [vmem:[%s10678_s1 + $0x4a0] sm:$0xf]  ;;  %v5368_v36 = vor.u32 %v6602_v27, %v5367_v25  ;;  %v6648_v51 = vld [vmem:[%s10678_s1 + $0x594] sm:$0xf0]  ;;  %v6614_v56 = vld [vmem:[%s10678_s1 + $0x484] sm:$0xf0]  ;;  %v5424_v59 = vor.u32 %v6616_v45, %v5423_v42 }
  0x4f   : > { %2924 = vmatpush.bf16.msra.mxu1 %v5472_v32  ;;  %2890 = vmatmul.bf16.vlgmr.msrb.gmra.mxu2 %v7433_v43  ;;  %v6634_v32 = vld [vmem:[%s10678_s1 + $0x524] sm:$0xf0]  ;;  %v5663_v63 = vld [vmem:[%s10678_s1 + $0x670] sm:$0xf]  ;;  %v6676_v1 = vld [vmem:[%s10678_s1 + $0x674] sm:$0xf0]  ;;  %v5416_v11 = vor.u32 %v6614_v56, %v5415_v55 }
  0x50   : > { %2938 = vmatpush.bf16.msra.mxu2 %v5536_v34  ;;  %2904 = vmatmul.bf16.vlgmr.msrb.gmra.mxu3 %v7443_v47  ;;  %v5559_v34 = vld [vmem:[%s10678_s1 + $0x5a0] sm:$0xf]  ;;  %v5496_v40 = vor.u32 %v6634_v32, %v5495_v31  ;;  %v6630_v58 = vld [vmem:[%s10678_s1 + $0x504] sm:$0xf0]  ;;  %v6692_v3 = vld [vmem:[%s10678_s1 + $0x6f4] sm:$0xf0]  ;;  %v5664_v17 = vor.u32 %v6676_v1, %v5663_v63 }
  0x51   : > { %2952 = vmatpush.bf16.msra.mxu3 %v5600_v38  ;;  %v5432_v38 = vor.u32 %v6618_v30, %v5431_v28  ;;  %v5560_v46 = vor.u32 %v6650_v35, %v5559_v34  ;;  %v5791_v4 = vld [vmem:[%s10678_s1 + $0x770] sm:$0xf]  ;;  %v6708_v5 = vld [vmem:[%s10678_s1 + $0x774] sm:$0xf0]  ;;  %v5480_v12 = vor.u32 %v6630_v58, %v5479_v57  ;;  %v4779_v13 = vld [vmem:[%s7263_s10 + $0x28] sm:$0xf] }
  0x52   : > { %2911 = vmatpush.bf16.msra.mxu0 %v5400_v48  ;;  %v5487_v48 = vld [vmem:[%s10678_s1 + $0x510] sm:$0xf]  ;;  %v6448_v15 = vld [vmem:[%s7263_s10 + $0x24] sm:$0xf]  ;;  %v4773_v18 = vld [vmem:[%s7263_s10 + $0x84] sm:$0xf0] }
  0x53   : > { %2925 = vmatpush.bf16.msra.mxu1 %v5464_v49  ;;  %v6632_v49 = vld [vmem:[%s10678_s1 + $0x514] sm:$0xf0]  ;;  %v5855_v6 = vld [vmem:[%s10678_s1 + $0x7f0] sm:$0xf]  ;;  %v6449_v20 = vld [vmem:[%s7263_s10 + $0x2c] sm:$0xf] }
  0x54   : > { %2939 = vmatpush.bf16.msra.mxu2 %v5528_v50  ;;  %v5551_v50 = vld [vmem:[%s10678_s1 + $0x590] sm:$0xf]  ;;  %v5655_v25 = vld [vmem:[%s10678_s1 + $0x660] sm:$0xf]  ;;  %v6674_v27 = vld [vmem:[%s10678_s1 + $0x664] sm:$0xf0] }
  0x55   : > { %2953 = vmatpush.bf16.msra.mxu3 %v5592_v54  ;;  %v5360_v54 = vor.u32 %v6600_v41, %v5359_v37  ;;  %v5552_v0 = vor.u32 %v6648_v51, %v5551_v50  ;;  %v5719_v28 = vld [vmem:[%s10678_s1 + $0x6e0] sm:$0xf]  ;;  %v6690_v31 = vld [vmem:[%s10678_s1 + $0x6e4] sm:$0xf0]  ;;  %v5656_v41 = vor.u32 %v6674_v27, %v5655_v25  ;;  %v6688_v51 = vld [vmem:[%s10678_s1 + $0x6d4] sm:$0xf0] }
  0x56   : > { %2912 = vmatpush.bf16.msra.mxu0 %v5392_v60  ;;  %v5488_v60 = vor.u32 %v6632_v49, %v5487_v48  ;;  %v5783_v32 = vld [vmem:[%s10678_s1 + $0x760] sm:$0xf]  ;;  %v6706_v34 = vld [vmem:[%s10678_s1 + $0x764] sm:$0xf0]  ;;  %v5720_v42 = vor.u32 %v6690_v31, %v5719_v28  ;;  %v6672_v48 = vld [vmem:[%s10678_s1 + $0x654] sm:$0xf0] }
  0x57   : > { %2926 = vmatpush.bf16.msra.mxu1 %v5456_v61  ;;  %v5543_v61 = vld [vmem:[%s10678_s1 + $0x580] sm:$0xf]  ;;  %v5784_v45 = vor.u32 %v6706_v34, %v5783_v32  ;;  %v5711_v49 = vld [vmem:[%s10678_s1 + $0x6d0] sm:$0xf]  ;;  %v6704_v53 = vld [vmem:[%s10678_s1 + $0x754] sm:$0xf0] }
  0x58   : > { %2940 = vmatpush.bf16.msra.mxu2 %v5520_v62  ;;  %v6646_v62 = vld [vmem:[%s10678_s1 + $0x584] sm:$0xf0]  ;;  %v5847_v37 = vld [vmem:[%s10678_s1 + $0x7e0] sm:$0xf]  ;;  %v5775_v52 = vld [vmem:[%s10678_s1 + $0x750] sm:$0xf]  ;;  %v5712_v57 = vor.u32 %v6688_v51, %v5711_v49 }
  0x59   : > { %2954 = vmatpush.bf16.msra.mxu3 %v5584_v2  ;;  %v5727_v2 = vld [vmem:[%s10678_s1 + $0x6f0] sm:$0xf]  ;;  %v5544_v16 = vor.u32 %v6646_v62, %v5543_v61  ;;  %v6720_v55 = vld [vmem:[%s10678_s1 + $0x7d4] sm:$0xf0]  ;;  %v5776_v58 = vor.u32 %v6704_v53, %v5775_v52  ;;  %v5703_v61 = vld [vmem:[%s10678_s1 + $0x6c0] sm:$0xf] }
  0x5a   : > { %2913 = vmatpush.bf16.msra.mxu0 %v5384_v8  ;;  %v6724_v8 = vld [vmem:[%s10678_s1 + $0x7f4] sm:$0xf0]  ;;  %v6686_v63 = vld [vmem:[%s10678_s1 + $0x6c4] sm:$0xf0]  ;;  %v5751_v27 = vld [vmem:[%s10678_s1 + $0x720] sm:$0xf] }
  0x5b   : > { %2927 = vmatpush.bf16.msra.mxu1 %v5448_v9  ;;  %v4771_v9 = vld [vmem:[%s7263_s10 + $0x20] sm:$0xf]  ;;  %v6702_v1 = vld [vmem:[%s10678_s1 + $0x744] sm:$0xf0]  ;;  %v5615_v34 = vld [vmem:[%s10678_s1 + $0x610] sm:$0xf] }
  0x5c   : > { %2941 = vmatpush.bf16.msra.mxu2 %v5512_v10  ;;  %v6460_v10 = vld [vmem:[%s7263_s10 + $0x80] sm:$0xf0]  ;;  %v6682_v25 = vld [vmem:[%s10678_s1 + $0x6a4] sm:$0xf0]  ;;  %v6696_v49 = vld [vmem:[%s10678_s1 + $0x714] sm:$0xf0] }
  0x5d   : > { %2955 = vmatpush.bf16.msra.mxu3 %v5576_v14  ;;  %v6461_v14 = vld [vmem:[%s7263_s10 + $0x88] sm:$0xf0]  ;;  %v7634_v30 = vor.u32 %v6460_v10, %v4771_v9  ;;  %v5695_v9 = vld [vmem:[%s10678_s1 + $0x6b0] sm:$0xf]  ;;  %v6698_v28 = vld [vmem:[%s10678_s1 + $0x724] sm:$0xf0] }
  0x5e   : > { %2914 = vmatpush.bf16.msra.mxu0 %v5376_v21  ;;  %v4781_v21 = vld [vmem:[%s7263_s10 + $0x8c] sm:$0xf0]  ;;  %v7645_v35 = vor.u32 %v6461_v14, %v4779_v13  ;;  %v6700_v13 = vld [vmem:[%s10678_s1 + $0x734] sm:$0xf0]  ;;  %v6714_v31 = vld [vmem:[%s10678_s1 + $0x7a4] sm:$0xf0] }
  0x5f   : > { %2928 = vmatpush.bf16.msra.mxu1 %v5440_v22  ;;  %v5728_v22 = vor.u32 %v6692_v3, %v5727_v2  ;;  %v5831_v2 = vld [vmem:[%s10678_s1 + $0x7c0] sm:$0xf]  ;;  %v6718_v3 = vld [vmem:[%s10678_s1 + $0x7c4] sm:$0xf0]  ;;  %v5823_v14 = vld [vmem:[%s10678_s1 + $0x7b0] sm:$0xf] }
  0x60   : > { %2942 = vmatpush.bf16.msra.mxu2 %v5504_v23  ;;  %v5792_v23 = vor.u32 %v6708_v5, %v5791_v4  ;;  %v5704_v5 = vor.u32 %v6686_v63, %v5703_v61  ;;  %v5832_v10 = vor.u32 %v6718_v3, %v5831_v2  ;;  %v6712_v51 = vld [vmem:[%s10678_s1 + $0x794] sm:$0xf0]  ;;  %v5607_v52 = vld [vmem:[%s10678_s1 + $0x600] sm:$0xf]  ;;  %v6662_v53 = vld [vmem:[%s10678_s1 + $0x604] sm:$0xf0] }
  0x61   : > { %2956 = vmatpush.bf16.msra.mxu3 %v5568_v29  ;;  %v5856_v29 = vor.u32 %v6724_v8, %v5855_v6  ;;  %v6668_v8 = vld [vmem:[%s10678_s1 + $0x634] sm:$0xf0]  ;;  %v5799_v61 = vld [vmem:[%s10678_s1 + $0x780] sm:$0xf]  ;;  %v5919_v63 = vld [vmem:[%s10678_s1 + $0x870] sm:$0xf] }
  0x62   : > { %2915 = vmatpush.bf16.msra.mxu0 %v5368_v36  ;;  %v7647_v36 = vor.u32 %v6448_v15, %v4773_v18  ;;  %v6716_v15 = vld [vmem:[%s10678_s1 + $0x7b4] sm:$0xf0]  ;;  %v5983_v2 = vld [vmem:[%s10678_s1 + $0x8f0] sm:$0xf]  ;;  %vm3523_vm2 = vcmask 130048   ;;  %s6919_s26 = smov 64  }
  0x63   : > { %2929 = vmatpush.bf16.msra.mxu1 %v5432_v38  ;;  %v6722_v38 = vld [vmem:[%s10678_s1 + $0x7e4] sm:$0xf0]  ;;  %v6756_v3 = vld [vmem:[%s10678_s1 + $0x8f4] sm:$0xf0]  ;;  %vm3708_vm3 = vcmask 521216   ;;  %vm3716_vm4 = vcmask 519168  }
  0x64   : > { %2943 = vmatpush.bf16.msra.mxu2 %v5496_v40  ;;  %v7655_v40 = vor.u32 %v6449_v20, %v4781_v21  ;;  %v5848_v50 = vor.u32 %v6722_v38, %v5847_v37  ;;  %v5623_v20 = vld [vmem:[%s10678_s1 + $0x620] sm:$0xf]  ;;  %v6666_v21 = vld [vmem:[%s10678_s1 + $0x624] sm:$0xf0]  ;;  %v5752_v38 = vor.u32 %v6698_v28, %v5751_v27  ;;  %vm3719_vm5 = vcmask 523268   ;;  %p279_p4 = scmp.lt.s32.totalorder %s6967_s25, 1 }
  0x65   : > { %2957 = vmatpush.bf16.msra.mxu3 %v5560_v46  ;;  %v5647_v46 = vld [vmem:[%s10678_s1 + $0x650] sm:$0xf]  ;;  %v5624_v32 = vor.u32 %v6666_v21, %v5623_v20  ;;  %v6451_v20 = vld [vmem:[%s7263_s10 + $0x3c] sm:$0xf]  ;;  %v4797_v21 = vld [vmem:[%s7263_s10 + $0x9c] sm:$0xf0] }
  0x66   : > { %2916 = vmatpush.bf16.msra.mxu0 %v5360_v54  ;;  %v5839_v54 = vld [vmem:[%s10678_s1 + $0x7d0] sm:$0xf]  ;;  %v5648_v56 = vor.u32 %v6672_v48, %v5647_v46  ;;  %v6738_v27 = vld [vmem:[%s10678_s1 + $0x864] sm:$0xf0]  ;;  %v5975_v28 = vld [vmem:[%s10678_s1 + $0x8e0] sm:$0xf] }
  0x67   : > { %2930 = vmatpush.bf16.msra.mxu1 %v5424_v59  ;;  %v5639_v59 = vld [vmem:[%s10678_s1 + $0x640] sm:$0xf]  ;;  %v5840_v62 = vor.u32 %v6720_v55, %v5839_v54  ;;  %v5743_v48 = vld [vmem:[%s10678_s1 + $0x710] sm:$0xf]  ;;  %s10880_s25 = smov (!%p279_p4, %s6967_s25), 1  ;;  %vm3985_vm6 = vcmask 1043456  }
  0x68   : > { %2944 = vmatpush.bf16.msra.mxu2 %v5488_v60  ;;  %v6670_v60 = vld [vmem:[%s10678_s1 + $0x644] sm:$0xf0]  ;;  %v5671_v55 = vld [vmem:[%s10678_s1 + $0x680] sm:$0xf] }
  0x69   : > { %2958 = vmatpush.bf16.msra.mxu3 %v5552_v0  ;;  %v5767_v0 = vld [vmem:[%s10678_s1 + $0x740] sm:$0xf]  ;;  %v5640_v4 = vor.u32 %v6670_v60, %v5639_v59  ;;  %v5744_v60 = vor.u32 %v6696_v49, %v5743_v48 }
  0x6a   : > { %2917 = vmatpush.bf16.msra.mxu0 %v5352_v7  ;;  %v5768_v6 = vor.u32 %v6702_v1, %v5767_v0  ;;  %v5631_v7 = vld [vmem:[%s10678_s1 + $0x630] sm:$0xf]  ;;  %v6740_v0 = vld [vmem:[%s10678_s1 + $0x874] sm:$0xf0] }
  0x6b   : > { %2931 = vmatpush.bf16.msra.mxu1 %v5416_v11  ;;  %v6684_v11 = vld [vmem:[%s10678_s1 + $0x6b4] sm:$0xf0] }
  0x6c   : > { %2945 = vmatpush.bf16.msra.mxu2 %v5480_v12  ;;  %v5759_v12 = vld [vmem:[%s10678_s1 + $0x730] sm:$0xf] }
  0x6d   : > { %2959 = vmatpush.bf16.msra.mxu3 %v5544_v16  ;;  %2918 = vmatmul.bf16.vlgmr.msra.gmra.mxu0 %v7634_v30  ;;  %v5632_v16 = vor.u32 %v6668_v8, %v5631_v7  ;;  %v5760_v18 = vor.u32 %v6700_v13, %v5759_v12  ;;  %v5608_v7 = vor.u32 %v6662_v53, %v5607_v52  ;;  %v6788_v8 = vld [vmem:[%s10678_s1 + $0x9f4] sm:$0xf0]  ;;  %v5967_v53 = vld [vmem:[%s10678_s1 + $0x8d0] sm:$0xf] }
  0x6e   : > { %2966 = vmatpush.bf16.msrb.mxu0 %v5664_v17  ;;  %2932 = vmatmul.bf16.vlgmr.msra.gmra.mxu1 %v7647_v36  ;;  %v5696_v17 = vor.u32 %v6684_v11, %v5695_v9  ;;  %v4787_v9 = vld [vmem:[%s7263_s10 + $0x30] sm:$0xf]  ;;  %v4795_v13 = vld [vmem:[%s7263_s10 + $0x38] sm:$0xf] }
  0x6f   : > { %2980 = vmatpush.bf16.msrb.mxu1 %v5728_v22  ;;  %2946 = vmatmul.bf16.vlgmr.msra.gmra.mxu2 %v7645_v35  ;;  %v5687_v22 = vld [vmem:[%s10678_s1 + $0x6a0] sm:$0xf]  ;;  %v6736_v52 = vld [vmem:[%s10678_s1 + $0x854] sm:$0xf0] }
  0x70   : > { %2994 = vmatpush.bf16.msrb.mxu2 %v5792_v23  ;;  %2960 = vmatmul.bf16.vlgmr.msra.gmra.mxu3 %v7655_v40  ;;  %v5824_v23 = vor.u32 %v6716_v15, %v5823_v14  ;;  %v5688_v37 = vor.u32 %v6682_v25, %v5687_v22  ;;  %v6463_v14 = vld [vmem:[%s7263_s10 + $0x98] sm:$0xf0]  ;;  %v6450_v15 = vld [vmem:[%s7263_s10 + $0x34] sm:$0xf]  ;;  %v5984_v22 = vor.u32 %v6756_v3, %v5983_v2  ;;  %v5911_v25 = vld [vmem:[%s10678_s1 + $0x860] sm:$0xf] }
  0x71   : > { %3008 = vmatpush.bf16.msrb.mxu3 %v5856_v29  ;;  %v5815_v29 = vld [vmem:[%s10678_s1 + $0x7a0] sm:$0xf]  ;;  %v5912_v48 = vor.u32 %v6738_v27, %v5911_v25  ;;  %v6750_v3 = vld [vmem:[%s10678_s1 + $0x8c4] sm:$0xf0] }
  0x72   : > { %2967 = vmatpush.bf16.msrb.mxu0 %v5656_v41  ;;  %v6664_v41 = vld [vmem:[%s10678_s1 + $0x614] sm:$0xf0]  ;;  %v5816_v46 = vor.u32 %v6714_v31, %v5815_v29  ;;  %v5879_v25 = vld [vmem:[%s10678_s1 + $0x820] sm:$0xf]  ;;  %v6730_v27 = vld [vmem:[%s10678_s1 + $0x824] sm:$0xf0] }
  0x73   : > { %2981 = vmatpush.bf16.msrb.mxu1 %v5720_v42  ;;  %v5679_v42 = vld [vmem:[%s10678_s1 + $0x690] sm:$0xf]  ;;  %v5616_v54 = vor.u32 %v6664_v41, %v5615_v34  ;;  %v6039_v34 = vld [vmem:[%s10678_s1 + $0x960] sm:$0xf] }
  0x74   : > { %2995 = vmatpush.bf16.msrb.mxu2 %v5784_v45  ;;  %v6680_v45 = vld [vmem:[%s10678_s1 + $0x694] sm:$0xf0] }
  0x75   : > { %3009 = vmatpush.bf16.msrb.mxu3 %v5848_v50  ;;  %v5807_v50 = vld [vmem:[%s10678_s1 + $0x790] sm:$0xf]  ;;  %v5680_v59 = vor.u32 %v6680_v45, %v5679_v42  ;;  %v6103_v42 = vld [vmem:[%s10678_s1 + $0x9e0] sm:$0xf]  ;;  %v6786_v45 = vld [vmem:[%s10678_s1 + $0x9e4] sm:$0xf0] }
  0x76   : > { %2968 = vmatpush.bf16.msrb.mxu0 %v5648_v56  ;;  %v6678_v56 = vld [vmem:[%s10678_s1 + $0x684] sm:$0xf0]  ;;  %v5808_v1 = vor.u32 %v6712_v51, %v5807_v50  ;;  %v5903_v51 = vld [vmem:[%s10678_s1 + $0x850] sm:$0xf] }
  0x77   : > { %2982 = vmatpush.bf16.msrb.mxu1 %v5712_v57  ;;  %v5735_v57 = vld [vmem:[%s10678_s1 + $0x700] sm:$0xf]  ;;  %v5672_v11 = vor.u32 %v6678_v56, %v5671_v55  ;;  %v6752_v55 = vld [vmem:[%s10678_s1 + $0x8d4] sm:$0xf0]  ;;  %v6031_v56 = vld [vmem:[%s10678_s1 + $0x950] sm:$0xf] }
  0x78   : > { %2996 = vmatpush.bf16.msrb.mxu2 %v5776_v58  ;;  %v6694_v58 = vld [vmem:[%s10678_s1 + $0x704] sm:$0xf0] }
  0x79   : > { %3010 = vmatpush.bf16.msrb.mxu3 %v5840_v62  ;;  %v6710_v62 = vld [vmem:[%s10678_s1 + $0x784] sm:$0xf0]  ;;  %v5736_v12 = vor.u32 %v6694_v58, %v5735_v57  ;;  %v6768_v57 = vld [vmem:[%s10678_s1 + $0x954] sm:$0xf0]  ;;  %v6095_v58 = vld [vmem:[%s10678_s1 + $0x9d0] sm:$0xf] }
  0x7a   : > { %2969 = vmatpush.bf16.msrb.mxu0 %v5640_v4  ;;  %v6047_v4 = vld [vmem:[%s10678_s1 + $0x970] sm:$0xf] }
  0x7b   : > { %2983 = vmatpush.bf16.msrb.mxu1 %v5704_v5  ;;  %v6772_v5 = vld [vmem:[%s10678_s1 + $0x974] sm:$0xf0] }
  0x7c   : > { %2997 = vmatpush.bf16.msrb.mxu2 %v5768_v6  ;;  %v6111_v6 = vld [vmem:[%s10678_s1 + $0x9f0] sm:$0xf] }
  0x7d   : > { %3011 = vmatpush.bf16.msrb.mxu3 %v5832_v10  ;;  %v6462_v10 = vld [vmem:[%s7263_s10 + $0x90] sm:$0xf0]  ;;  %v6112_v29 = vor.u32 %v6788_v8, %v6111_v6  ;;  %v6087_v6 = vld [vmem:[%s10678_s1 + $0x9c0] sm:$0xf] }
  0x7e   : > { %2970 = vmatpush.bf16.msrb.mxu0 %v5632_v16  ;;  %v5800_v16 = vor.u32 %v6710_v62, %v5799_v61  ;;  %v7846_v31 = vor.u32 %v6462_v10, %v4787_v9  ;;  %v5968_v61 = vor.u32 %v6752_v55, %v5967_v53  ;;  %v6032_v62 = vor.u32 %v6768_v57, %v6031_v56  ;;  %v5935_v53 = vld [vmem:[%s10678_s1 + $0x890] sm:$0xf]  ;;  %v6760_v57 = vld [vmem:[%s10678_s1 + $0x914] sm:$0xf0] }
  0x7f   : > { %2984 = vmatpush.bf16.msrb.mxu1 %v5696_v17  ;;  %v5920_v17 = vor.u32 %v6740_v0, %v5919_v63  ;;  %v5895_v63 = vld [vmem:[%s10678_s1 + $0x840] sm:$0xf]  ;;  %v6734_v0 = vld [vmem:[%s10678_s1 + $0x844] sm:$0xf0]  ;;  %v5999_v56 = vld [vmem:[%s10678_s1 + $0x910] sm:$0xf] }
  0x80   : > { %2998 = vmatpush.bf16.msrb.mxu2 %v5760_v18  ;;  %v4789_v18 = vld [vmem:[%s7263_s10 + $0x94] sm:$0xf0]  ;;  %v5896_v8 = vor.u32 %v6734_v0, %v5895_v63  ;;  %v5927_v63 = vld [vmem:[%s10678_s1 + $0x880] sm:$0xf]  ;;  %v6742_v0 = vld [vmem:[%s10678_s1 + $0x884] sm:$0xf0] }
  0x81   : > { %3012 = vmatpush.bf16.msrb.mxu3 %v5824_v23  ;;  %v6048_v23 = vor.u32 %v6772_v5, %v6047_v4  ;;  %v7859_v41 = vor.u32 %v6450_v15, %v4789_v18  ;;  %v6023_v4 = vld [vmem:[%s10678_s1 + $0x940] sm:$0xf]  ;;  %v6766_v5 = vld [vmem:[%s10678_s1 + $0x944] sm:$0xf0]  ;;  %v6748_v15 = vld [vmem:[%s10678_s1 + $0x8b4] sm:$0xf0] }
  0x82   : > { %2971 = vmatpush.bf16.msrb.mxu0 %v5624_v32  ;;  %v6754_v32 = vld [vmem:[%s10678_s1 + $0x8e4] sm:$0xf0]  ;;  %v6024_v10 = vor.u32 %v6766_v5, %v6023_v4  ;;  %v6079_v18 = vld [vmem:[%s10678_s1 + $0x9b0] sm:$0xf]  ;;  %v6000_v4 = vor.u32 %v6760_v57, %v5999_v56  ;;  %v6055_v5 = vld [vmem:[%s10678_s1 + $0x980] sm:$0xf] }
  0x83   : > { %2985 = vmatpush.bf16.msrb.mxu1 %v5688_v37  ;;  %v6770_v37 = vld [vmem:[%s10678_s1 + $0x964] sm:$0xf0]  ;;  %v5976_v49 = vor.u32 %v6754_v32, %v5975_v28  ;;  %v5943_v28 = vld [vmem:[%s10678_s1 + $0x8a0] sm:$0xf] }
  0x84   : > { %2999 = vmatpush.bf16.msrb.mxu2 %v5752_v38  ;;  %v7857_v38 = vor.u32 %v6463_v14, %v4795_v13  ;;  %v6040_v50 = vor.u32 %v6770_v37, %v6039_v34  ;;  %v5951_v13 = vld [vmem:[%s10678_s1 + $0x8b0] sm:$0xf]  ;;  %v6746_v32 = vld [vmem:[%s10678_s1 + $0x8a4] sm:$0xf0]  ;;  %v6007_v34 = vld [vmem:[%s10678_s1 + $0x920] sm:$0xf] }
  0x85   : > { %3013 = vmatpush.bf16.msrb.mxu3 %v5816_v46  ;;  %v7867_v46 = vor.u32 %v6451_v20, %v4797_v21  ;;  %v6780_v20 = vld [vmem:[%s10678_s1 + $0x9b4] sm:$0xf0]  ;;  %v6762_v37 = vld [vmem:[%s10678_s1 + $0x924] sm:$0xf0]  ;;  %v6359_v57 = vld [vmem:[%s10678_s1 + $0xbe0] sm:$0xf] }
  0x86   : > { %2972 = vmatpush.bf16.msrb.mxu0 %v5616_v54  ;;  %v6104_v54 = vor.u32 %v6786_v45, %v6103_v42  ;;  %v6071_v42 = vld [vmem:[%s10678_s1 + $0x9a0] sm:$0xf]  ;;  %v6778_v45 = vld [vmem:[%s10678_s1 + $0x9a4] sm:$0xf0] }
  0x87   : > { %2986 = vmatpush.bf16.msrb.mxu1 %v5680_v59  ;;  %v6784_v59 = vld [vmem:[%s10678_s1 + $0x9d4] sm:$0xf0]  ;;  %v6072_v55 = vor.u32 %v6778_v45, %v6071_v42  ;;  %v6167_v45 = vld [vmem:[%s10678_s1 + $0xa60] sm:$0xf] }
  0x88   : > { %3000 = vmatpush.bf16.msrb.mxu2 %v5744_v60  ;;  %v5904_v60 = vor.u32 %v6736_v52, %v5903_v51  ;;  %v6096_v2 = vor.u32 %v6784_v59, %v6095_v58  ;;  %v6008_v51 = vor.u32 %v6762_v37, %v6007_v34  ;;  %v6728_v52 = vld [vmem:[%s10678_s1 + $0x814] sm:$0xf0]  ;;  %v6063_v58 = vld [vmem:[%s10678_s1 + $0x990] sm:$0xf] }
  0x89   : > { %3014 = vmatpush.bf16.msrb.mxu3 %v5808_v1  ;;  %v5959_v1 = vld [vmem:[%s10678_s1 + $0x8c0] sm:$0xf]  ;;  %v6776_v59 = vld [vmem:[%s10678_s1 + $0x994] sm:$0xf0]  ;;  %v4813_v34 = vld [vmem:[%s7263_s10 + $0xac] sm:$0xf0] }
  0x8a   : > { %2973 = vmatpush.bf16.msrb.mxu0 %v5608_v7  ;;  %v6782_v7 = vld [vmem:[%s10678_s1 + $0x9c4] sm:$0xf0]  ;;  %v5960_v9 = vor.u32 %v6750_v3, %v5959_v1  ;;  %v5991_v1 = vld [vmem:[%s10678_s1 + $0x900] sm:$0xf] }
  0x8b   : > { %2987 = vmatpush.bf16.msrb.mxu1 %v5672_v11  ;;  %v5887_v11 = vld [vmem:[%s10678_s1 + $0x830] sm:$0xf]  ;;  %v6088_v14 = vor.u32 %v6782_v7, %v6087_v6  ;;  %v6774_v6 = vld [vmem:[%s10678_s1 + $0x984] sm:$0xf0] }
  0x8c   : > { %3001 = vmatpush.bf16.msrb.mxu2 %v5736_v12  ;;  %v6732_v12 = vld [vmem:[%s10678_s1 + $0x834] sm:$0xf0]  ;;  %v6175_v7 = vld [vmem:[%s10678_s1 + $0xa70] sm:$0xf] }
  0x8d   : > { %3015 = vmatpush.bf16.msrb.mxu3 %v5800_v16  ;;  %2974 = vmatmul.bf16.vlgmr.msrb.gmra.mxu0 %v7846_v31  ;;  %v6015_v16 = vld [vmem:[%s10678_s1 + $0x930] sm:$0xf]  ;;  %v5888_v21 = vor.u32 %v6732_v12, %v5887_v11  ;;  %v6820_v11 = vld [vmem:[%s10678_s1 + $0xaf4] sm:$0xf0] }
  0x8e   : > { %3022 = vmatpush.bf16.msra.mxu0 %v5920_v17  ;;  %2988 = vmatmul.bf16.vlgmr.msrb.gmra.mxu1 %v7859_v41  ;;  %v6764_v17 = vld [vmem:[%s10678_s1 + $0x934] sm:$0xf0]  ;;  %v6303_v12 = vld [vmem:[%s10678_s1 + $0xb70] sm:$0xf] }
  0x8f   : > { %3036 = vmatpush.bf16.msra.mxu1 %v5984_v22  ;;  %3002 = vmatmul.bf16.vlgmr.msrb.gmra.mxu2 %v7857_v38  ;;  %v5952_v22 = vor.u32 %v6748_v15, %v5951_v13  ;;  %v6836_v13 = vld [vmem:[%s10678_s1 + $0xb74] sm:$0xf0] }
  0x90   : > { %3050 = vmatpush.bf16.msra.mxu2 %v6048_v23  ;;  %3016 = vmatmul.bf16.vlgmr.msrb.gmra.mxu3 %v7867_v46  ;;  %v6016_v23 = vor.u32 %v6764_v17, %v6015_v16  ;;  %v6852_v16 = vld [vmem:[%s10678_s1 + $0xbf4] sm:$0xf0]  ;;  %v4803_v17 = vld [vmem:[%s7263_s10 + $0x40] sm:$0xf]  ;;  %v6304_v42 = vor.u32 %v6836_v13, %v6303_v12  ;;  %v6798_v12 = vld [vmem:[%s10678_s1 + $0xa44] sm:$0xf0] }
  0x91   : > { %3064 = vmatpush.bf16.msra.mxu3 %v6112_v29  ;;  %v6080_v29 = vor.u32 %v6780_v20, %v6079_v18  ;;  %v6464_v18 = vld [vmem:[%s7263_s10 + $0xa0] sm:$0xf0]  ;;  %v5928_v20 = vor.u32 %v6742_v0, %v5927_v63  ;;  %v6159_v63 = vld [vmem:[%s10678_s1 + $0xa50] sm:$0xf]  ;;  %v6800_v0 = vld [vmem:[%s10678_s1 + $0xa54] sm:$0xf0] }
  0x92   : > { %3023 = vmatpush.bf16.msra.mxu0 %v5912_v48  ;;  %v5880_v48 = vor.u32 %v6730_v27, %v5879_v25  ;;  %v6452_v25 = vld [vmem:[%s7263_s10 + $0x44] sm:$0xf]  ;;  %v6056_v27 = vor.u32 %v6774_v6, %v6055_v5  ;;  %v6832_v5 = vld [vmem:[%s10678_s1 + $0xb54] sm:$0xf0]  ;;  %v6351_v6 = vld [vmem:[%s10678_s1 + $0xbd0] sm:$0xf] }
  0x93   : > { %3037 = vmatpush.bf16.msra.mxu1 %v5976_v49  ;;  %v5871_v49 = vld [vmem:[%s10678_s1 + $0x810] sm:$0xf]  ;;  %v6215_v13 = vld [vmem:[%s10678_s1 + $0xac0] sm:$0xf] }
  0x94   : > { %3051 = vmatpush.bf16.msra.mxu2 %v6040_v50  ;;  %v5944_v50 = vor.u32 %v6746_v32, %v5943_v28  ;;  %v6453_v32 = vld [vmem:[%s7263_s10 + $0x4c] sm:$0xf] }
  0x95   : > { %3065 = vmatpush.bf16.msra.mxu3 %v6104_v54  ;;  %v6744_v54 = vld [vmem:[%s10678_s1 + $0x894] sm:$0xf0] }
  0x96   : > { %3024 = vmatpush.bf16.msra.mxu0 %v5904_v60  ;;  %v5863_v60 = vld [vmem:[%s10678_s1 + $0x800] sm:$0xf]  ;;  %v5936_v3 = vor.u32 %v6744_v54, %v5935_v53  ;;  %v6834_v54 = vld [vmem:[%s10678_s1 + $0xb64] sm:$0xf0] }
  0x97   : > { %3038 = vmatpush.bf16.msra.mxu1 %v5968_v61  ;;  %v6726_v61 = vld [vmem:[%s10678_s1 + $0x804] sm:$0xf0]  ;;  %v6295_v53 = vld [vmem:[%s10678_s1 + $0xb60] sm:$0xf] }
  0x98   : > { %3052 = vmatpush.bf16.msra.mxu2 %v6032_v62  ;;  %v5872_v62 = vor.u32 %v6728_v52, %v5871_v49  ;;  %v5864_v15 = vor.u32 %v6726_v61, %v5863_v60  ;;  %v6231_v49 = vld [vmem:[%s10678_s1 + $0xae0] sm:$0xf]  ;;  %v6818_v52 = vld [vmem:[%s10678_s1 + $0xae4] sm:$0xf0] }
  0x99   : > { %3066 = vmatpush.bf16.msra.mxu3 %v6096_v2  ;;  %v6758_v2 = vld [vmem:[%s10678_s1 + $0x904] sm:$0xf0]  ;;  %v6232_v61 = vor.u32 %v6818_v52, %v6231_v49  ;;  %v6135_v52 = vld [vmem:[%s10678_s1 + $0xa20] sm:$0xf] }
  0x9a   : > { %3025 = vmatpush.bf16.msra.mxu0 %v5896_v8  ;;  %v6064_v8 = vor.u32 %v6776_v59, %v6063_v58  ;;  %v6850_v58 = vld [vmem:[%s10678_s1 + $0xbe4] sm:$0xf0]  ;;  %v8079_v59 = vor.u32 %v6453_v32, %v4813_v34  ;;  %v6812_v32 = vld [vmem:[%s10678_s1 + $0xab4] sm:$0xf0]  ;;  %v6271_v34 = vld [vmem:[%s10678_s1 + $0xb30] sm:$0xf] }
  0x9b   : > { %3039 = vmatpush.bf16.msra.mxu1 %v5960_v9  ;;  %v6804_v9 = vld [vmem:[%s10678_s1 + $0xa74] sm:$0xf0] }
  0x9c   : > { %3053 = vmatpush.bf16.msra.mxu2 %v6024_v10  ;;  %v6239_v10 = vld [vmem:[%s10678_s1 + $0xaf0] sm:$0xf]  ;;  %v6176_v28 = vor.u32 %v6804_v9, %v6175_v7  ;;  %v6848_v7 = vld [vmem:[%s10678_s1 + $0xbd4] sm:$0xf0] }
  0x9d   : > { %3067 = vmatpush.bf16.msra.mxu3 %v6088_v14  ;;  %v6367_v14 = vld [vmem:[%s10678_s1 + $0xbf0] sm:$0xf]  ;;  %v6240_v37 = vor.u32 %v6820_v11, %v6239_v10  ;;  %v6151_v11 = vld [vmem:[%s10678_s1 + $0xa40] sm:$0xf] }
  0x9e   : > { %3026 = vmatpush.bf16.msra.mxu0 %v5888_v21  ;;  %v5992_v21 = vor.u32 %v6758_v2, %v5991_v1  ;;  %v6223_v1 = vld [vmem:[%s10678_s1 + $0xad0] sm:$0xf]  ;;  %v6360_v2 = vor.u32 %v6850_v58, %v6359_v57  ;;  %v6810_v58 = vld [vmem:[%s10678_s1 + $0xaa4] sm:$0xf0] }
  0x9f   : > { %3040 = vmatpush.bf16.msra.mxu1 %v5952_v22  ;;  %v4811_v22 = vld [vmem:[%s7263_s10 + $0x48] sm:$0xf] }
  0xa0   : > { %3054 = vmatpush.bf16.msra.mxu2 %v6016_v23  ;;  %v6465_v23 = vld [vmem:[%s7263_s10 + $0xa8] sm:$0xf0] }
  0xa1   : > { %3068 = vmatpush.bf16.msra.mxu3 %v6080_v29  ;;  %v4805_v29 = vld [vmem:[%s7263_s10 + $0xa4] sm:$0xf0] }
  0xa2   : > { %3027 = vmatpush.bf16.msra.mxu0 %v5880_v48  ;;  %v6802_v48 = vld [vmem:[%s10678_s1 + $0xa64] sm:$0xf0]  ;;  %v8071_v56 = vor.u32 %v6452_v25, %v4805_v29  ;;  %v6143_v25 = vld [vmem:[%s10678_s1 + $0xa30] sm:$0xf] }
  0xa3   : > { %3041 = vmatpush.bf16.msra.mxu1 %v5944_v50  ;;  %v6368_v50 = vor.u32 %v6852_v16, %v6367_v14  ;;  %v6168_v60 = vor.u32 %v6802_v48, %v6167_v45  ;;  %v6352_v14 = vor.u32 %v6848_v7, %v6351_v6  ;;  %v6279_v16 = vld [vmem:[%s10678_s1 + $0xb40] sm:$0xf]  ;;  %v6844_v45 = vld [vmem:[%s10678_s1 + $0xbb4] sm:$0xf0] }
  0xa4   : > { %3055 = vmatpush.bf16.msra.mxu2 %v6008_v51  ;;  %v8058_v51 = vor.u32 %v6464_v18, %v4803_v17  ;;  %v6830_v17 = vld [vmem:[%s10678_s1 + $0xb44] sm:$0xf0]  ;;  %v6343_v18 = vld [vmem:[%s10678_s1 + $0xbc0] sm:$0xf]  ;;  %v6808_v6 = vld [vmem:[%s10678_s1 + $0xa94] sm:$0xf0] }
  0xa5   : > { %3069 = vmatpush.bf16.msra.mxu3 %v6072_v55  ;;  %v8069_v55 = vor.u32 %v6465_v23, %v4811_v22  ;;  %v6280_v23 = vor.u32 %v6830_v17, %v6279_v16  ;;  %v6806_v16 = vld [vmem:[%s10678_s1 + $0xa84] sm:$0xf0]  ;;  %v6247_v17 = vld [vmem:[%s10678_s1 + $0xb00] sm:$0xf] }
  0xa6   : > { %3028 = vmatpush.bf16.msra.mxu0 %v5872_v62  ;;  %v6296_v62 = vor.u32 %v6834_v54, %v6295_v53  ;;  %v6794_v53 = vld [vmem:[%s10678_s1 + $0xa24] sm:$0xf0]  ;;  %v6199_v54 = vld [vmem:[%s10678_s1 + $0xaa0] sm:$0xf] }
  0xa7   : > { %3042 = vmatpush.bf16.msra.mxu1 %v5936_v3  ;;  %v6816_v3 = vld [vmem:[%s10678_s1 + $0xad4] sm:$0xf0] }
  0xa8   : > { %3056 = vmatpush.bf16.msra.mxu2 %v6000_v4  ;;  %v6287_v4 = vld [vmem:[%s10678_s1 + $0xb50] sm:$0xf]  ;;  %v6224_v9 = vor.u32 %v6816_v3, %v6223_v1 }
  0xa9   : > { %3070 = vmatpush.bf16.msra.mxu3 %v6064_v8  ;;  %v6160_v8 = vor.u32 %v6800_v0, %v6159_v63  ;;  %v6288_v10 = vor.u32 %v6832_v5, %v6287_v4  ;;  %v6842_v63 = vld [vmem:[%s10678_s1 + $0xba4] sm:$0xf0]  ;;  %v6136_v0 = vor.u32 %v6794_v53, %v6135_v52  ;;  %v6127_v1 = vld [vmem:[%s10678_s1 + $0xa10] sm:$0xf]  ;;  %v6792_v4 = vld [vmem:[%s10678_s1 + $0xa14] sm:$0xf0] }
  0xaa   : > { %3029 = vmatpush.bf16.msra.mxu0 %v5864_v15  ;;  %v6814_v15 = vld [vmem:[%s10678_s1 + $0xac4] sm:$0xf0]  ;;  %v6191_v5 = vld [vmem:[%s10678_s1 + $0xa90] sm:$0xf] }
  0xab   : > { %3043 = vmatpush.bf16.msra.mxu1 %v5928_v20  ;;  %v6846_v20 = vld [vmem:[%s10678_s1 + $0xbc4] sm:$0xf0]  ;;  %v6216_v22 = vor.u32 %v6814_v15, %v6215_v13  ;;  %v6183_v15 = vld [vmem:[%s10678_s1 + $0xa80] sm:$0xf] }
  0xac   : > { %3057 = vmatpush.bf16.msra.mxu2 %v5992_v21  ;;  %v6152_v21 = vor.u32 %v6798_v12, %v6151_v11  ;;  %v6344_v29 = vor.u32 %v6846_v20, %v6343_v18  ;;  %v6840_v11 = vld [vmem:[%s10678_s1 + $0xb94] sm:$0xf0]  ;;  %v6119_v12 = vld [vmem:[%s10678_s1 + $0xa00] sm:$0xf]  ;;  %v6790_v13 = vld [vmem:[%s10678_s1 + $0xa04] sm:$0xf0]  ;;  %v6192_v20 = vor.u32 %v6808_v6, %v6191_v5  ;;  %v6184_v52 = vor.u32 %v6806_v16, %v6183_v15 }
  0xad   : > { %3071 = vmatpush.bf16.msra.mxu3 %v6056_v27  ;;  %3030 = vmatmul.bf16.vlgmr.msra.gmra.mxu0 %v8058_v51  ;;  %v6796_v27 = vld [vmem:[%s10678_s1 + $0xa34] sm:$0xf0]  ;;  %v6822_v18 = vld [vmem:[%s10678_s1 + $0xb04] sm:$0xf0]  ;;  %v6481_v5 = vld [vmem:[%s10678_s1 + $0x64] sm:$0xf] }
  0xae   : > { %3078 = vmatpush.bf16.msrb.mxu0 %v6176_v28  ;;  %3044 = vmatmul.bf16.vlgmr.msra.gmra.mxu1 %v8071_v56  ;;  %v6207_v28 = vld [vmem:[%s10678_s1 + $0xab0] sm:$0xf]  ;;  %v6144_v48 = vor.u32 %v6796_v27, %v6143_v25  ;;  %v6248_v53 = vor.u32 %v6822_v18, %v6247_v17 }
  0xaf   : > { %3092 = vmatpush.bf16.msrb.mxu1 %v6240_v37  ;;  %3058 = vmatmul.bf16.vlgmr.msra.gmra.mxu2 %v8069_v55  ;;  %v6828_v37 = vld [vmem:[%s10678_s1 + $0xb34] sm:$0xf0]  ;;  %v6208_v49 = vor.u32 %v6812_v32, %v6207_v28  ;;  %v6399_v25 = vld [vmem:[%s10678_s1 + $0xc30] sm:$0xf]  ;;  %v4897_v32 = vld [vmem:[%s10678_s1 + $0x78] sm:$0xf0] }
  0xb0   : > { %3106 = vmatpush.bf16.msrb.mxu2 %v6304_v42  ;;  %3072 = vmatmul.bf16.vlgmr.msra.gmra.mxu3 %v8079_v59  ;;  %v6335_v42 = vld [vmem:[%s10678_s1 + $0xbb0] sm:$0xf]  ;;  %v6860_v28 = vld [vmem:[%s10678_s1 + $0xc34] sm:$0xf0] }
  0xb1   : > { %3120 = vmatpush.bf16.msrb.mxu3 %v6368_v50  ;;  %v6272_v50 = vor.u32 %v6828_v37, %v6271_v34  ;;  %v6336_v57 = vor.u32 %v6844_v45, %v6335_v42  ;;  %v6499_v34 = vld [vmem:[%s10678_s1 + $0xf4] sm:$0xf]  ;;  %v4961_v37 = vld [vmem:[%s10678_s1 + $0xf8] sm:$0xf0]  ;;  %v6120_v45 = vor.u32 %v6790_v13, %v6119_v12  ;;  %v6513_v13 = vld [vmem:[%s10678_s1 + $0x164] sm:$0xf] }
  0xb2   : > { %3079 = vmatpush.bf16.msrb.mxu0 %v6168_v60  ;;  %v6263_v60 = vld [vmem:[%s10678_s1 + $0xb20] sm:$0xf]  ;;  %v6515_v42 = vld [vmem:[%s10678_s1 + $0x174] sm:$0xf] }
  0xb3   : > { %3093 = vmatpush.bf16.msrb.mxu1 %v6232_v61  ;;  %v6826_v61 = vld [vmem:[%s10678_s1 + $0xb24] sm:$0xf0] }
  0xb4   : > { %3107 = vmatpush.bf16.msrb.mxu2 %v6296_v62  ;;  %v6327_v62 = vld [vmem:[%s10678_s1 + $0xba0] sm:$0xf]  ;;  %v6264_v3 = vor.u32 %v6826_v61, %v6263_v60  ;;  %v6400_v61 = vor.u32 %v6860_v28, %v6399_v25  ;;  %v4881_v25 = vld [vmem:[%s10678_s1 + $0x58] sm:$0xf0] }
  0xb5   : > { %3121 = vmatpush.bf16.msrb.mxu3 %v6360_v2  ;;  %v6200_v2 = vor.u32 %v6810_v58, %v6199_v54  ;;  %v6328_v7 = vor.u32 %v6842_v63, %v6327_v62  ;;  %v4827_v54 = vld [vmem:[%s7263_s10 + $0x58] sm:$0xf]  ;;  %v6454_v58 = vld [vmem:[%s7263_s10 + $0x54] sm:$0xf]  ;;  %v6455_v63 = vld [vmem:[%s7263_s10 + $0x5c] sm:$0xf] }
  0xb6   : > { %3080 = vmatpush.bf16.msrb.mxu0 %v6160_v8  ;;  %v6255_v8 = vld [vmem:[%s10678_s1 + $0xb10] sm:$0xf]  ;;  %v4821_v62 = vld [vmem:[%s7263_s10 + $0xb4] sm:$0xf0]  ;;  %v4945_v28 = vld [vmem:[%s10678_s1 + $0xd8] sm:$0xf0] }
  0xb7   : > { %3094 = vmatpush.bf16.msrb.mxu1 %v6224_v9  ;;  %v6824_v9 = vld [vmem:[%s10678_s1 + $0xb14] sm:$0xf0]  ;;  %v8283_v12 = vor.u32 %v6454_v58, %v4821_v62  ;;  %v5001_v58 = vld [vmem:[%s10678_s1 + $0x148] sm:$0xf0] }
  0xb8   : > { %3108 = vmatpush.bf16.msrb.mxu2 %v6288_v10  ;;  %v6319_v10 = vld [vmem:[%s10678_s1 + $0xb90] sm:$0xf] }
  0xb9   : > { %3122 = vmatpush.bf16.msrb.mxu3 %v6352_v14  ;;  %v6128_v14 = vor.u32 %v6792_v4, %v6127_v1  ;;  %v6320_v27 = vor.u32 %v6840_v11, %v6319_v10  ;;  %v6858_v4 = vld [vmem:[%s10678_s1 + $0xc24] sm:$0xf0]  ;;  %v4953_v10 = vld [vmem:[%s10678_s1 + $0xe8] sm:$0xf0] }
  0xba   : > { %3081 = vmatpush.bf16.msrb.mxu0 %v6152_v21  ;;  %v6256_v21 = vor.u32 %v6824_v9, %v6255_v8  ;;  %v4889_v8 = vld [vmem:[%s10678_s1 + $0x68] sm:$0xf0]  ;;  %v6497_v9 = vld [vmem:[%s10678_s1 + $0xe4] sm:$0xf] }
  0xbb   : > { %3095 = vmatpush.bf16.msrb.mxu1 %v6216_v22  ;;  %v6311_v22 = vld [vmem:[%s10678_s1 + $0xb80] sm:$0xf]  ;;  %v4892_v17 = vor.u32 %v6481_v5, %v4889_v8  ;;  %v4956_v18 = vor.u32 %v6497_v9, %v4953_v10  ;;  %v6491_v5 = vld [vmem:[%s10678_s1 + $0xb4] sm:$0xf]  ;;  %v4993_v9 = vld [vmem:[%s10678_s1 + $0x138] sm:$0xf0] }
  0xbc   : > { %3109 = vmatpush.bf16.msrb.mxu2 %v6280_v23  ;;  %v6838_v23 = vld [vmem:[%s10678_s1 + $0xb84] sm:$0xf0]  ;;  %v6507_v8 = vld [vmem:[%s10678_s1 + $0x134] sm:$0xf]  ;;  %v6529_v10 = vld [vmem:[%s10678_s1 + $0x1e4] sm:$0xf] }
  0xbd   : > { %3123 = vmatpush.bf16.msrb.mxu3 %v6344_v29  ;;  %v6483_v29 = vld [vmem:[%s10678_s1 + $0x74] sm:$0xf]  ;;  %v6312_v60 = vor.u32 %v6838_v23, %v6311_v22 }
  0xbe   : > { %3082 = vmatpush.bf16.msrb.mxu0 %v6144_v48  ;;  %v5025_v48 = vld [vmem:[%s10678_s1 + $0x178] sm:$0xf0]  ;;  %v4900_v1 = vor.u32 %v6483_v29, %v4897_v32  ;;  %v6479_v22 = vld [vmem:[%s10678_s1 + $0x54] sm:$0xf] }
  0xbf   : > { %3096 = vmatpush.bf16.msrb.mxu1 %v6208_v49  ;;  %v4819_v49 = vld [vmem:[%s7263_s10 + $0x50] sm:$0xf]  ;;  %v5028_v6 = vor.u32 %v6515_v42, %v5025_v48  ;;  %v6511_v29 = vld [vmem:[%s10678_s1 + $0x154] sm:$0xf]  ;;  %v5009_v32 = vld [vmem:[%s10678_s1 + $0x158] sm:$0xf0]  ;;  %v4884_v42 = vor.u32 %v6479_v22, %v4881_v25  ;;  %v4996_v22 = vor.u32 %v6507_v8, %v4993_v9 }
  0xc0   : > { %3110 = vmatpush.bf16.msrb.mxu2 %v6272_v50  ;;  %v6466_v50 = vld [vmem:[%s7263_s10 + $0xb0] sm:$0xf0]  ;;  %v6854_v48 = vld [vmem:[%s10678_s1 + $0xc04] sm:$0xf0]  ;;  %v6489_v25 = vld [vmem:[%s10678_s1 + $0xa4] sm:$0xf] }
  0xc1   : > { %3124 = vmatpush.bf16.msrb.mxu3 %v6336_v57  ;;  %v6467_v57 = vld [vmem:[%s7263_s10 + $0xb8] sm:$0xf0]  ;;  %v4969_v8 = vld [vmem:[%s10678_s1 + $0x108] sm:$0xf0]  ;;  %v6523_v9 = vld [vmem:[%s10678_s1 + $0x1b4] sm:$0xf] }
  0xc2   : > { %3083 = vmatpush.bf16.msrb.mxu0 %v6136_v0  ;;  %v4829_v0 = vld [vmem:[%s7263_s10 + $0xbc] sm:$0xf0]  ;;  %v8281_v11 = vor.u32 %v6467_v57, %v4827_v54  ;;  %v4937_v54 = vld [vmem:[%s10678_s1 + $0xc8] sm:$0xf0]  ;;  %v6509_v57 = vld [vmem:[%s10678_s1 + $0x144] sm:$0xf] }
  0xc3   : > { %3097 = vmatpush.bf16.msrb.mxu1 %v6200_v2  ;;  %v4964_v2 = vor.u32 %v6499_v34, %v4961_v37  ;;  %v8291_v15 = vor.u32 %v6455_v63, %v4829_v0  ;;  %v6375_v37 = vld [vmem:[%s10678_s1 + $0xc00] sm:$0xf] }
  0xc4   : > { %3111 = vmatpush.bf16.msrb.mxu2 %v6264_v3  ;;  %v6391_v3 = vld [vmem:[%s10678_s1 + $0xc20] sm:$0xf]  ;;  %v6376_v62 = vor.u32 %v6854_v48, %v6375_v37  ;;  %v5073_v37 = vld [vmem:[%s10678_s1 + $0x1d8] sm:$0xf0]  ;;  %v6471_v48 = vld [vmem:[%s10678_s1 + $0x14] sm:$0xf] }
  0xc5   : > { %3125 = vmatpush.bf16.msrb.mxu3 %v6328_v7  ;;  %v8270_v7 = vor.u32 %v6466_v50, %v4819_v49  ;;  %v6392_v16 = vor.u32 %v6858_v4, %v6391_v3  ;;  %v6477_v49 = vld [vmem:[%s10678_s1 + $0x44] sm:$0xf]  ;;  %v4873_v50 = vld [vmem:[%s10678_s1 + $0x48] sm:$0xf0]  ;;  %v5004_v3 = vor.u32 %v6509_v57, %v5001_v58  ;;  %v6503_v57 = vld [vmem:[%s10678_s1 + $0x114] sm:$0xf] }
  0xc6   : > { %3084 = vmatpush.bf16.msrb.mxu0 %v6128_v14  ;;  %v5017_v14 = vld [vmem:[%s10678_s1 + $0x168] sm:$0xf0]  ;;  %v4876_v63 = vor.u32 %v6477_v49, %v4873_v50  ;;  %v4849_v49 = vld [vmem:[%s10678_s1 + $0x18] sm:$0xf0] }
  0xc7   : > { %3098 = vmatpush.bf16.msrb.mxu1 %v6192_v20  ;;  %v6383_v20 = vld [vmem:[%s10678_s1 + $0xc10] sm:$0xf]  ;;  %v5020_v23 = vor.u32 %v6513_v13, %v5017_v14  ;;  %v5081_v13 = vld [vmem:[%s10678_s1 + $0x1e8] sm:$0xf0]  ;;  %v4835_v14 = vld [vmem:[%s7263_s10 + $0x60] sm:$0xf] }
  0xc8   : > { %3112 = vmatpush.bf16.msrb.mxu2 %v6256_v21  ;;  %v6856_v21 = vld [vmem:[%s10678_s1 + $0xc14] sm:$0xf0]  ;;  %v4977_v58 = vld [vmem:[%s10678_s1 + $0x118] sm:$0xf0] }
  0xc9   : > { %3126 = vmatpush.bf16.msrb.mxu3 %v6320_v27  ;;  %v6495_v27 = vld [vmem:[%s10678_s1 + $0xd4] sm:$0xf]  ;;  %v6384_v34 = vor.u32 %v6856_v21, %v6383_v20  ;;  %v6473_v20 = vld [vmem:[%s10678_s1 + $0x24] sm:$0xf]  ;;  %v4857_v21 = vld [vmem:[%s10678_s1 + $0x28] sm:$0xf0] }
  0xca   : > { %3085 = vmatpush.bf16.msrb.mxu0 %v6120_v45  ;;  %v4948_v45 = vor.u32 %v6495_v27, %v4945_v28  ;;  %v4921_v27 = vld [vmem:[%s10678_s1 + $0xa8] sm:$0xf0]  ;;  %v6505_v28 = vld [vmem:[%s10678_s1 + $0x124] sm:$0xf] }
  0xcb   : > { %3099 = vmatpush.bf16.msrb.mxu1 %v6184_v52  ;;  %v5012_v52 = vor.u32 %v6511_v29, %v5009_v32  ;;  %v4985_v32 = vld [vmem:[%s10678_s1 + $0x128] sm:$0xf0] }
  0xcc   : > { %3113 = vmatpush.bf16.msrb.mxu2 %v6248_v53  ;;  %v6493_v53 = vld [vmem:[%s10678_s1 + $0xc4] sm:$0xf]  ;;  %v4988_v50 = vor.u32 %v6505_v28, %v4985_v32 }
  0xcd   : > { %3127 = vmatpush.bf16.msrb.mxu3 %v6312_v60  ;;  %3086 = vmatmul.bf16.vlgmr.msrb.gmra.mxu0 %v8270_v7  ;;  %v6531_v60 = vld [vmem:[%s10678_s1 + $0x1f4] sm:$0xf]  ;;  %v4940_v0 = vor.u32 %v6493_v53, %v4937_v54  ;;  %v4913_v54 = vld [vmem:[%s10678_s1 + $0x98] sm:$0xf0]  ;;  %v6521_v32 = vld [vmem:[%s10678_s1 + $0x1a4] sm:$0xf] }
  0xce   : > { %3138 = vmatpush.bf16.msra.mxu0 %v6400_v61  ;;  %3100 = vmatmul.bf16.vlgmr.msrb.gmra.mxu1 %v8283_v12  ;;  %v5089_v61 = vld [vmem:[%s10678_s1 + $0x1f8] sm:$0xf0]  ;;  %v6487_v53 = vld [vmem:[%s10678_s1 + $0x94] sm:$0xf] }
  0xcf   : > { %3148 = vmatpush.bf16.msra.mxu1 %v4900_v1  ;;  %3114 = vmatmul.bf16.vlgmr.msrb.gmra.mxu2 %v8281_v11  ;;  %v6475_v1 = vld [vmem:[%s10678_s1 + $0x34] sm:$0xf]  ;;  %v5092_v4 = vor.u32 %v6531_v60, %v5089_v61  ;;  %v6525_v60 = vld [vmem:[%s10678_s1 + $0x1c4] sm:$0xf]  ;;  %v5065_v61 = vld [vmem:[%s10678_s1 + $0x1c8] sm:$0xf0] }
  0xd0   : > { %3162 = vmatpush.bf16.msra.mxu2 %v4964_v2  ;;  %3128 = vmatmul.bf16.vlgmr.msrb.gmra.mxu3 %v8291_v15  ;;  %v4865_v2 = vld [vmem:[%s10678_s1 + $0x38] sm:$0xf0] }
  0xd1   : > { %3176 = vmatpush.bf16.msra.mxu3 %v5028_v6  ;;  %v4929_v6 = vld [vmem:[%s10678_s1 + $0xb8] sm:$0xf0] }
  0xd2   : > { %3139 = vmatpush.bf16.msra.mxu0 %v6392_v16  ;;  %v6468_v16 = vld [vmem:[%s7263_s10 + $0xc0] sm:$0xf0] }
  0xd3   : > { %3149 = vmatpush.bf16.msra.mxu1 %v4892_v17  ;;  %v4868_v17 = vor.u32 %v6475_v1, %v4865_v2  ;;  %v8392_v29 = vor.u32 %v6468_v16, %v4835_v14  ;;  %v4841_v1 = vld [vmem:[%s10678_s1 + $0x8] sm:$0xf0]  ;;  %v6485_v2 = vld [vmem:[%s10678_s1 + $0x84] sm:$0xf]  ;;  %v5153_v14 = vld [vmem:[%s10678_s1 + $0x278] sm:$0xf0] }
  0xd4   : > { %3163 = vmatpush.bf16.msra.mxu2 %v4956_v18  ;;  %v4932_v18 = vor.u32 %v6491_v5, %v4929_v6  ;;  %v4905_v5 = vld [vmem:[%s10678_s1 + $0x88] sm:$0xf0]  ;;  %v6501_v6 = vld [vmem:[%s10678_s1 + $0x104] sm:$0xf]  ;;  %v6563_v16 = vld [vmem:[%s10678_s1 + $0x2f4] sm:$0xf] }
  0xd5   : > { %3177 = vmatpush.bf16.msra.mxu3 %v5020_v23  ;;  %v5084_v23 = vor.u32 %v6529_v10, %v5081_v13  ;;  %v5057_v10 = vld [vmem:[%s10678_s1 + $0x1b8] sm:$0xf0]  ;;  %v6547_v13 = vld [vmem:[%s10678_s1 + $0x274] sm:$0xf] }
  0xd6   : > { %3140 = vmatpush.bf16.msra.mxu0 %v6384_v34  ;;  %v6527_v34 = vld [vmem:[%s10678_s1 + $0x1d4] sm:$0xf] }
  0xd7   : > { %3150 = vmatpush.bf16.msra.mxu1 %v4884_v42  ;;  %v4860_v42 = vor.u32 %v6473_v20, %v4857_v21  ;;  %v4908_v20 = vor.u32 %v6485_v2, %v4905_v5  ;;  %v6579_v21 = vld [vmem:[%s10678_s1 + $0x374] sm:$0xf]  ;;  %v6517_v5 = vld [vmem:[%s10678_s1 + $0x184] sm:$0xf] }
  0xd8   : > { %3164 = vmatpush.bf16.msra.mxu2 %v4948_v45  ;;  %v4924_v45 = vor.u32 %v6489_v25, %v4921_v27  ;;  %v5060_v25 = vor.u32 %v6523_v9, %v5057_v10  ;;  %v5156_v27 = vor.u32 %v6547_v13, %v5153_v14  ;;  %v6575_v2 = vld [vmem:[%s10678_s1 + $0x354] sm:$0xf]  ;;  %v5033_v9 = vld [vmem:[%s10678_s1 + $0x188] sm:$0xf0]  ;;  %v6557_v13 = vld [vmem:[%s10678_s1 + $0x2c4] sm:$0xf] }
  0xd9   : > { %3178 = vmatpush.bf16.msra.mxu3 %v5012_v52  ;;  %v5076_v52 = vor.u32 %v6527_v34, %v5073_v37  ;;  %v5049_v34 = vld [vmem:[%s10678_s1 + $0x1a8] sm:$0xf0]  ;;  %v6545_v37 = vld [vmem:[%s10678_s1 + $0x264] sm:$0xf] }
  0xda   : > { %3141 = vmatpush.bf16.msra.mxu0 %v6376_v62  ;;  %v4852_v62 = vor.u32 %v6471_v48, %v4849_v49  ;;  %v6561_v48 = vld [vmem:[%s10678_s1 + $0x2e4] sm:$0xf]  ;;  %v5209_v49 = vld [vmem:[%s10678_s1 + $0x2e8] sm:$0xf0] }
  0xdb   : > { %3151 = vmatpush.bf16.msra.mxu1 %v4876_v63  ;;  %v4916_v63 = vor.u32 %v6487_v53, %v4913_v54  ;;  %v5052_v53 = vor.u32 %v6521_v32, %v5049_v34  ;;  %v5193_v14 = vld [vmem:[%s10678_s1 + $0x2c8] sm:$0xf0] }
  0xdc   : > { %3165 = vmatpush.bf16.msra.mxu2 %v4940_v0  ;;  %v6469_v0 = vld [vmem:[%s10678_s1 + $0x4] sm:$0xf] }
  0xdd   : > { %3179 = vmatpush.bf16.msra.mxu3 %v5004_v3  ;;  %6405 = vmatmul.msk.bf16.vlgmr.msra.gmra.mxu0 %vm2794_vm0, %v8392_v29  ;;  %v4980_v3 = vor.u32 %v6503_v57, %v4977_v58  ;;  %v5212_v57 = vor.u32 %v6561_v48, %v5209_v49  ;;  %v6519_v58 = vld [vmem:[%s10678_s1 + $0x194] sm:$0xf]  ;;  %v5249_v48 = vld [vmem:[%s10678_s1 + $0x338] sm:$0xf0]  ;;  %v6593_v49 = vld [vmem:[%s10678_s1 + $0x3e4] sm:$0xf] }
  0xde   : > { %3190 = vmatpush.bf16.msrb.mxu0 %v5092_v4  ;;  %v5068_v4 = vor.u32 %v6525_v60, %v5065_v61  ;;  %v5041_v60 = vld [vmem:[%s10678_s1 + $0x198] sm:$0xf0]  ;;  %v6543_v61 = vld [vmem:[%s10678_s1 + $0x254] sm:$0xf] }
  0xdf   : > { %3152 = vmatpush.bf16.msra.mxu1 %v4868_v17  ;;  %v5217_v17 = vld [vmem:[%s10678_s1 + $0x2f8] sm:$0xf0] }
  0xe0   : > { %3166 = vmatpush.bf16.msra.mxu2 %v4932_v18  ;;  %v4844_v18 = vor.u32 %v6469_v0, %v4841_v1  ;;  %v5220_v28 = vor.u32 %v6563_v16, %v5217_v17  ;;  %v6559_v0 = vld [vmem:[%s10678_s1 + $0x2d4] sm:$0xf]  ;;  %v5201_v1 = vld [vmem:[%s10678_s1 + $0x2d8] sm:$0xf0]  ;;  %v6573_v16 = vld [vmem:[%s10678_s1 + $0x344] sm:$0xf] }
  0xe1   : > { %3180 = vmatpush.bf16.msra.mxu3 %v4996_v22  ;;  %v5281_v22 = vld [vmem:[%s10678_s1 + $0x378] sm:$0xf0]  ;;  %v5257_v17 = vld [vmem:[%s10678_s1 + $0x348] sm:$0xf0] }
  0xe2   : > { %3191 = vmatpush.bf16.msrb.mxu0 %v5084_v23  ;;  %v4972_v23 = vor.u32 %v6501_v6, %v4969_v8  ;;  %v8525_v6 = vpop.f32.mrf.mxu0  ;;  %v5204_v8 = vor.u32 %v6559_v0, %v5201_v1  ;;  %v5260_v32 = vor.u32 %v6573_v16, %v5257_v17  ;;  %v6569_v0 = vld [vmem:[%s10678_s1 + $0x324] sm:$0xf]  ;;  %v5233_v16 = vld [vmem:[%s10678_s1 + $0x318] sm:$0xf0] }
  0xe3   : > { %3153 = vmatpush.bf16.msra.mxu1 %v4860_v42  ;;  %v5284_v42 = vor.u32 %v6579_v21, %v5281_v22  ;;  %v5036_v21 = vor.u32 %v6517_v5, %v5033_v9  ;;  %v8609_v5 = vpop.f32.mrf.mxu3  ;;  %v6535_v9 = vld [vmem:[%s10678_s1 + $0x214] sm:$0xf]  ;;  %v6589_v17 = vld [vmem:[%s10678_s1 + $0x3c4] sm:$0xf] }
  0xe4   : > { %3167 = vmatpush.bf16.msra.mxu2 %v4924_v45  ;;  %v5145_v45 = vld [vmem:[%s10678_s1 + $0x268] sm:$0xf0] }
  0xe5   : > { %3181 = vmatpush.bf16.msra.mxu3 %v4988_v50  ;;  %v6577_v50 = vld [vmem:[%s10678_s1 + $0x364] sm:$0xf]  ;;  %v5148_v54 = vor.u32 %v6545_v37, %v5145_v45  ;;  %v6555_v37 = vld [vmem:[%s10678_s1 + $0x2b4] sm:$0xf] }
  0xe6   : > { %3192 = vmatpush.bf16.msrb.mxu0 %v5076_v52  ;;  %v5273_v52 = vld [vmem:[%s10678_s1 + $0x368] sm:$0xf0]  ;;  %v6571_v45 = vld [vmem:[%s10678_s1 + $0x334] sm:$0xf] }
  0xe7   : > { %3154 = vmatpush.bf16.msra.mxu1 %v4852_v62  ;;  %v5276_v62 = vor.u32 %v6577_v50, %v5273_v52  ;;  %v5337_v50 = vld [vmem:[%s10678_s1 + $0x3e8] sm:$0xf0]  ;;  %v8580_v52 = vpop.f32.mrf.mxu2 }
  0xe8   : > { %3168 = vmatpush.bf16.msra.mxu2 %v4916_v63  ;;  %v5137_v63 = vld [vmem:[%s10678_s1 + $0x258] sm:$0xf0] }
  0xe9   : > { %3182 = vmatpush.bf16.msra.mxu3 %v4980_v3  ;;  %v5265_v3 = vld [vmem:[%s10678_s1 + $0x358] sm:$0xf0] }
  0xea   : > { %3193 = vmatpush.bf16.msrb.mxu0 %v5068_v4  ;;  %v5044_v4 = vor.u32 %v6519_v58, %v5041_v60  ;;  %v5268_v10 = vor.u32 %v6575_v2, %v5265_v3  ;;  %v5113_v58 = vld [vmem:[%s10678_s1 + $0x228] sm:$0xf0]  ;;  %v5252_v60 = vor.u32 %v6571_v45, %v5249_v48  ;;  %v8597_v1 = vpop.f32.mrf.mxu0  ;;  %v6591_v3 = vld [vmem:[%s10678_s1 + $0x3d4] sm:$0xf]  ;;  %v6565_v45 = vld [vmem:[%s10678_s1 + $0x304] sm:$0xf] }
  0xeb   : > { %3155 = vmatpush.bf16.msra.mxu1 %v4844_v18  ;;  %v6595_v18 = vld [vmem:[%s10678_s1 + $0x3f4] sm:$0xf]  ;;  %v5241_v2 = vld [vmem:[%s10678_s1 + $0x328] sm:$0xf0] }
  0xec   : > { %3169 = vmatpush.bf16.msra.mxu2 %v4908_v20  ;;  %v5345_v20 = vld [vmem:[%s10678_s1 + $0x3f8] sm:$0xf0]  ;;  %v5225_v48 = vld [vmem:[%s10678_s1 + $0x308] sm:$0xf0] }
  0xed   : > { %3183 = vmatpush.bf16.msra.mxu3 %v4972_v23  ;;  %v5196_v23 = vor.u32 %v6557_v13, %v5193_v14  ;;  %v5348_v34 = vor.u32 %v6595_v18, %v5345_v20  ;;  %v5169_v13 = vld [vmem:[%s10678_s1 + $0x298] sm:$0xf0]  ;;  %v6567_v14 = vld [vmem:[%s10678_s1 + $0x314] sm:$0xf]  ;;  %v5321_v18 = vld [vmem:[%s10678_s1 + $0x3c8] sm:$0xf0] }
  0xee   : > { %3194 = vmatpush.bf16.msrb.mxu0 %v5060_v25  ;;  %3156 = vmatmul.bf16.vlgmr.msra.gmra.mxu1 %v7274_v19  ;;  %v5140_v19 = vor.u32 %v6543_v61, %v5137_v63  ;;  %v6539_v25 = vld [vmem:[%s10678_s1 + $0x234] sm:$0xf]  ;;  %v5340_v61 = vor.u32 %v6593_v49, %v5337_v50  ;;  %v5177_v63 = vld [vmem:[%s10678_s1 + $0x2a8] sm:$0xf0]  ;;  %v5313_v50 = vld [vmem:[%s10678_s1 + $0x3b8] sm:$0xf0] }
  0xef   : > { %3204 = vmatpush.bf16.msrb.mxu1 %v5156_v27  ;;  %3170 = vmatmul.bf16.vlgmr.msra.gmra.mxu2 %v7284_v26  ;;  %v5129_v26 = vld [vmem:[%s10678_s1 + $0x248] sm:$0xf0]  ;;  %v5121_v27 = vld [vmem:[%s10678_s1 + $0x238] sm:$0xf0]  ;;  %v6587_v49 = vld [vmem:[%s10678_s1 + $0x3b4] sm:$0xf] }
  0xf0   : > { %3218 = vmatpush.bf16.msrb.mxu2 %v5220_v28  ;;  %3184 = vmatmul.bf16.vlgmr.msra.gmra.mxu3 %v7279_v24  ;;  %v6541_v24 = vld [vmem:[%s10678_s1 + $0x244] sm:$0xf]  ;;  %v8560_v28 = vpop.f32.mrf.mxu1 }
  0xf1   : > { %3232 = vmatpush.bf16.msrb.mxu3 %v5284_v42  ;;  %v5132_v22 = vor.u32 %v6541_v24, %v5129_v26  ;;  %v5185_v42 = vld [vmem:[%s10678_s1 + $0x2b8] sm:$0xf0]  ;;  %v5244_v26 = vor.u32 %v6569_v0, %v5241_v2  ;;  %v8683_v2 = vpop.f32.mrf.mxu3 }
  0xf2   : > { %3195 = vmatpush.bf16.msrb.mxu0 %v5052_v53  ;;  %v5124_v53 = vor.u32 %v6539_v25, %v5121_v27  ;;  %v5105_v24 = vld [vmem:[%s10678_s1 + $0x218] sm:$0xf0]  ;;  %v5097_v25 = vld [vmem:[%s10678_s1 + $0x208] sm:$0xf0]  ;;  %v6549_v27 = vld [vmem:[%s10678_s1 + $0x284] sm:$0xf] }
  0xf3   : > { %3205 = vmatpush.bf16.msrb.mxu1 %v5148_v54  ;;  %v5188_v54 = vor.u32 %v6555_v37, %v5185_v42  ;;  %v5324_v37 = vor.u32 %v6589_v17, %v5321_v18  ;;  %v5161_v42 = vld [vmem:[%s10678_s1 + $0x288] sm:$0xf0]  ;;  %v5537_v0 = vld [vmem:[%s10678_s1 + $0x578] sm:$0xf0] }
  0xf4   : > { %3219 = vmatpush.bf16.msrb.mxu2 %v5212_v57  ;;  %v6537_v57 = vld [vmem:[%s10678_s1 + $0x224] sm:$0xf]  ;;  %v5529_v17 = vld [vmem:[%s10678_s1 + $0x568] sm:$0xf0] }
  0xf5   : > { %3233 = vmatpush.bf16.msrb.mxu3 %v5276_v62  ;;  %v6553_v62 = vld [vmem:[%s10678_s1 + $0x2a4] sm:$0xf] }
  0xf6   : > { %3196 = vmatpush.bf16.msrb.mxu0 %v5044_v4  ;;  %v5329_v4 = vld [vmem:[%s10678_s1 + $0x3d8] sm:$0xf0] }
  0xf7   : > { %3206 = vmatpush.bf16.msrb.mxu1 %v5140_v19  ;;  %v5116_v19 = vor.u32 %v6537_v57, %v5113_v58  ;;  %v6627_v57 = vld [vmem:[%s10678_s1 + $0x4f4] sm:$0xf]  ;;  %v5473_v58 = vld [vmem:[%s10678_s1 + $0x4f8] sm:$0xf0] }
  0xf8   : > { %3220 = vmatpush.bf16.msrb.mxu2 %v5204_v8  ;;  %v5180_v8 = vor.u32 %v6553_v62, %v5177_v63  ;;  %v8635_v20 = vpop.f32.mrf.mxu1  ;;  %v5164_v62 = vor.u32 %v6549_v27, %v5161_v42  ;;  %v6643_v63 = vld [vmem:[%s10678_s1 + $0x574] sm:$0xf]  ;;  %v5297_v27 = vld [vmem:[%s10678_s1 + $0x398] sm:$0xf0] }
  0xf9   : > { %3234 = vmatpush.bf16.msrb.mxu3 %v5268_v10  ;;  %v5332_v10 = vor.u32 %v6591_v3, %v5329_v4  ;;  %v5228_v3 = vor.u32 %v6565_v45, %v5225_v48  ;;  %v5316_v4 = vor.u32 %v6587_v49, %v5313_v50  ;;  %v5393_v45 = vld [vmem:[%s10678_s1 + $0x458] sm:$0xf0]  ;;  %v6623_v48 = vld [vmem:[%s10678_s1 + $0x4d4] sm:$0xf] }
  0xfa   : > { %3197 = vmatpush.bf16.msrb.mxu0 %v5036_v21  ;;  %v5108_v21 = vor.u32 %v6535_v9, %v5105_v24  ;;  %v6585_v9 = vld [vmem:[%s10678_s1 + $0x3a4] sm:$0xf]  ;;  %v5305_v24 = vld [vmem:[%s10678_s1 + $0x3a8] sm:$0xf0]  ;;  %v5457_v49 = vld [vmem:[%s10678_s1 + $0x4d8] sm:$0xf0] }
  0xfb   : > { %3207 = vmatpush.bf16.msrb.mxu1 %v5132_v22  ;;  %v5521_v50 = vld [vmem:[%s10678_s1 + $0x558] sm:$0xf0] }
  0xfc   : > { %3221 = vmatpush.bf16.msrb.mxu2 %v5196_v23  ;;  %v6533_v23 = vld [vmem:[%s10678_s1 + $0x204] sm:$0xf] }
  0xfd   : > { %3235 = vmatpush.bf16.msrb.mxu3 %v5260_v32  ;;  %3198 = vmatmul.bf16.vlgmr.msrb.gmra.mxu0 %v7298_v33  ;;  %v6551_v33 = vld [vmem:[%s10678_s1 + $0x294] sm:$0xf]  ;;  %v8646_v32 = vpop.f32.mrf.mxu2 }
  0xfe   : > { %3246 = vmatpush.bf16.msra.mxu0 %v5348_v34  ;;  %v5172_v22 = vor.u32 %v6551_v33, %v5169_v13  ;;  %v5236_v34 = vor.u32 %v6567_v14, %v5233_v16  ;;  %v5401_v33 = vld [vmem:[%s10678_s1 + $0x468] sm:$0xf0]  ;;  %v6625_v13 = vld [vmem:[%s10678_s1 + $0x4e4] sm:$0xf] }
  0xff   : > { %3208 = vmatpush.bf16.msrb.mxu1 %v5124_v53  ;;  %v6611_v53 = vld [vmem:[%s10678_s1 + $0x474] sm:$0xf]  ;;  %v5465_v14 = vld [vmem:[%s10678_s1 + $0x4e8] sm:$0xf0]  ;;  %v6641_v16 = vld [vmem:[%s10678_s1 + $0x564] sm:$0xf] }
 0x100   : > { %3222 = vmatpush.bf16.msrb.mxu2 %v5188_v54  ;;  %v5409_v54 = vld [vmem:[%s10678_s1 + $0x478] sm:$0xf0]  ;;  %v8709_v18 = vpop.f32.mrf.mxu1  ;;  %v5532_v42 = vor.u32 %v6641_v16, %v5529_v17  ;;  %v6603_v16 = vld [vmem:[%s10678_s1 + $0x434] sm:$0xf] }
 0x101   : > { %3236 = vmatpush.bf16.msrb.mxu3 %v5252_v60  ;;  %v8675_v60 = vpop.f32.mrf.mxu0  ;;  %v5377_v17 = vld [vmem:[%s10678_s1 + $0x438] sm:$0xf0] }
 0x102   : > { %3247 = vmatpush.bf16.msra.mxu0 %v5340_v61  ;;  %v5100_v61 = vor.u32 %v6533_v23, %v5097_v25  ;;  %v5468_v23 = vor.u32 %v6625_v13, %v5465_v14  ;;  %v6583_v25 = vld [vmem:[%s10678_s1 + $0x394] sm:$0xf] }
 0x103   : > { %3209 = vmatpush.bf16.msrb.mxu1 %v5116_v19  ;;  %v5412_v19 = vor.u32 %v6611_v53, %v5409_v54  ;;  %v8743_v53 = vld [vmem:[%s10679_s2] sm:$0x3]  ;;  %v5300_v54 = vor.u32 %v6583_v25, %v5297_v27  ;;  %v6619_v25 = vld [vmem:[%s10678_s1 + $0x4b4] sm:$0xf]  ;;  %v5441_v27 = vld [vmem:[%s10678_s1 + $0x4b8] sm:$0xf0] }
 0x104   : > { %3223 = vmatpush.bf16.msrb.mxu2 %v5180_v8  ;;  %v5476_v8 = vor.u32 %v6627_v57, %v5473_v58  ;;  %v5460_v58 = vor.u32 %v6623_v48, %v5457_v49  ;;  %v5593_v48 = vld [vmem:[%s10678_s1 + $0x5e8] sm:$0xf0] }
 0x105   : > { %3237 = vmatpush.bf16.msrb.mxu3 %v5244_v26  ;;  %v6609_v26 = vld [vmem:[%s10678_s1 + $0x464] sm:$0xf] }
 0x106   : > { %3248 = vmatpush.bf16.msra.mxu0 %v5332_v10  ;;  %v5540_v10 = vor.u32 %v6643_v63, %v5537_v0  ;;  %v5385_v63 = vld [vmem:[%s10678_s1 + $0x448] sm:$0xf0]  ;;  %v8759_v0 = vpop.f32.mrf.mxu3 }
 0x107   : > { %3210 = vmatpush.bf16.msrb.mxu1 %v5108_v21  ;;  %v5308_v21 = vor.u32 %v6585_v9, %v5305_v24  ;;  %v5513_v9 = vld [vmem:[%s10678_s1 + $0x548] sm:$0xf0]  ;;  %v6659_v24 = vld [vmem:[%s10678_s1 + $0x5f4] sm:$0xf] }
 0x108   : > { %3224 = vmatpush.bf16.msrb.mxu2 %v5172_v22  ;;  %v5404_v22 = vor.u32 %v6609_v26, %v5401_v33  ;;  %v5601_v26 = vld [vmem:[%s10678_s1 + $0x5f8] sm:$0xf0]  ;;  %v705_v33 = vperm.slane %v8743_v53, 0  ;;  %v5444_v53 = vor.u32 %v6619_v25, %v5441_v27  ;;  %v6653_v27 = vld [vmem:[%s10678_s1 + $0x5c4] sm:$0xf] }
 0x109   : > { %3238 = vmatpush.bf16.msrb.mxu3 %v5236_v34  ;;  %v6607_v34 = vld [vmem:[%s10678_s1 + $0x454] sm:$0xf]  ;;  %v5489_v25 = vld [vmem:[%s10678_s1 + $0x518] sm:$0xf0] }
 0x10a   : > { %3249 = vmatpush.bf16.msra.mxu0 %v5324_v37  ;;  %v8720_v37 = vpop.f32.mrf.mxu2  ;;  %v5396_v57 = vor.u32 %v6607_v34, %v5393_v45  ;;  %v6635_v34 = vld [vmem:[%s10678_s1 + $0x534] sm:$0xf]  ;;  %v6657_v45 = vld [vmem:[%s10678_s1 + $0x5e4] sm:$0xf] }
 0x10b   : > { %3211 = vmatpush.bf16.msrb.mxu1 %v5100_v61  ;;  %v5289_v61 = vld [vmem:[%s10678_s1 + $0x388] sm:$0xf0] }
 0x10c   : > { %3225 = vmatpush.bf16.msrb.mxu2 %v5164_v62  ;;  %v6605_v62 = vld [vmem:[%s10678_s1 + $0x444] sm:$0xf] }
 0x10d   : > { %3239 = vmatpush.bf16.msrb.mxu3 %v5228_v3  ;;  %v5388_v13 = vor.u32 %v6605_v62, %v5385_v63  ;;  %v6617_v62 = vld [vmem:[%s10678_s1 + $0x4a4] sm:$0xf]  ;;  %v5433_v63 = vld [vmem:[%s10678_s1 + $0x4a8] sm:$0xf0] }
 0x10e   : > { %3250 = vmatpush.bf16.msra.mxu0 %v5316_v4  ;;  %3212 = vmatmul.bf16.vlgmr.msrb.gmra.mxu1 %v7422_v39  ;;  %v6639_v39 = vld [vmem:[%s10678_s1 + $0x554] sm:$0xf]  ;;  %v6621_v4 = vld [vmem:[%s10678_s1 + $0x4c4] sm:$0xf] }
 0x10f   : > { %3260 = vmatpush.bf16.msra.mxu1 %v5412_v19  ;;  %3226 = vmatmul.bf16.vlgmr.msrb.gmra.mxu2 %v7435_v44  ;;  %v6581_v44 = vld [vmem:[%s10678_s1 + $0x384] sm:$0xf]  ;;  %v5524_v3 = vor.u32 %v6639_v39, %v5521_v50  ;;  %v5449_v19 = vld [vmem:[%s10678_s1 + $0x4c8] sm:$0xf0]  ;;  %v5380_v50 = vor.u32 %v6603_v16, %v5377_v17  ;;  %v6615_v17 = vld [vmem:[%s10678_s1 + $0x494] sm:$0xf] }
 0x110   : > { %3274 = vmatpush.bf16.msra.mxu2 %v5476_v8  ;;  %3240 = vmatmul.bf16.vlgmr.msrb.gmra.mxu3 %v7433_v43  ;;  %v8748_v43 = vpop.f32.mrf.mxu0  ;;  %v6637_v8 = vld [vmem:[%s10678_s1 + $0x544] sm:$0xf]  ;;  %v5452_v14 = vor.u32 %v6621_v4, %v5449_v19  ;;  %v6655_v4 = vld [vmem:[%s10678_s1 + $0x5d4] sm:$0xf]  ;;  %v5585_v19 = vld [vmem:[%s10678_s1 + $0x5d8] sm:$0xf0] }
 0x111   : > { %3288 = vmatpush.bf16.msra.mxu3 %v5540_v10  ;;  %v5292_v10 = vor.u32 %v6581_v44, %v5289_v61  ;;  %v5369_v44 = vld [vmem:[%s10678_s1 + $0x428] sm:$0xf0]  ;;  %v5596_v61 = vor.u32 %v6657_v45, %v5593_v48  ;;  %v5588_v16 = vor.u32 %v6655_v4, %v5585_v19  ;;  %v6691_v19 = vld [vmem:[%s10678_s1 + $0x6f4] sm:$0xf] }
 0x112   : > { %3251 = vmatpush.bf16.msra.mxu0 %v5308_v21  ;;  %v8786_v21 = vpop.f32.mrf.mxu1  ;;  %v8806_v49 = vpop.f32.mrf.mxu2 }
 0x113   : > { %3261 = vmatpush.bf16.msra.mxu1 %v5404_v22  ;;  %v5516_v22 = vor.u32 %v6637_v8, %v5513_v9  ;;  %v8836_v8 = vpop.f32.mrf.mxu3 }
 0x114   : > { %3275 = vmatpush.bf16.msra.mxu2 %v5468_v23  ;;  %v5604_v23 = vor.u32 %v6659_v24, %v5601_v26  ;;  %v5436_v24 = vor.u32 %v6617_v62, %v5433_v63  ;;  %v5361_v26 = vld [vmem:[%s10678_s1 + $0x418] sm:$0xf0] }
 0x115   : > { %3289 = vmatpush.bf16.msra.mxu3 %v5532_v42  ;;  %v5505_v42 = vld [vmem:[%s10678_s1 + $0x538] sm:$0xf0] }
 0x116   : > { %3252 = vmatpush.bf16.msra.mxu0 %v5300_v54  ;;  %v6601_v54 = vld [vmem:[%s10678_s1 + $0x424] sm:$0xf] }
 0x117   : > { %3262 = vmatpush.bf16.msra.mxu1 %v5396_v57  ;;  %v2808_v57 = vadd.f32 %v8525_v6, %v705_v33  ;;  %v5497_v6 = vld [vmem:[%s10678_s1 + $0x528] sm:$0xf0]  ;;  %v5372_v9 = vor.u32 %v6601_v54, %v5369_v44 }
 0x118   : > { %3276 = vmatpush.bf16.msra.mxu2 %v5460_v58  ;;  %v8808_v39 = vpop.f32.mrf.mxu0  ;;  %v5508_v58 = vor.u32 %v6635_v34, %v5505_v42  ;;  %v5577_v34 = vld [vmem:[%s10678_s1 + $0x5c8] sm:$0xf0] }
 0x119   : > { %3290 = vmatpush.bf16.msra.mxu3 %v5524_v3  ;;  %v6633_v3 = vld [vmem:[%s10678_s1 + $0x524] sm:$0xf]  ;;  %v5580_v44 = vor.u32 %v6653_v27, %v5577_v34  ;;  %v5561_v27 = vld [vmem:[%s10678_s1 + $0x5a8] sm:$0xf0] }
 0x11a   : > { %3253 = vmatpush.bf16.msra.mxu0 %v5292_v10  ;;  %v2822_v10 = vadd.f32 %v8560_v28, %v2808_v57  ;;  %v2810_v28 = vadd.f32 %v8597_v1, %v705_v33  ;;  %v8866_v42 = vpop.f32.mrf.mxu2  ;;  %v6597_v1 = vld [vmem:[%s10678_s1 + $0x404] sm:$0xf]  ;;  %v5353_v33 = vld [vmem:[%s10678_s1 + $0x408] sm:$0xf0] }
 0x11b   : > { %3263 = vmatpush.bf16.msra.mxu1 %v5388_v13  ;;  %v8845_v13 = vpop.f32.mrf.mxu1  ;;  %v5417_v57 = vld [vmem:[%s10678_s1 + $0x488] sm:$0xf0]  ;;  %v8899_v4 = vpop.f32.mrf.mxu3 }
 0x11c   : > { %3277 = vmatpush.bf16.msra.mxu2 %v5452_v14  ;;  %v5500_v14 = vor.u32 %v6633_v3, %v5497_v6  ;;  %v2824_v62 = vadd.f32 %v8635_v20, %v2810_v28  ;;  %v5569_v3 = vld [vmem:[%s10678_s1 + $0x5b8] sm:$0xf0]  ;;  %v6675_v6 = vld [vmem:[%s10678_s1 + $0x674] sm:$0xf] }
 0x11d   : > { %3291 = vmatpush.bf16.msra.mxu3 %v5516_v22  ;;  %3254 = vmatmul.bf16.vlgmr.msra.gmra.mxu0 %v7443_v47  ;;  %v6599_v47 = vld [vmem:[%s10678_s1 + $0x414] sm:$0xf]  ;;  %v5425_v22 = vld [vmem:[%s10678_s1 + $0x498] sm:$0xf0] }
 0x11e   : > { %3302 = vmatpush.bf16.msrb.mxu0 %v5604_v23  ;;  %v6631_v23 = vld [vmem:[%s10678_s1 + $0x514] sm:$0xf]  ;;  %v5364_v45 = vor.u32 %v6599_v47, %v5361_v26  ;;  %v5428_v48 = vor.u32 %v6615_v17, %v5425_v22  ;;  %v5665_v20 = vld [vmem:[%s10678_s1 + $0x678] sm:$0xf0]  ;;  %v2838_v22 = vadd.f32 %v8646_v32, %v2824_v62  ;;  %v5657_v32 = vld [vmem:[%s10678_s1 + $0x668] sm:$0xf0] }
 0x11f   : > { %3264 = vmatpush.bf16.msra.mxu1 %v5380_v50  ;;  %v6613_v50 = vld [vmem:[%s10678_s1 + $0x484] sm:$0xf]  ;;  %v5492_v54 = vor.u32 %v6631_v23, %v5489_v25  ;;  %v6707_v26 = vld [vmem:[%s10678_s1 + $0x774] sm:$0xf]  ;;  %v5668_v23 = vor.u32 %v6675_v6, %v5665_v20  ;;  %v5649_v6 = vld [vmem:[%s10678_s1 + $0x658] sm:$0xf0] }
 0x120   : > { %3278 = vmatpush.bf16.msra.mxu2 %v5444_v53  ;;  %v2836_v53 = vadd.f32 %v8580_v52, %v2822_v10  ;;  %v8888_v63 = vpop.f32.mrf.mxu0  ;;  %v6651_v52 = vld [vmem:[%s10678_s1 + $0x5b4] sm:$0xf]  ;;  %v5420_v47 = vor.u32 %v6613_v50, %v5417_v57  ;;  %v5793_v10 = vld [vmem:[%s10678_s1 + $0x778] sm:$0xf0]  ;;  %v6649_v25 = vld [vmem:[%s10678_s1 + $0x5a4] sm:$0xf]  ;;  %v2852_v57 = vadd.f32 %v8683_v2, %v2838_v22 }
 0x121   : > { %3292 = vmatpush.bf16.msra.mxu3 %v5508_v58  ;;  %v6629_v58 = vld [vmem:[%s10678_s1 + $0x504] sm:$0xf]  ;;  %v5572_v17 = vor.u32 %v6651_v52, %v5569_v3  ;;  %v5785_v50 = vld [vmem:[%s10678_s1 + $0x768] sm:$0xf0]  ;;  %v6647_v52 = vld [vmem:[%s10678_s1 + $0x594] sm:$0xf] }
 0x122   : > { %3303 = vmatpush.bf16.msrb.mxu0 %v5596_v61  ;;  %v5481_v61 = vld [vmem:[%s10678_s1 + $0x508] sm:$0xf0]  ;;  %v6671_v3 = vld [vmem:[%s10678_s1 + $0x654] sm:$0xf] }
 0x123   : > { %3265 = vmatpush.bf16.msra.mxu1 %v5372_v9  ;;  %v5729_v9 = vld [vmem:[%s10678_s1 + $0x6f8] sm:$0xf0]  ;;  %v8927_v34 = vpop.f32.mrf.mxu1  ;;  %v6687_v20 = vld [vmem:[%s10678_s1 + $0x6d4] sm:$0xf] }
 0x124   : > { %3279 = vmatpush.bf16.msra.mxu2 %v5436_v24  ;;  %v5356_v24 = vor.u32 %v6597_v1, %v5353_v33  ;;  %v5732_v28 = vor.u32 %v6691_v19, %v5729_v9  ;;  %v5721_v1 = vld [vmem:[%s10678_s1 + $0x6e8] sm:$0xf0]  ;;  %v6705_v33 = vld [vmem:[%s10678_s1 + $0x764] sm:$0xf]  ;;  %v5713_v19 = vld [vmem:[%s10678_s1 + $0x6d8] sm:$0xf0]  ;;  %v2866_v9 = vadd.f32 %v8748_v43, %v2852_v57 }
 0x125   : > { %3293 = vmatpush.bf16.msra.mxu3 %v5500_v14  ;;  %v2850_v14 = vadd.f32 %v8609_v5, %v2836_v53  ;;  %v6673_v5 = vld [vmem:[%s10678_s1 + $0x664] sm:$0xf]  ;;  %v5788_v2 = vor.u32 %v6705_v33, %v5785_v50  ;;  %v5716_v43 = vor.u32 %v6687_v20, %v5713_v19  ;;  %v5633_v57 = vld [vmem:[%s10678_s1 + $0x638] sm:$0xf0] }
 0x126   : > { %3304 = vmatpush.bf16.msrb.mxu0 %v5588_v16  ;;  %v5484_v16 = vor.u32 %v6629_v58, %v5481_v61  ;;  %v5660_v61 = vor.u32 %v6673_v5, %v5657_v32  ;;  %v5769_v5 = vld [vmem:[%s10678_s1 + $0x748] sm:$0xf0]  ;;  %v5857_v32 = vld [vmem:[%s10678_s1 + $0x7f8] sm:$0xf0] }
 0x127   : > { %3266 = vmatpush.bf16.msra.mxu1 %v5364_v45  ;;  %v5796_v45 = vor.u32 %v6707_v26, %v5793_v10  ;;  %v2864_v53 = vadd.f32 %v8675_v60, %v2850_v14  ;;  %v5553_v60 = vld [vmem:[%s10678_s1 + $0x598] sm:$0xf0]  ;;  %v8979_v26 = vpop.f32.mrf.mxu3  ;;  %v5545_v14 = vld [vmem:[%s10678_s1 + $0x588] sm:$0xf0] }
 0x128   : > { %3280 = vmatpush.bf16.msra.mxu2 %v5428_v48  ;;  %v6689_v48 = vld [vmem:[%s10678_s1 + $0x6e4] sm:$0xf]  ;;  %v8948_v58 = vpop.f32.mrf.mxu0  ;;  %v5556_v10 = vor.u32 %v6647_v52, %v5553_v60  ;;  %v6699_v52 = vld [vmem:[%s10678_s1 + $0x734] sm:$0xf] }
 0x129   : > { %3294 = vmatpush.bf16.msra.mxu3 %v5492_v54  ;;  %v8945_v54 = vpop.f32.mrf.mxu2  ;;  %v5724_v62 = vor.u32 %v6689_v48, %v5721_v1 }
 0x12a   : > { %3305 = vmatpush.bf16.msrb.mxu0 %v5580_v44  ;;  %v5564_v44 = vor.u32 %v6649_v25, %v5561_v27  ;;  %v6701_v25 = vld [vmem:[%s10678_s1 + $0x744] sm:$0xf]  ;;  %v2880_v27 = vadd.f32 %v8786_v21, %v2866_v9 }
 0x12b   : > { %3267 = vmatpush.bf16.msra.mxu1 %v5356_v24  ;;  %v5777_v24 = vld [vmem:[%s10678_s1 + $0x758] sm:$0xf0] }
 0x12c   : > { %3281 = vmatpush.bf16.msra.mxu2 %v5420_v47  ;;  %v2878_v47 = vadd.f32 %v8709_v18, %v2864_v53  ;;  %v6669_v18 = vld [vmem:[%s10678_s1 + $0x644] sm:$0xf]  ;;  %v2894_v21 = vadd.f32 %v8806_v49, %v2880_v27  ;;  %v5697_v49 = vld [vmem:[%s10678_s1 + $0x6b8] sm:$0xf0] }
 0x12d   : > { %3295 = vmatpush.bf16.msra.mxu3 %v5484_v16  ;;  %v5641_v16 = vld [vmem:[%s10678_s1 + $0x648] sm:$0xf0] }
 0x12e   : > { %3306 = vmatpush.bf16.msrb.mxu0 %v5572_v17  ;;  %3268 = vmatmul.bf16.vlgmr.msra.gmra.mxu1 %v7634_v30  ;;  %v6703_v30 = vld [vmem:[%s10678_s1 + $0x754] sm:$0xf]  ;;  %v8993_v17 = vpop.f32.mrf.mxu1  ;;  %v2892_v48 = vadd.f32 %v8720_v37, %v2878_v47  ;;  %v5644_v50 = vor.u32 %v6669_v18, %v5641_v16  ;;  %v5772_v37 = vor.u32 %v6701_v25, %v5769_v5  ;;  %v6665_v47 = vld [vmem:[%s10678_s1 + $0x624] sm:$0xf]  ;;  %v5617_v25 = vld [vmem:[%s10678_s1 + $0x618] sm:$0xf0] }
 0x12f   : > { %3316 = vmatpush.bf16.msrb.mxu1 %v5668_v23  ;;  %3282 = vmatmul.bf16.vlgmr.msra.gmra.mxu2 %v7647_v36  ;;  %v6645_v36 = vld [vmem:[%s10678_s1 + $0x584] sm:$0xf]  ;;  %v5780_v22 = vor.u32 %v6703_v30, %v5777_v24  ;;  %v9045_v19 = vpop.f32.mrf.mxu3  ;;  %v2908_v9 = vadd.f32 %v8836_v8, %v2894_v21  ;;  %v6719_v16 = vld [vmem:[%s10678_s1 + $0x7d4] sm:$0xf] }
 0x130   : > { %3330 = vmatpush.bf16.msrb.mxu2 %v5732_v28  ;;  %3296 = vmatmul.bf16.vlgmr.msra.gmra.mxu3 %v7645_v35  ;;  %v5652_v35 = vor.u32 %v6671_v3, %v5649_v6  ;;  %v6685_v23 = vld [vmem:[%s10678_s1 + $0x6c4] sm:$0xf]  ;;  %v5705_v28 = vld [vmem:[%s10678_s1 + $0x6c8] sm:$0xf0]  ;;  %v5548_v33 = vor.u32 %v6645_v36, %v5545_v14  ;;  %v9033_v60 = vpop.f32.mrf.mxu0  ;;  %v5761_v3 = vld [vmem:[%s10678_s1 + $0x738] sm:$0xf0]  ;;  %v2906_v20 = vadd.f32 %v8759_v0, %v2892_v48 }
 0x131   : > { %3344 = vmatpush.bf16.msrb.mxu3 %v5796_v45  ;;  %v6723_v45 = vld [vmem:[%s10678_s1 + $0x7f4] sm:$0xf]  ;;  %v9015_v1 = vpop.f32.mrf.mxu2  ;;  %v5708_v53 = vor.u32 %v6685_v23, %v5705_v28  ;;  %v5849_v6 = vld [vmem:[%s10678_s1 + $0x7e8] sm:$0xf0]  ;;  %v5764_v0 = vor.u32 %v6699_v52, %v5761_v3  ;;  %v6681_v8 = vld [vmem:[%s10678_s1 + $0x6a4] sm:$0xf]  ;;  %v2922_v18 = vadd.f32 %v8888_v63, %v2908_v9 }
 0x132   : > { %3307 = vmatpush.bf16.msrb.mxu0 %v5564_v44  ;;  %v6667_v44 = vld [vmem:[%s10678_s1 + $0x634] sm:$0xf]  ;;  %v2920_v36 = vadd.f32 %v8808_v39, %v2906_v20  ;;  %v6697_v14 = vld [vmem:[%s10678_s1 + $0x724] sm:$0xf]  ;;  %v5753_v39 = vld [vmem:[%s10678_s1 + $0x728] sm:$0xf0] }
 0x133   : > { %3317 = vmatpush.bf16.msrb.mxu1 %v5660_v61  ;;  %v5860_v61 = vor.u32 %v6723_v45, %v5857_v32  ;;  %v5636_v30 = vor.u32 %v6667_v44, %v5633_v57  ;;  %v5756_v45 = vor.u32 %v6697_v14, %v5753_v39  ;;  %v6679_v48 = vld [vmem:[%s10678_s1 + $0x694] sm:$0xf]  ;;  %v6717_v44 = vld [vmem:[%s10678_s1 + $0x7c4] sm:$0xf]  ;;  %v5833_v57 = vld [vmem:[%s10678_s1 + $0x7c8] sm:$0xf0] }
 0x134   : > { %3331 = vmatpush.bf16.msrb.mxu2 %v5724_v62  ;;  %v6683_v62 = vld [vmem:[%s10678_s1 + $0x6b4] sm:$0xf]  ;;  %v2934_v27 = vadd.f32 %v8845_v13, %v2920_v36  ;;  %v2936_v13 = vadd.f32 %v8927_v34, %v2922_v18  ;;  %v5609_v52 = vld [vmem:[%s10678_s1 + $0x608] sm:$0xf0]  ;;  %v6677_v3 = vld [vmem:[%s10678_s1 + $0x684] sm:$0xf] }
 0x135   : > { %3345 = vmatpush.bf16.msrb.mxu3 %v5788_v2  ;;  %v6721_v2 = vld [vmem:[%s10678_s1 + $0x7e4] sm:$0xf]  ;;  %v5700_v24 = vor.u32 %v6683_v62, %v5697_v49  ;;  %v6695_v21 = vld [vmem:[%s10678_s1 + $0x714] sm:$0xf]  ;;  %v5737_v9 = vld [vmem:[%s10678_s1 + $0x708] sm:$0xf0] }
 0x136   : > { %3308 = vmatpush.bf16.msrb.mxu0 %v5556_v10  ;;  %v5625_v10 = vld [vmem:[%s10678_s1 + $0x628] sm:$0xf0]  ;;  %v9075_v23 = vpop.f32.mrf.mxu1  ;;  %v6661_v49 = vld [vmem:[%s10678_s1 + $0x604] sm:$0xf]  ;;  %v6771_v18 = vld [vmem:[%s10678_s1 + $0x974] sm:$0xf] }
 0x137   : > { %3318 = vmatpush.bf16.msrb.mxu1 %v5652_v35  ;;  %v5852_v35 = vor.u32 %v6721_v2, %v5849_v6  ;;  %v5628_v28 = vor.u32 %v6665_v47, %v5625_v10  ;;  %v9118_v2 = vpop.f32.mrf.mxu3  ;;  %v5673_v6 = vld [vmem:[%s10678_s1 + $0x688] sm:$0xf0]  ;;  %v6693_v20 = vld [vmem:[%s10678_s1 + $0x704] sm:$0xf]  ;;  %v6739_v47 = vld [vmem:[%s10678_s1 + $0x874] sm:$0xf]  ;;  %v5612_v14 = vor.u32 %v6661_v49, %v5609_v52 }
 0x138   : > { %3332 = vmatpush.bf16.msrb.mxu2 %v5716_v43  ;;  %v5689_v43 = vld [vmem:[%s10678_s1 + $0x6a8] sm:$0xf0]  ;;  %v6049_v39 = vld [vmem:[%s10678_s1 + $0x978] sm:$0xf0]  ;;  %v6711_v49 = vld [vmem:[%s10678_s1 + $0x794] sm:$0xf] }
 0x139   : > { %3346 = vmatpush.bf16.msrb.mxu3 %v5780_v22  ;;  %v5841_v22 = vld [vmem:[%s10678_s1 + $0x7d8] sm:$0xf0]  ;;  %v5692_v63 = vor.u32 %v6681_v8, %v5689_v43  ;;  %v9084_v5 = vpop.f32.mrf.mxu2 }
 0x13a   : > { %3309 = vmatpush.bf16.msrb.mxu0 %v5548_v33  ;;  %v5844_v32 = vor.u32 %v6719_v16, %v5841_v22  ;;  %v5681_v33 = vld [vmem:[%s10678_s1 + $0x698] sm:$0xf0] }
 0x13b   : > { %3319 = vmatpush.bf16.msrb.mxu1 %v5644_v50  ;;  %v9096_v50 = vpop.f32.mrf.mxu0  ;;  %v5684_v62 = vor.u32 %v6679_v48, %v5681_v33  ;;  %v5985_v8 = vld [vmem:[%s10678_s1 + $0x8f8] sm:$0xf0]  ;;  %v5913_v48 = vld [vmem:[%s10678_s1 + $0x868] sm:$0xf0] }
 0x13c   : > { %3333 = vmatpush.bf16.msrb.mxu2 %v5708_v53  ;;  %v5745_v53 = vld [vmem:[%s10678_s1 + $0x718] sm:$0xf0]  ;;  %v5977_v33 = vld [vmem:[%s10678_s1 + $0x8e8] sm:$0xf0] }
 0x13d   : > { %3347 = vmatpush.bf16.msrb.mxu3 %v5772_v37  ;;  %3310 = vmatmul.bf16.vlgmr.msrb.gmra.mxu0 %v7655_v40  ;;  %v6663_v40 = vld [vmem:[%s10678_s1 + $0x614] sm:$0xf]  ;;  %v2948_v37 = vadd.f32 %v8866_v42, %v2934_v27  ;;  %v5748_v42 = vor.u32 %v6695_v21, %v5745_v53  ;;  %v6713_v27 = vld [vmem:[%s10678_s1 + $0x7a4] sm:$0xf]  ;;  %v6041_v53 = vld [vmem:[%s10678_s1 + $0x968] sm:$0xf0] }
 0x13e   : > { %3358 = vmatpush.bf16.msra.mxu0 %v5860_v61  ;;  %v2950_v61 = vadd.f32 %v8945_v54, %v2936_v13  ;;  %v5620_v34 = vor.u32 %v6663_v40, %v5617_v25  ;;  %v5836_v54 = vor.u32 %v6717_v44, %v5833_v57  ;;  %v9139_v36 = vpop.f32.mrf.mxu1  ;;  %v6769_v13 = vld [vmem:[%s10678_s1 + $0x964] sm:$0xf]  ;;  %v5809_v52 = vld [vmem:[%s10678_s1 + $0x798] sm:$0xf0] }
 0x13f   : > { %3320 = vmatpush.bf16.msrb.mxu1 %v5636_v30  ;;  %v6715_v30 = vld [vmem:[%s10678_s1 + $0x7b4] sm:$0xf]  ;;  %v2962_v10 = vadd.f32 %v8899_v4, %v2948_v37  ;;  %v5676_v4 = vor.u32 %v6677_v3, %v5673_v6  ;;  %v9186_v57 = vpop.f32.mrf.mxu3  ;;  %v5969_v6 = vld [vmem:[%s10678_s1 + $0x8d8] sm:$0xf0] }
 0x140   : > { %3334 = vmatpush.bf16.msrb.mxu2 %v5700_v24  ;;  %v5825_v24 = vld [vmem:[%s10678_s1 + $0x7b8] sm:$0xf0]  ;;  %v2964_v43 = vadd.f32 %v8979_v26, %v2950_v61 }
 0x141   : > { %3348 = vmatpush.bf16.msrb.mxu3 %v5764_v0  ;;  %v5921_v0 = vld [vmem:[%s10678_s1 + $0x878] sm:$0xf0]  ;;  %v2976_v16 = vadd.f32 %v8948_v58, %v2962_v10  ;;  %v9158_v22 = vpop.f32.mrf.mxu2  ;;  %v5828_v26 = vor.u32 %v6715_v30, %v5825_v24  ;;  %v6737_v58 = vld [vmem:[%s10678_s1 + $0x864] sm:$0xf]  ;;  %v5812_v30 = vor.u32 %v6711_v49, %v5809_v52  ;;  %v5897_v10 = vld [vmem:[%s10678_s1 + $0x848] sm:$0xf0] }
 0x142   : > { %3359 = vmatpush.bf16.msra.mxu0 %v5852_v35  ;;  %v6755_v35 = vld [vmem:[%s10678_s1 + $0x8f4] sm:$0xf]  ;;  %v5924_v40 = vor.u32 %v6739_v47, %v5921_v0  ;;  %v6709_v24 = vld [vmem:[%s10678_s1 + $0x784] sm:$0xf]  ;;  %v5881_v52 = vld [vmem:[%s10678_s1 + $0x828] sm:$0xf0] }
 0x143   : > { %3321 = vmatpush.bf16.msrb.mxu1 %v5628_v28  ;;  %v5740_v28 = vor.u32 %v6693_v20, %v5737_v9  ;;  %v5988_v25 = vor.u32 %v6755_v35, %v5985_v8  ;;  %v3033_v21 = vpop.f32.mrf.mxu0  ;;  %v2990_v44 = vadd.f32 %v8993_v17, %v2976_v16  ;;  %v6735_v17 = vld [vmem:[%s10678_s1 + $0x854] sm:$0xf]  ;;  %v6733_v47 = vld [vmem:[%s10678_s1 + $0x844] sm:$0xf] }
 0x144   : > { %3335 = vmatpush.bf16.msrb.mxu2 %v5692_v63  ;;  %v2978_v63 = vadd.f32 %v9033_v60, %v2964_v43  ;;  %v6753_v60 = vld [vmem:[%s10678_s1 + $0x8e4] sm:$0xf]  ;;  %v6787_v16 = vld [vmem:[%s10678_s1 + $0x9f4] sm:$0xf] }
 0x145   : > { %3349 = vmatpush.bf16.msrb.mxu3 %v5756_v45  ;;  %v5817_v45 = vld [vmem:[%s10678_s1 + $0x7a8] sm:$0xf0]  ;;  %v3004_v3 = vadd.f32 %v9015_v1, %v2990_v44  ;;  %v6033_v1 = vld [vmem:[%s10678_s1 + $0x958] sm:$0xf0]  ;;  %v6749_v43 = vld [vmem:[%s10678_s1 + $0x8c4] sm:$0xf] }
 0x146   : > { %3360 = vmatpush.bf16.msra.mxu0 %v5844_v32  ;;  %v6052_v32 = vor.u32 %v6771_v18, %v6049_v39  ;;  %v5820_v37 = vor.u32 %v6713_v27, %v5817_v45  ;;  %v2992_v61 = vadd.f32 %v9075_v23, %v2978_v63  ;;  %v6044_v23 = vor.u32 %v6769_v13, %v6041_v53  ;;  %v3047_v9 = vpop.f32.mrf.mxu1  ;;  %v6731_v27 = vld [vmem:[%s10678_s1 + $0x834] sm:$0xf]  ;;  %v5889_v45 = vld [vmem:[%s10678_s1 + $0x838] sm:$0xf0]  ;;  %v6785_v13 = vld [vmem:[%s10678_s1 + $0x9e4] sm:$0xf] }
 0x147   : > { %3322 = vmatpush.bf16.msrb.mxu1 %v5620_v34  ;;  %v5916_v34 = vor.u32 %v6737_v58, %v5913_v48  ;;  %v3018_v0 = vadd.f32 %v9045_v19, %v3004_v3  ;;  %v6025_v19 = vld [vmem:[%s10678_s1 + $0x948] sm:$0xf0]  ;;  %v3075_v58 = vpop.f32.mrf.mxu3  ;;  %v6729_v49 = vld [vmem:[%s10678_s1 + $0x824] sm:$0xf] }
 0x148   : > { %3336 = vmatpush.bf16.msrb.mxu2 %v5684_v62  ;;  %v5980_v62 = vor.u32 %v6753_v60, %v5977_v33  ;;  %v3006_v20 = vadd.f32 %v9084_v5, %v2992_v61  ;;  %v5953_v60 = vld [vmem:[%s10678_s1 + $0x8b8] sm:$0xf0]  ;;  %v6763_v33 = vld [vmem:[%s10678_s1 + $0x934] sm:$0xf]  ;;  %v6105_v53 = vld [vmem:[%s10678_s1 + $0x9e8] sm:$0xf0] }
 0x149   : > { %3350 = vmatpush.bf16.msrb.mxu3 %v5748_v42  ;;  %v5905_v42 = vld [vmem:[%s10678_s1 + $0x858] sm:$0xf0]  ;;  %v3061_v35 = vpop.f32.mrf.mxu2  ;;  %v6108_v3 = vor.u32 %v6785_v13, %v6105_v53  ;;  %v6819_v53 = vld [vmem:[%s10678_s1 + $0xaf4] sm:$0xf] }
 0x14a   : > { %3361 = vmatpush.bf16.msra.mxu0 %v5836_v54  ;;  %v6751_v54 = vld [vmem:[%s10678_s1 + $0x8d4] sm:$0xf]  ;;  %v3020_v18 = vadd.f32 %v9118_v2, %v3006_v20  ;;  %v5900_v2 = vor.u32 %v6733_v47, %v5897_v10  ;;  %v6177_v13 = vld [vmem:[%s10678_s1 + $0xa78] sm:$0xf0] }
 0x14b   : > { %3323 = vmatpush.bf16.msrb.mxu1 %v5612_v14  ;;  %v5972_v5 = vor.u32 %v6751_v54, %v5969_v6  ;;  %v5961_v14 = vld [vmem:[%s10678_s1 + $0x8c8] sm:$0xf0]  ;;  %v9241_v39 = vpop.f32.mrf.mxu0  ;;  %v6761_v54 = vld [vmem:[%s10678_s1 + $0x924] sm:$0xf]  ;;  %v6743_v10 = vld [vmem:[%s10678_s1 + $0x894] sm:$0xf] }
 0x14c   : > { %3337 = vmatpush.bf16.msrb.mxu2 %v5676_v4  ;;  %v6765_v4 = vld [vmem:[%s10678_s1 + $0x944] sm:$0xf] }
 0x14d   : > { %3351 = vmatpush.bf16.msrb.mxu3 %v5740_v28  ;;  %v6113_v28 = vld [vmem:[%s10678_s1 + $0x9f8] sm:$0xf0] }
 0x14e   : > { %3362 = vmatpush.bf16.msra.mxu0 %v5828_v26  ;;  %3324 = vmatmul.bf16.vlgmr.msrb.gmra.mxu1 %v7846_v31  ;;  %v6767_v31 = vld [vmem:[%s10678_s1 + $0x954] sm:$0xf]  ;;  %v3032_v26 = vadd.f32 %v9096_v50, %v3018_v0  ;;  %v6116_v48 = vor.u32 %v6787_v16, %v6113_v28  ;;  %v5937_v0 = vld [vmem:[%s10678_s1 + $0x898] sm:$0xf0] }
 0x14f   : > { %3372 = vmatpush.bf16.msra.mxu1 %v5924_v40  ;;  %3338 = vmatmul.bf16.vlgmr.msrb.gmra.mxu2 %v7859_v41  ;;  %v5908_v41 = vor.u32 %v6735_v17, %v5905_v42  ;;  %v6036_v8 = vor.u32 %v6767_v31, %v6033_v1  ;;  %v3034_v40 = vadd.f32 %v3033_v21, %v3020_v18  ;;  %v6747_v50 = vld [vmem:[%s10678_s1 + $0x8b4] sm:$0xf]  ;;  %v6017_v21 = vld [vmem:[%s10678_s1 + $0x938] sm:$0xf0]  ;;  %v5945_v42 = vld [vmem:[%s10678_s1 + $0x8a8] sm:$0xf0] }
 0x150   : > { %3386 = vmatpush.bf16.msra.mxu2 %v5988_v25  ;;  %3352 = vmatmul.bf16.vlgmr.msrb.gmra.mxu3 %v7857_v38  ;;  %v5801_v38 = vld [vmem:[%s10678_s1 + $0x788] sm:$0xf0]  ;;  %v5964_v25 = vor.u32 %v6749_v43, %v5961_v14  ;;  %v3046_v44 = vadd.f32 %v9139_v36, %v3032_v26  ;;  %v6020_v17 = vor.u32 %v6763_v33, %v6017_v21  ;;  %v6001_v14 = vld [vmem:[%s10678_s1 + $0x918] sm:$0xf0]  ;;  %v6725_v26 = vld [vmem:[%s10678_s1 + $0x804] sm:$0xf] }
 0x151   : > { %3400 = vmatpush.bf16.msra.mxu3 %v6052_v32  ;;  %v5804_v63 = vor.u32 %v6709_v24, %v5801_v38  ;;  %v6028_v32 = vor.u32 %v6765_v4, %v6025_v19  ;;  %v3048_v61 = vadd.f32 %v3047_v9, %v3034_v40  ;;  %v6009_v1 = vld [vmem:[%s10678_s1 + $0x928] sm:$0xf0]  ;;  %v6783_v9 = vld [vmem:[%s10678_s1 + $0x9d4] sm:$0xf]  ;;  %v5884_v24 = vor.u32 %v6729_v49, %v5881_v52  ;;  %v6781_v4 = vld [vmem:[%s10678_s1 + $0x9c4] sm:$0xf] }
 0x152   : > { %3363 = vmatpush.bf16.msra.mxu0 %v5820_v37  ;;  %v9278_v37 = vpop.f32.mrf.mxu1  ;;  %v9286_v36 = vpop.f32.mrf.mxu2  ;;  %v3060_v6 = vadd.f32 %v9158_v22, %v3046_v44  ;;  %v6012_v38 = vor.u32 %v6761_v54, %v6009_v1  ;;  %v6089_v18 = vld [vmem:[%s10678_s1 + $0x9c8] sm:$0xf0]  ;;  %v6741_v40 = vld [vmem:[%s10678_s1 + $0x884] sm:$0xf]  ;;  %v6241_v44 = vld [vmem:[%s10678_s1 + $0xaf8] sm:$0xf0] }
 0x153   : > { %3373 = vmatpush.bf16.msra.mxu1 %v5916_v34  ;;  %v5892_v34 = vor.u32 %v6731_v27, %v5889_v45  ;;  %v3062_v20 = vadd.f32 %v3061_v35, %v3048_v61  ;;  %v3089_v31 = vpop.f32.mrf.mxu0  ;;  %v6759_v35 = vld [vmem:[%s10678_s1 + $0x914] sm:$0xf]  ;;  %v5929_v27 = vld [vmem:[%s10678_s1 + $0x888] sm:$0xf0]  ;;  %v6757_v45 = vld [vmem:[%s10678_s1 + $0x904] sm:$0xf] }
 0x154   : > { %3387 = vmatpush.bf16.msra.mxu2 %v5980_v62  ;;  %v5956_v62 = vor.u32 %v6747_v50, %v5953_v60  ;;  %v6803_v50 = vld [vmem:[%s10678_s1 + $0xa74] sm:$0xf]  ;;  %v6305_v52 = vld [vmem:[%s10678_s1 + $0xb78] sm:$0xf0]  ;;  %v6169_v1 = vld [vmem:[%s10678_s1 + $0xa68] sm:$0xf0] }
 0x155   : > { %3401 = vmatpush.bf16.msra.mxu3 %v6044_v23  ;;  %v6745_v23 = vld [vmem:[%s10678_s1 + $0x8a4] sm:$0xf]  ;;  %v3076_v43 = vadd.f32 %v3075_v58, %v3062_v20  ;;  %v5993_v58 = vld [vmem:[%s10678_s1 + $0x908] sm:$0xf0]  ;;  %v6835_v49 = vld [vmem:[%s10678_s1 + $0xb74] sm:$0xf]  ;;  %v6180_v54 = vor.u32 %v6803_v50, %v6177_v13 }
 0x156   : > { %3364 = vmatpush.bf16.msra.mxu0 %v5812_v30  ;;  %v6097_v30 = vld [vmem:[%s10678_s1 + $0x9d8] sm:$0xf0]  ;;  %v5948_v22 = vor.u32 %v6745_v23, %v5945_v42  ;;  %v6073_v20 = vld [vmem:[%s10678_s1 + $0x9a8] sm:$0xf0]  ;;  %v6851_v50 = vld [vmem:[%s10678_s1 + $0xbf4] sm:$0xf] }
 0x157   : > { %3374 = vmatpush.bf16.msra.mxu1 %v5908_v41  ;;  %v5873_v41 = vld [vmem:[%s10678_s1 + $0x818] sm:$0xf0]  ;;  %v6100_v47 = vor.u32 %v6783_v9, %v6097_v30  ;;  %v3090_v28 = vadd.f32 %v3089_v31, %v3076_v43  ;;  %v6801_v31 = vld [vmem:[%s10678_s1 + $0xa64] sm:$0xf]  ;;  %v6308_v30 = vor.u32 %v6835_v49, %v6305_v52  ;;  %v6799_v43 = vld [vmem:[%s10678_s1 + $0xa54] sm:$0xf] }
 0x158   : > { %3388 = vmatpush.bf16.msra.mxu2 %v5972_v5  ;;  %v9314_v5 = vpop.f32.mrf.mxu3  ;;  %v6209_v49 = vld [vmem:[%s10678_s1 + $0xab8] sm:$0xf0]  ;;  %v6827_v52 = vld [vmem:[%s10678_s1 + $0xb34] sm:$0xf] }
 0x159   : > { %3402 = vmatpush.bf16.msra.mxu3 %v6036_v8  ;;  %v3074_v8 = vadd.f32 %v9186_v57, %v3060_v6  ;;  %v5940_v57 = vor.u32 %v6743_v10, %v5937_v0  ;;  %v6244_v6 = vor.u32 %v6819_v53, %v6241_v44  ;;  %v6795_v53 = vld [vmem:[%s10678_s1 + $0xa34] sm:$0xf]  ;;  %v6145_v44 = vld [vmem:[%s10678_s1 + $0xa38] sm:$0xf0] }
 0x15a   : > { %3365 = vmatpush.bf16.msra.mxu0 %v5804_v63  ;;  %v5865_v63 = vld [vmem:[%s10678_s1 + $0x808] sm:$0xf0]  ;;  %v3117_v60 = vpop.f32.mrf.mxu2 }
 0x15b   : > { %3375 = vmatpush.bf16.msra.mxu1 %v5900_v2  ;;  %v3088_v16 = vadd.f32 %v9241_v39, %v3074_v8  ;;  %v3103_v2 = vpop.f32.mrf.mxu1  ;;  %v6004_v39 = vor.u32 %v6759_v35, %v6001_v14  ;;  %v3143_v33 = vpop.f32.mrf.mxu0  ;;  %v5868_v21 = vor.u32 %v6725_v26, %v5865_v63  ;;  %v6775_v35 = vld [vmem:[%s10678_s1 + $0x994] sm:$0xf]  ;;  %v6065_v8 = vld [vmem:[%s10678_s1 + $0x998] sm:$0xf0]  ;;  %v6773_v63 = vld [vmem:[%s10678_s1 + $0x984] sm:$0xf] }
 0x15c   : > { %3389 = vmatpush.bf16.msra.mxu2 %v5964_v25  ;;  %v6092_v25 = vor.u32 %v6781_v4, %v6089_v18  ;;  %v6161_v4 = vld [vmem:[%s10678_s1 + $0xa58] sm:$0xf0]  ;;  %v6815_v18 = vld [vmem:[%s10678_s1 + $0xad4] sm:$0xf]  ;;  %v6068_v26 = vor.u32 %v6775_v35, %v6065_v8 }
 0x15d   : > { %3403 = vmatpush.bf16.msra.mxu3 %v6028_v32  ;;  %3366 = vmatmul.bf16.vlgmr.msra.gmra.mxu0 %v7867_v46  ;;  %v6727_v46 = vld [vmem:[%s10678_s1 + $0x814] sm:$0xf]  ;;  %v3102_v61 = vadd.f32 %v9278_v37, %v3088_v16  ;;  %v6777_v37 = vld [vmem:[%s10678_s1 + $0x9a4] sm:$0xf]  ;;  %v6193_v35 = vld [vmem:[%s10678_s1 + $0xa98] sm:$0xf0] }
 0x15e   : > { %3414 = vmatpush.bf16.msrb.mxu0 %v6116_v48  ;;  %v5876_v19 = vor.u32 %v6727_v46, %v5873_v41  ;;  %v6779_v32 = vld [vmem:[%s10678_s1 + $0x9b4] sm:$0xf]  ;;  %v6081_v48 = vld [vmem:[%s10678_s1 + $0x9b8] sm:$0xf0]  ;;  %v6297_v46 = vld [vmem:[%s10678_s1 + $0xb68] sm:$0xf0]  ;;  %v6076_v41 = vor.u32 %v6777_v37, %v6073_v20 }
 0x15f   : > { %3376 = vmatpush.bf16.msra.mxu1 %v5892_v34  ;;  %v3104_v34 = vadd.f32 %v3103_v2, %v3090_v28  ;;  %v3116_v23 = vadd.f32 %v9286_v36, %v3102_v61  ;;  %v6817_v36 = vld [vmem:[%s10678_s1 + $0xae4] sm:$0xf]  ;;  %v6831_v28 = vld [vmem:[%s10678_s1 + $0xb54] sm:$0xf]  ;;  %v6057_v2 = vld [vmem:[%s10678_s1 + $0x988] sm:$0xf0] }
 0x160   : > { %3390 = vmatpush.bf16.msra.mxu2 %v5956_v62  ;;  %v5932_v62 = vor.u32 %v6741_v40, %v5929_v27  ;;  %v3131_v9 = vpop.f32.mrf.mxu3  ;;  %v6361_v37 = vld [vmem:[%s10678_s1 + $0xbe8] sm:$0xf0]  ;;  %v6823_v8 = vld [vmem:[%s10678_s1 + $0xb14] sm:$0xf] }
 0x161   : > { %3404 = vmatpush.bf16.msra.mxu3 %v6020_v17  ;;  %v5996_v17 = vor.u32 %v6757_v45, %v5993_v58  ;;  %v3118_v42 = vadd.f32 %v3117_v60, %v3104_v34  ;;  %v6813_v45 = vld [vmem:[%s10678_s1 + $0xac4] sm:$0xf]  ;;  %v6217_v58 = vld [vmem:[%s10678_s1 + $0xac8] sm:$0xf0]  ;;  %v6369_v60 = vld [vmem:[%s10678_s1 + $0xbf8] sm:$0xf0] }
 0x162   : > { %3415 = vmatpush.bf16.msrb.mxu0 %v6108_v3  ;;  %v6084_v3 = vor.u32 %v6779_v32, %v6081_v48  ;;  %v6829_v32 = vld [vmem:[%s10678_s1 + $0xb44] sm:$0xf]  ;;  %v6281_v48 = vld [vmem:[%s10678_s1 + $0xb48] sm:$0xf0]  ;;  %v6220_v13 = vor.u32 %v6813_v45, %v6217_v58  ;;  %v6372_v34 = vor.u32 %v6851_v50, %v6369_v60 }
 0x163   : > { %3377 = vmatpush.bf16.msra.mxu1 %v5884_v24  ;;  %v6233_v24 = vld [vmem:[%s10678_s1 + $0xae8] sm:$0xf0]  ;;  %v3132_v10 = vadd.f32 %v3131_v9, %v3118_v42  ;;  %v3145_v14 = vpop.f32.mrf.mxu0  ;;  %v6284_v61 = vor.u32 %v6829_v32, %v6281_v48  ;;  %v6841_v50 = vld [vmem:[%s10678_s1 + $0xba4] sm:$0xf] }
 0x164   : > { %3391 = vmatpush.bf16.msra.mxu2 %v5948_v22  ;;  %v6833_v22 = vld [vmem:[%s10678_s1 + $0xb64] sm:$0xf]  ;;  %v6236_v0 = vor.u32 %v6817_v36, %v6233_v24  ;;  %v6201_v9 = vld [vmem:[%s10678_s1 + $0xaa8] sm:$0xf0]  ;;  %v6847_v24 = vld [vmem:[%s10678_s1 + $0xbd4] sm:$0xf] }
 0x165   : > { %3405 = vmatpush.bf16.msra.mxu3 %v6012_v38  ;;  %v6172_v38 = vor.u32 %v6801_v31, %v6169_v1  ;;  %v6809_v1 = vld [vmem:[%s10678_s1 + $0xaa4] sm:$0xf]  ;;  %v6265_v36 = vld [vmem:[%s10678_s1 + $0xb28] sm:$0xf0] }
 0x166   : > { %3416 = vmatpush.bf16.msrb.mxu0 %v6100_v47  ;;  %v3130_v47 = vadd.f32 %v9314_v5, %v3116_v23  ;;  %v6300_v5 = vor.u32 %v6833_v22, %v6297_v46  ;;  %v6148_v23 = vor.u32 %v6795_v53, %v6145_v44  ;;  %v6353_v22 = vld [vmem:[%s10678_s1 + $0xbd8] sm:$0xf0]  ;;  %v6329_v60 = vld [vmem:[%s10678_s1 + $0xba8] sm:$0xf0]  ;;  %v6839_v44 = vld [vmem:[%s10678_s1 + $0xb94] sm:$0xf] }
 0x167   : > { %3378 = vmatpush.bf16.msra.mxu1 %v5876_v19  ;;  %v6225_v19 = vld [vmem:[%s10678_s1 + $0xad8] sm:$0xf0] }
 0x168   : > { %3392 = vmatpush.bf16.msra.mxu2 %v5940_v57  ;;  %v3144_v16 = vadd.f32 %v3143_v33, %v3130_v47  ;;  %v6289_v57 = vld [vmem:[%s10678_s1 + $0xb58] sm:$0xf0]  ;;  %v6228_v40 = vor.u32 %v6815_v18, %v6225_v19  ;;  %v6060_v33 = vor.u32 %v6773_v63, %v6057_v2  ;;  %v6789_v19 = vld [vmem:[%s10678_s1 + $0xa04] sm:$0xf] }
 0x169   : > { %3406 = vmatpush.bf16.msra.mxu3 %v6004_v39  ;;  %v6797_v39 = vld [vmem:[%s10678_s1 + $0xa44] sm:$0xf]  ;;  %v6292_v27 = vor.u32 %v6831_v28, %v6289_v57  ;;  %v6337_v2 = vld [vmem:[%s10678_s1 + $0xbb8] sm:$0xf0] }
 0x16a   : > { %3417 = vmatpush.bf16.msrb.mxu0 %v6092_v25  ;;  %v6153_v25 = vld [vmem:[%s10678_s1 + $0xa48] sm:$0xf0]  ;;  %v6805_v57 = vld [vmem:[%s10678_s1 + $0xa84] sm:$0xf] }
 0x16b   : > { %3379 = vmatpush.bf16.msra.mxu1 %v5868_v21  ;;  %v6156_v21 = vor.u32 %v6797_v39, %v6153_v25  ;;  %v6821_v63 = vld [vmem:[%s10678_s1 + $0xb04] sm:$0xf]  ;;  %v6859_v39 = vld [vmem:[%s10678_s1 + $0xc34] sm:$0xf]  ;;  %v6401_v25 = vld [vmem:[%s10678_s1 + $0xc38] sm:$0xf0] }
 0x16c   : > { %3393 = vmatpush.bf16.msra.mxu2 %v5932_v62  ;;  %v6811_v62 = vld [vmem:[%s10678_s1 + $0xab4] sm:$0xf]  ;;  %v6404_v48 = vor.u32 %v6859_v39, %v6401_v25 }
 0x16d   : > { %3407 = vmatpush.bf16.msra.mxu3 %v5996_v17  ;;  %v6273_v17 = vld [vmem:[%s10678_s1 + $0xb38] sm:$0xf0]  ;;  %v6212_v42 = vor.u32 %v6811_v62, %v6209_v49 }
 0x16e   : > { %3418 = vmatpush.bf16.msrb.mxu0 %v6084_v3  ;;  %3380 = vmatmul.bf16.vlgmr.msra.gmra.mxu1 %v8058_v51  ;;  %v3146_v51 = vadd.f32 %v3145_v14, %v3132_v10  ;;  %v6849_v3 = vld [vmem:[%s10678_s1 + $0xbe4] sm:$0xf]  ;;  %v6276_v20 = vor.u32 %v6827_v52, %v6273_v17  ;;  %v6356_v10 = vor.u32 %v6847_v24, %v6353_v22  ;;  %v6345_v14 = vld [vmem:[%s10678_s1 + $0xbc8] sm:$0xf0]  ;;  %v6385_v62 = vld [vmem:[%s10678_s1 + $0xc18] sm:$0xf0] }
 0x16f   : > { %3428 = vmatpush.bf16.msrb.mxu1 %v6180_v54  ;;  %3394 = vmatmul.bf16.vlgmr.msra.gmra.mxu2 %v8071_v56  ;;  %v6793_v54 = vld [vmem:[%s10678_s1 + $0xa24] sm:$0xf]  ;;  %v6364_v31 = vor.u32 %v6849_v3, %v6361_v37 }
 0x170   : > { %3442 = vmatpush.bf16.msrb.mxu2 %v6244_v6  ;;  %3408 = vmatmul.bf16.vlgmr.msra.gmra.mxu3 %v8069_v55  ;;  %v9435_v56 = vpack.c.bf16 %v3146_v51, %v3144_v16  ;;  %v6164_v55 = vor.u32 %v6799_v43, %v6161_v4  ;;  %v6137_v6 = vld [vmem:[%s10678_s1 + $0xa28] sm:$0xf0]  ;;  %v6257_v43 = vld [vmem:[%s10678_s1 + $0xb18] sm:$0xf0]  ;;  %v6853_v17 = vld [vmem:[%s10678_s1 + $0xc04] sm:$0xf] }
 0x171   : > { %3456 = vmatpush.bf16.msrb.mxu3 %v6308_v30  ;;  %v6825_v30 = vld [vmem:[%s10678_s1 + $0xb24] sm:$0xf]  ;;  %v6140_v46 = vor.u32 %v6793_v54, %v6137_v6  ;;  %v6121_v16 = vld [vmem:[%s10678_s1 + $0xa08] sm:$0xf0]  ;;  %v6260_v51 = vor.u32 %v6823_v8, %v6257_v43 }
 0x172   : > { %3419 = vmatpush.bf16.msrb.mxu0 %v6076_v41  ;;  %3500 = vrot.lane.b32.xlu0 %v9435_v56, %s6917_s22  ;;  %v6204_v41 = vor.u32 %v6809_v1, %v6201_v9  ;;  %v6268_v47 = vor.u32 %v6825_v30, %v6265_v36 }
 0x173   : > { %3429 = vmatpush.bf16.msrb.mxu1 %v6172_v38  ;;  %v6129_v38 = vld [vmem:[%s10678_s1 + $0xa18] sm:$0xf0]  ;;  %v3185_v54 = vpop.f32.mrf.mxu3 }
 0x174   : > { %3443 = vmatpush.bf16.msrb.mxu2 %v6236_v0  ;;  %v6807_v0 = vld [vmem:[%s10678_s1 + $0xa94] sm:$0xf] }
 0x175   : > { %3457 = vmatpush.bf16.msrb.mxu3 %v6300_v5  ;;  %v6845_v5 = vld [vmem:[%s10678_s1 + $0xbc4] sm:$0xf]  ;;  %v6196_v18 = vor.u32 %v6807_v0, %v6193_v35 }
 0x176   : > { %3420 = vmatpush.bf16.msrb.mxu0 %v6068_v26  ;;  %v6348_v28 = vor.u32 %v6845_v5, %v6345_v14  ;;  %v6185_v26 = vld [vmem:[%s10678_s1 + $0xa88] sm:$0xf0] }
 0x177   : > { %3430 = vmatpush.bf16.msrb.mxu1 %v6164_v55  ;;  %v6249_v55 = vld [vmem:[%s10678_s1 + $0xb08] sm:$0xf0]  ;;  %v6188_v45 = vor.u32 %v6805_v57, %v6185_v26 }
 0x178   : > { %3444 = vmatpush.bf16.msrb.mxu2 %v6228_v40  ;;  %v6843_v40 = vld [vmem:[%s10678_s1 + $0xbb4] sm:$0xf]  ;;  %v6252_v58 = vor.u32 %v6821_v63, %v6249_v55 }
 0x179   : > { %3458 = vmatpush.bf16.msrb.mxu3 %v6292_v27  ;;  %v6124_v27 = vor.u32 %v6789_v19, %v6121_v16  ;;  %v6340_v32 = vor.u32 %v6843_v40, %v6337_v2 }
 0x17a   : > { %3421 = vmatpush.bf16.msrb.mxu0 %v6060_v33  ;;  %3573 = vrot.lane.b32.xlu0 %v9435_v56, %s6918_s14  ;;  %v6857_v33 = vld [vmem:[%s10678_s1 + $0xc24] sm:$0xf] }
 0x17b   : > { %3431 = vmatpush.bf16.msrb.mxu1 %v6156_v21  ;;  %v6393_v21 = vld [vmem:[%s10678_s1 + $0xc28] sm:$0xf0]  ;;  %v3187_v1 = vpop.f32.mrf.mxu3 }
 0x17c   : > { %3445 = vmatpush.bf16.msrb.mxu2 %v6220_v13  ;;  %v6332_v13 = vor.u32 %v6841_v50, %v6329_v60  ;;  %v6396_v53 = vor.u32 %v6857_v33, %v6393_v21 }
 0x17d   : > { %3459 = vmatpush.bf16.msrb.mxu3 %v6284_v61  ;;  %3422 = vmatmul.bf16.vlgmr.msrb.gmra.mxu0 %v8079_v59  ;;  %v6791_v59 = vld [vmem:[%s10678_s1 + $0xa14] sm:$0xf]  ;;  %v6321_v61 = vld [vmem:[%s10678_s1 + $0xb98] sm:$0xf0] }
 0x17e   : > { %3470 = vmatpush.bf16.msra.mxu0 %v6372_v34  ;;  %v6132_v4 = vor.u32 %v6791_v59, %v6129_v38  ;;  %v6855_v34 = vld [vmem:[%s10678_s1 + $0xc14] sm:$0xf]  ;;  %v6324_v49 = vor.u32 %v6839_v44, %v6321_v61 }
 0x17f   : > { %3432 = vmatpush.bf16.msrb.mxu1 %v6148_v23  ;;  %v6388_v52 = vor.u32 %v6855_v34, %v6385_v62  ;;  %v3157_v23 = vpop.f32.mrf.mxu1 }
 0x180   : > { %3446 = vmatpush.bf16.msrb.mxu2 %v6212_v42  ;;  %v3171_v42 = vpop.f32.mrf.mxu2 }
 0x181   : > { %3460 = vmatpush.bf16.msrb.mxu3 %v6276_v20  ;;  %v3199_v20 = vpop.f32.mrf.mxu0 }
 0x182   : > { %3471 = vmatpush.bf16.msra.mxu0 %v6364_v31 }
 0x183   : > { %3433 = vmatpush.bf16.msrb.mxu1 %v6140_v46 }
 0x184   : > { %3447 = vmatpush.bf16.msrb.mxu2 %v6204_v41 }
 0x185   : > { %3461 = vmatpush.bf16.msrb.mxu3 %v6268_v47 }
 0x186   : > { %3472 = vmatpush.bf16.msra.mxu0 %v6356_v10 }
 0x187   : > { %3434 = vmatpush.bf16.msrb.mxu1 %v6132_v4  ;;  %v3159_v6 = vpop.f32.mrf.mxu1 }
 0x188   : > { %3448 = vmatpush.bf16.msrb.mxu2 %v6196_v18  ;;  %v3173_v31 = vpop.f32.mrf.mxu2 }
 0x189   : > { %3462 = vmatpush.bf16.msrb.mxu3 %v6260_v51  ;;  %v3201_v30 = vpop.f32.mrf.mxu0 }
 0x18a   : > { %3473 = vmatpush.bf16.msra.mxu0 %v6348_v28 }
 0x18b   : > { %3435 = vmatpush.bf16.msrb.mxu1 %v6124_v27 }
 0x18c   : > { %3449 = vmatpush.bf16.msrb.mxu2 %v6188_v45 }
 0x18d   : > { %3463 = vmatpush.bf16.msrb.mxu3 %v6252_v58 }
 0x18e   : > { %3474 = vmatpush.bf16.msra.mxu0 %v6340_v32  ;;  %3436 = vmatmul.bf16.vlgmr.msrb.gmra.mxu1 %v8270_v7  ;;  %v6837_v7 = vld [vmem:[%s10678_s1 + $0xb84] sm:$0xf] }
 0x18f   : > { %3488 = vmatpush.bf16.msra.mxu1 %v6404_v48  ;;  %3450 = vmatmul.bf16.vlgmr.msrb.gmra.mxu2 %v8283_v12  ;;  %v6313_v12 = vld [vmem:[%s10678_s1 + $0xb88] sm:$0xf0]  ;;  %v3213_v9 = vpop.f32.mrf.mxu1 }
 0x190   : > { %3464 = vmatmul.bf16.vlgmr.msrb.gmra.mxu3 %v8281_v11  ;;  %v6377_v11 = vld [vmem:[%s10678_s1 + $0xc08] sm:$0xf0]  ;;  %v6316_v3 = vor.u32 %v6837_v7, %v6313_v12 }
 0x191   : > { %v6380_v37 = vor.u32 %v6853_v17, %v6377_v11 }
 0x192   : > { %3475 = vmatpush.bf16.msra.mxu0 %v6332_v13  ;;  %v3227_v36 = vpop.f32.mrf.mxu2 }
 0x193   : > { %3489 = vmatpush.bf16.msra.mxu1 %v6396_v53  ;;  %v3241_v24 = vpop.f32.mrf.mxu3 }
 0x196   : > { %3476 = vmatpush.bf16.msra.mxu0 %v6324_v49 }
 0x197   : > { %3490 = vmatpush.bf16.msra.mxu1 %v6388_v52  ;;  %v3215_v22 = vpop.f32.mrf.mxu1 }
 0x19a   : > { %3477 = vmatpush.bf16.msra.mxu0 %v6316_v3  ;;  %v3255_v46 = vpop.f32.mrf.mxu0  ;;  %v3229_v41 = vpop.f32.mrf.mxu2 }
 0x19b   : > { %3491 = vmatpush.bf16.msra.mxu1 %v6380_v37  ;;  %v3243_v38 = vpop.f32.mrf.mxu3 }
 0x19d   : > { %3478 = vmatmul.bf16.vlgmr.msra.gmra.mxu0 %v8291_v15  ;;  %v6896_v15 = vld [vmem:[%s10679_s2] sm:$0x3] }
 0x19e   : > { %6406 = vmatmul.msk.bf16.vlgmr.msra.gmra.mxu1 %vm2794_vm0, %v8392_v29  ;;  %v706_v29 = vperm.slane %v6896_v15, 1 }
 0x1a0   : > { %v3158_v0 = vadd.f32 %v3157_v23, %v706_v29  ;;  %v3160_v14 = vadd.f32 %v3159_v6, %v706_v29 }
 0x1a2   : > { %v3257_v47 = vpop.f32.mrf.mxu0  ;;  %v3172_v43 = vadd.f32 %v3171_v42, %v3158_v0  ;;  %v3174_v19 = vadd.f32 %v3173_v31, %v3160_v14 }
 0x1a4   : > { %v3186_v4 = vadd.f32 %v3185_v54, %v3172_v43  ;;  %v3188_v63 = vadd.f32 %v3187_v1, %v3174_v19 }
 0x1a6   : > { %v3200_v28 = vadd.f32 %v3199_v20, %v3186_v4  ;;  %v3202_v39 = vadd.f32 %v3201_v30, %v3188_v63 }
 0x1a8   : > { %v3214_v55 = vadd.f32 %v3213_v9, %v3200_v28  ;;  %v3216_v45 = vadd.f32 %v3215_v22, %v3202_v39 }
 0x1aa   : > { %v3228_v25 = vadd.f32 %v3227_v36, %v3214_v55  ;;  %v3230_v32 = vadd.f32 %v3229_v41, %v3216_v45 }
 0x1ab   : > { %v3269_v59 = vpop.f32.mrf.mxu1 }
 0x1ac   : > { %v3242_v48 = vadd.f32 %v3241_v24, %v3228_v25  ;;  %v3244_v60 = vadd.f32 %v3243_v38, %v3230_v32 }
 0x1ae   : > { %v3256_v21 = vadd.f32 %v3255_v46, %v3242_v48  ;;  %v3258_v13 = vadd.f32 %v3257_v47, %v3244_v60 }
 0x1b0   : > { %v3270_v44 = vadd.f32 %v3269_v59, %v3256_v21 }
 0x1b2   : > { %v3283_v10 = vpop.f32.mrf.mxu2 }
 0x1b3   : > { %v3297_v35 = vpop.f32.mrf.mxu3  ;;  %v3271_v8 = vpop.f32.mrf.mxu1  ;;  %v3284_v62 = vadd.f32 %v3283_v10, %v3270_v44 }
 0x1b4   : > { %v3272_v34 = vadd.f32 %v3271_v8, %v3258_v13 }
 0x1b5   : > { %v3298_v12 = vadd.f32 %v3297_v35, %v3284_v62 }
 0x1ba   : > { %v3311_v5 = vpop.f32.mrf.mxu0  ;;  %v3285_v18 = vpop.f32.mrf.mxu2 }
 0x1bb   : > { %v3299_v57 = vpop.f32.mrf.mxu3  ;;  %v3286_v49 = vadd.f32 %v3285_v18, %v3272_v34  ;;  %v3312_v11 = vadd.f32 %v3311_v5, %v3298_v12 }
 0x1bd   : > { %v3300_v17 = vadd.f32 %v3299_v57, %v3286_v49 }
 0x1c2   : > { %v3313_v40 = vpop.f32.mrf.mxu0 }
 0x1c3   : > { %v3314_v37 = vadd.f32 %v3313_v40, %v3300_v17 }
 0x1cb   : > { %v3325_v16 = vpop.f32.mrf.mxu1 }
 0x1cc   : > { %v3326_v42 = vadd.f32 %v3325_v16, %v3312_v11 }
 0x1d2   : > { %v3339_v2 = vpop.f32.mrf.mxu2 }
 0x1d3   : > { %v3353_v27 = vpop.f32.mrf.mxu3  ;;  %v3327_v58 = vpop.f32.mrf.mxu1  ;;  %v3340_v6 = vadd.f32 %v3339_v2, %v3326_v42 }
 0x1d4   : > { %v3328_v54 = vadd.f32 %v3327_v58, %v3314_v37 }
 0x1d5   : > { %v3354_v9 = vadd.f32 %v3353_v27, %v3340_v6 }
 0x1da   : > { %v3367_v50 = vpop.f32.mrf.mxu0  ;;  %v3341_v33 = vpop.f32.mrf.mxu2 }
 0x1db   : > { %v3355_v61 = vpop.f32.mrf.mxu3  ;;  %v3342_v31 = vadd.f32 %v3341_v33, %v3328_v54  ;;  %v3368_v24 = vadd.f32 %v3367_v50, %v3354_v9 }
 0x1dd   : > { %v3356_v30 = vadd.f32 %v3355_v61, %v3342_v31 }
 0x1e2   : > { %v3369_v52 = vpop.f32.mrf.mxu0 }
 0x1e3   : > { %v3370_v46 = vadd.f32 %v3369_v52, %v3356_v30 }
 0x1e4   : > { %v3501_v51 = vpop.permute.xlu0 %3500 }
 0x1e5   : > { %v3507_v26 = vsel %vm3502_vm1, %v3501_v51, 0 }
 0x1e6   : > { %3516 = vmatpush.bf16.xpose.msra.mxu2 %v3507_v26 }
 0x1eb   : > { %v3381_v53 = vpop.f32.mrf.mxu1 }
 0x1ec   : > { %v3382_v41 = vadd.f32 %v3381_v53, %v3368_v24  ;;  %v3574_v32 = vpop.permute.xlu0 %3573 }
 0x1ed   : > { %6407 = vmatmul.msk.bf16.vlgmr.msra.gmra.mxu2 %vm3502_vm1, %v9435_v56 }
 0x1f2   : > { %v3395_v7 = vpop.f32.mrf.mxu2 }
 0x1f3   : > { %v3409_v3 = vpop.f32.mrf.mxu3  ;;  %v3383_v23 = vpop.f32.mrf.mxu1  ;;  %v3396_v38 = vadd.f32 %v3395_v7, %v3382_v41 }
 0x1f4   : > { %v3384_v59 = vadd.f32 %v3383_v23, %v3370_v46 }
 0x1f5   : > { %v3410_v0 = vadd.f32 %v3409_v3, %v3396_v38 }
 0x1fa   : > { %v3423_v20 = vpop.f32.mrf.mxu0  ;;  %v3397_v1 = vpop.f32.mrf.mxu2 }
 0x1fb   : > { %v3411_v22 = vpop.f32.mrf.mxu3  ;;  %v3398_v29 = vadd.f32 %v3397_v1, %v3384_v59  ;;  %v3424_v43 = vadd.f32 %v3423_v20, %v3410_v0 }
 0x1fd   : > { %v3412_v8 = vadd.f32 %v3411_v22, %v3398_v29 }
 0x202   : > { %v3425_v15 = vpop.f32.mrf.mxu0 }
 0x203   : > { %v3426_v5 = vadd.f32 %v3425_v15, %v3412_v8 }
 0x20b   : > { %v3437_v36 = vpop.f32.mrf.mxu1 }
 0x20c   : > { %v3438_v14 = vadd.f32 %v3437_v36, %v3424_v43 }
 0x212   : > { %v3451_v47 = vpop.f32.mrf.mxu2 }
 0x213   : > { %v3439_v10 = vpop.f32.mrf.mxu1  ;;  %v3465_v35 = vpop.f32.mrf.mxu3  ;;  %v3452_v16 = vadd.f32 %v3451_v47, %v3438_v14  ;;  %v6861_v14 = vld [vmem:[%s10680_s3] sm:$0xff] }
 0x214   : > { %v3440_v18 = vadd.f32 %v3439_v10, %v3426_v5  ;;  %v6862_v5 = vld [vmem:[%s10680_s3 + $0x8] sm:$0xff] }
 0x215   : > { %v3466_v57 = vadd.f32 %v3465_v35, %v3452_v16 }
 0x21a   : > { %v3479_v4 = vpop.f32.mrf.mxu0  ;;  %v3453_v19 = vpop.f32.mrf.mxu2 }
 0x21b   : > { %v3454_v51 = vadd.f32 %v3453_v19, %v3440_v18  ;;  %v3493_v28 = vpop.f32.mrf.mxu1  ;;  %v3467_v26 = vpop.f32.mrf.mxu3  ;;  %v3480_v55 = vadd.f32 %v3479_v4, %v3466_v57  ;;  %v6864_v4 = vld [vmem:[%s10680_s3 + $0x18] sm:$0xff]  ;;  %v6863_v18 = vld [vmem:[%s10680_s3 + $0x10] sm:$0xff] }
 0x21c   : > { %3665 = vmatpush.bf16.msrb.mxu2 %v6864_v4 }
 0x21d   : > { %v3468_v63 = vadd.f32 %v3467_v26, %v3454_v51  ;;  %v3494_v25 = vadd.f32 %v3493_v28, %v3480_v55 }
 0x220   : > { %3666 = vmatpush.bf16.msrb.mxu2 %v6863_v18 }
 0x222   : > { %v3481_v40 = vpop.f32.mrf.mxu0 }
 0x223   : > { %v3482_v2 = vadd.f32 %v3481_v40, %v3468_v63  ;;  %v3495_v39 = vpop.f32.mrf.mxu1  ;;  %v6920_v63 = vmov 0.0   ;;  %v6878_v40 = vld [vmem:[%s10681_s4] ss:$0 sm:$0xff] }
 0x224   : > { %3709 = vst.msk [vmem:[#allocation2] sm:$0x3f] %vm3708_vm3, %v6920_v63 }
 0x225   : > { %v3496_v27 = vadd.f32 %v3495_v39, %v3482_v2  ;;  %3710 = vst.msk [vmem:[#allocation2 + $0x8] sm:$0x3f] %vm3708_vm3, %v6920_v63 }
 0x226   : > { %3711 = vst.msk [vmem:[#allocation2 + $0x10] sm:$0x3f] %vm3708_vm3, %v6920_v63 }
 0x227   : > { %v3572_v45 = vpack.c.bf16 %v3496_v27, %v3494_v25  ;;  %3714 = vst.msk [vmem:[#allocation2 + $0x28] sm:$0x3f] %vm3708_vm3, %v6920_v63  ;;  %v9653_v27 = vld [vmem:[%s10682_s5 + $0x18] sm:$0xff] }
 0x228   : > { %3712 = vst.msk [vmem:[#allocation2 + $0x18] sm:$0x3f] %vm3708_vm3, %v6920_v63 }
 0x229   : > { %v3579_v58 = vsel %vm3502_vm1, %v3572_v45, 0  ;;  %3713 = vst.msk [vmem:[#allocation2 + $0x20] sm:$0x3f] %vm3708_vm3, %v6920_v63 }
 0x22a   : > { %3588 = vmatpush.bf16.xpose.msrb.mxu0 %v3579_v58  ;;  %10781 = vst [vmem:[#allocation3_spill] sm:$0xff] %v9653_v27  ;;  %v9663_v58 = vld [vmem:[%s10682_s5 + $0x10] sm:$0xff] }
 0x22b   : > { %10783 = vst [vmem:[#allocation5_spill] sm:$0xff] %v9663_v58 }
 0x231   : > { %6409 = vmatmul.msk.bf16.vlgmr.msrb.gmra.mxu0 %vm3502_vm1, %v3574_v32  ;;  %v9669_v32 = vld [vmem:[%s10682_s5 + $0x30] sm:$0xff] }
 0x232   : > { %10784 = vst [vmem:[#allocation6_spill] sm:$0xff] %v9669_v32 }
 0x270   : > { %v3518_v48 = vpop.f32.mrf.mxu2 }
 0x271   : > { %v3524_v50 = vsel %vm3523_vm2, %v3518_v48, -inf }
 0x272   : > { %3525 = vmax.xlane.f32.xlu1 %v3524_v50  ;;  %v9676_v50 = vperm.slane %v9653_v27, 7 }
 0x278   : > { %v3520_v60 = vpop.f32.mrf.mxu2 }
 0x279   : > { %v3527_v33 = vsel %vm3523_vm2, %v3520_v60, -inf }
 0x27a   : > { %3528 = vmax.xlane.f32.xlu1 %v3527_v33 }
 0x2ae   : > { %v3590_v21 = vpop.f32.mrf.mxu0 }
 0x2af   : > { %v3595_v13 = vsel %vm3523_vm2, %v3590_v21, -inf }
 0x2b0   : > { %3596 = vmax.xlane.f32.xlu2 %v3595_v13  ;;  %v9690_v13 = vld [vmem:[%s10682_s5] sm:$0xff] }
 0x2b1   : > { %10785 = vst [vmem:[#allocation7_spill] sm:$0xff] %v9690_v13 }
 0x2b6   : > { %v3592_v53 = vpop.f32.mrf.mxu0 }
 0x2b7   : > { %v3598_v44 = vsel %vm3523_vm2, %v3592_v53, -inf }
 0x2b8   : > { %3599 = vmax.xlane.f32.xlu2 %v3598_v44 }
 0x2e5   : > { %v3526_v61 = vpop.xlane.xlu1 %3525 }
 0x2e6   : > { %v3530_v34 = vsub.f32 %v3518_v48, %v3526_v61  ;;  %v9673_v48 = vperm.slane %v9653_v27, 3 }
 0x2e8   : > { %v3532_v62 = vmul.f32 1.442695, %v3530_v34  ;;  %v9698_v34 = vperm.slane %v9663_v58, 7 }
 0x2ea   : > { %6880 = vpow2.f32 %v3532_v62  ;;  %v9701_v62 = vperm.slane %v9669_v32, 3 }
 0x2ed   : > { %v3529_v11 = vpop.xlane.xlu1 %3528 }
 0x2ee   : > { %v3531_v42 = vsub.f32 %v3520_v60, %v3529_v11  ;;  %v9715_v11 = vperm.slane %v9669_v32, 5 }
 0x2f0   : > { %v6881_v49 = vpop.eup %6880  ;;  %v3534_v20 = vmul.f32 1.442695, %v3531_v42  ;;  %v9727_v42 = vperm.slane %v9690_v13, 5 }
 0x2f1   : > { %v3536_v52 = vsel %vm3523_vm2, %v6881_v49, 0.0 }
 0x2f2   : > { %3537 = vadd.xlane.f32.xlu0 %v3536_v52  ;;  %v9707_v52 = vperm.slane %v9663_v58, 5 }
 0x323   : > { %v3597_v7 = vpop.xlane.xlu2 %3596 }
 0x324   : > { %v3601_v12 = vsub.f32 %v3590_v21, %v3597_v7  ;;  %v9685_v21 = vperm.slane %v9663_v58, 3 }
 0x326   : > { %v3603_v17 = vmul.f32 1.442695, %v3601_v12  ;;  %v9709_v12 = vld [vmem:[#allocation2 + $0x1] sm:$0xf] }
 0x327   : > { %10787 = vst [vmem:[#allocation9_spill] sm:$0xff] %v9709_v12 }
 0x328   : > { %6882 = vpow2.f32 %v3603_v17  ;;  %v9712_v17 = vperm.slane %v9663_v58, 1 }
 0x32b   : > { %v3600_v3 = vpop.xlane.xlu2 %3599 }
 0x32c   : > { %v3602_v37 = vsub.f32 %v3592_v53, %v3600_v3  ;;  %v9695_v53 = vld [vmem:[%s10682_s5 + $0x20] sm:$0xff]  ;;  %v9718_v3 = vperm.slane %v9669_v32, 1 }
 0x32d   : > { %10786 = vst [vmem:[#allocation8_spill] sm:$0xff] %v9695_v53  ;;  %v9798_v63 = vperm.slane %v9695_v53, 7 }
 0x32e   : > { %v6883_v23 = vpop.eup %6882  ;;  %v3605_v54 = vmul.f32 1.442695, %v3602_v37  ;;  %v9721_v37 = vperm.slane %v9695_v53, 5 }
 0x32f   : > { %v3607_v6 = vsel %vm3523_vm2, %v6883_v23, 0.0  ;;  %10794 = vst [vmem:[#allocation16_spill] sm:$0xff] %v9798_v63 }
 0x330   : > { %6884 = vpow2.f32 %v3605_v54  ;;  %3608 = vadd.xlane.f32.xlu2 %v3607_v6  ;;  %v9730_v54 = vperm.slane %v9690_v13, 1 }
 0x331   : > { %6886 = vpow2.f32 %v3534_v20  ;;  %v9732_v20 = vld [vmem:[#allocation2] sm:$0xf] }
 0x332   : > { %10788 = vst [vmem:[#allocation10_spill] sm:$0xff] %v9732_v20 }
 0x336   : > { %v6885_v31 = vpop.eup %6884 }
 0x337   : > { %v3610_v1 = vsel %vm3523_vm2, %v6885_v31, 0.0  ;;  %v6887_v9 = vpop.eup %6886 }
 0x338   : > { %3611 = vadd.xlane.f32.xlu1 %v3610_v1  ;;  %v3539_v30 = vsel %vm3523_vm2, %v6887_v9, 0.0  ;;  %v9738_v1 = vperm.slane %v9653_v27, 1 }
 0x340   : > { %3540 = vadd.xlane.f32.xlu1 %v3539_v30 }
 0x348   : > { %3547 = vrot.lane.b32.xlu2 %v9435_v56, %s6919_s26 }
 0x359   : > { %3619 = vrot.lane.b32.xlu1 %v3572_v45, %s6917_s22  ;;  %v9658_v45 = vld [vmem:[%s10682_s5 + $0x38] sm:$0xff] }
 0x35a   : > { %10782 = vst [vmem:[#allocation4_spill] sm:$0xff] %v9658_v45  ;;  %v9679_v60 = vperm.slane %v9658_v45, 3  ;;  %v9682_v33 = vperm.slane %v9658_v45, 7 }
 0x365   : > { %v3538_v46 = vpop.xlane.xlu0 %3537 }
 0x366   : > { %6888 = vrcp.f32 %v3538_v46  ;;  %v9752_v46 = vperm.slane %v9658_v45, 1 }
 0x36c   : > { %v6889_v59 = vpop.eup %6888 }
 0x36d   : > { %v3544_v15 = vmul.f32 %v6889_v59, %v6881_v49  ;;  %v9704_v49 = vperm.slane %v9669_v32, 7 }
 0x3a3   : > { %v3609_v36 = vpop.xlane.xlu2 %3608 }
 0x3ab   : > { %v3612_v24 = vpop.xlane.xlu1 %3611  ;;  %v3548_v22 = vpop.permute.xlu2 %3547 }
 0x3ac   : > { %3560 = vmatpush.bf16.msra.mxu3 %v3548_v22  ;;  %v3832_v22 = vmul.f32 %v9701_v62, %v9709_v12 }
 0x3b0   : > { %3694 = vmatpush.bf16.msrb.mxu3 %v6862_v5 }
 0x3b3   : > { %v3541_v41 = vpop.xlane.xlu1 %3540 }
 0x3b4   : > { %6890 = vrcp.f32 %v3541_v41  ;;  %3695 = vmatpush.bf16.msrb.mxu3 %v6861_v14  ;;  %v9755_v41 = vperm.slane %v9695_v53, 3 }
 0x3b5   : > { %6892 = vrcp.f32 %v3612_v24  ;;  %v4057_v24 = vmul.f32 %v9679_v60, %v9709_v12 }
 0x3b6   : > { %6894 = vrcp.f32 %v3609_v36 }
 0x3ba   : > { %v6891_v38 = vpop.eup %6890 }
 0x3bb   : > { %v3545_v29 = vmul.f32 %v6891_v38, %v6887_v9  ;;  %v6893_v56 = vpop.eup %6892  ;;  %v9741_v9 = vperm.slane %v9658_v45, 5 }
 0x3bc   : > { %v6895_v10 = vpop.eup %6894  ;;  %v3616_v0 = vmul.f32 %v6893_v56, %v6885_v31  ;;  %v9735_v31 = vperm.slane %v9653_v27, 5 }
 0x3bd   : > { %v3546_v47 = vpack.c.bf16 %v3545_v29, %v3544_v15  ;;  %v3615_v35 = vmul.f32 %v6895_v10, %v6883_v23  ;;  %v9724_v23 = vperm.slane %v9695_v53, 1  ;;  %v4066_v10 = vmul.f32 %v9682_v33, %v9732_v20  ;;  %v9864_v53 = vld [vmem:[#allocation2 + $0x2] sm:$0xf] }
 0x3be   : > { %10800 = vst [vmem:[#allocation22_spill] sm:$0xff] %v9864_v53  ;;  %v3921_v32 = vmul.f32 %v9718_v3, %v9864_v53 }
 0x3bf   : > { %6408 = vmatmul.msk.bf16.vlgmr.msra.gmra.mxu3 %vm3523_vm2, %v3546_v47  ;;  %v3617_v43 = vpack.c.bf16 %v3616_v0, %v3615_v35  ;;  %v3841_v0 = vmul.f32 %v9704_v49, %v9732_v20 }
 0x3cb   : > { %v3620_v8 = vpop.permute.xlu1 %3619 }
 0x3cc   : > { %3632 = vmatpush.bf16.msrb.mxu1 %v3620_v8 }
 0x3cf   : > { %6410 = vmatmul.msk.bf16.vlgmr.msrb.gmra.mxu1 %vm3523_vm2, %v3617_v43 }
 0x442   : > { %v3562_v19 = vpop.f32.mrf.mxu3 }
 0x44a   : > { %v3564_v16 = vpop.f32.mrf.mxu3 }
 0x44b   : > { %v3567_v51 = vpack.c.bf16 %v3564_v16, %v3562_v19 }
 0x44c   : > { %v3634_v28 = vpop.f32.mrf.mxu1 }
 0x44d   : > { %6428 = vmatmul.msk.bf16.vlgmr.msrb.gmra.mxu3 %vm3502_vm1, %v3567_v51 }
 0x454   : > { %v3636_v57 = vpop.f32.mrf.mxu1 }
 0x455   : > { %v3639_v26 = vpack.c.bf16 %v3636_v57, %v3634_v28 }
 0x457   : > { %6419 = vmatmul.msk.bf16.vlgmr.msrb.gmra.mxu2 %vm3502_vm1, %v3639_v26 }
 0x4d0   : > { %v3697_v55 = vpop.f32.mrf.mxu3 }
 0x4d8   : > { %v3699_v44 = vpop.f32.mrf.mxu3 }
 0x4da   : > { %v3668_v2 = vpop.f32.mrf.mxu2 }
 0x4db   : > { %v3698_v39 = vadd.f32 %v3697_v55, %v3668_v2  ;;  %v9803_v55 = vld [vmem:[%s10683_s6] ss:$0 sm:$0xff] }
 0x4dd   : > { %v3706_v25 = vadd.f32 %v6878_v40, %v3698_v39 }
 0x4df   : > { %3717 = vst.msk [vmem:[#allocation2 + $0x9] sm:$0xf] %vm3716_vm4, %v3706_v25 }
 0x4e0   : > { %3720 = vst.msk [vmem:[#allocation2 + $0xd] sm:$0xf0] %vm3719_vm5, %v3706_v25 }
 0x4e2   : > { %v3670_v61 = vpop.f32.mrf.mxu2 }
 0x4e3   : > { %v3700_v7 = vadd.f32 %v3699_v44, %v3670_v61 }
 0x4e5   : > { %v3707_v6 = vadd.f32 %v6878_v40, %v3700_v7 }
 0x4e6   : > { %v9743_v30 = vld [vmem:[#allocation2 + $0x9] sm:$0xf] }
 0x4e7   : > { %v9745_v36 = vld [vmem:[#allocation2 + $0x8] sm:$0xf]  ;;  %v9757_v59 = vld [vmem:[#allocation2 + $0x11] sm:$0xf]  ;;  %3722 = vst.msk [vmem:[#allocation2 + $0x19] sm:$0xf] %vm3716_vm4, %v3707_v6  ;;  %v4039_v38 = vmul.f32 %v9673_v48, %v9743_v30  ;;  %v3814_v29 = vmul.f32 %v9685_v21, %v9743_v30  ;;  %v4344_v5 = vmul.f32 %v9721_v37, %v9743_v30  ;;  %v3894_v45 = vmul.f32 %v9707_v52, %v9743_v30 }
 0x4e8   : > { %10789 = vst [vmem:[#allocation11_spill] sm:$0xff] %v9745_v36  ;;  %v4048_v15 = vmul.f32 %v9676_v50, %v9745_v36  ;;  %v3823_v47 = vmul.f32 %v9698_v34, %v9745_v36  ;;  %v9768_v56 = vld [vmem:[#allocation2 + $0x9] sm:$0xf]  ;;  %v9775_v35 = vld [vmem:[#allocation2 + $0x12] sm:$0xf]  ;;  %v3895_v8 = vmul.f32 %v9707_v52, %v9757_v59  ;;  %v4120_v57 = vmul.f32 %v9735_v31, %v9757_v59 }
 0x4e9   : > { %10790 = vst [vmem:[#allocation12_spill] sm:$0xff] %v9768_v56  ;;  %v9779_v43 = vld [vmem:[#allocation2 + $0xa] sm:$0xf]  ;;  %v3904_v19 = vmul.f32 %v9712_v17, %v9775_v35  ;;  %v9787_v16 = vld [vmem:[#allocation2 + $0x11] sm:$0xf]  ;;  %v3913_v28 = vmul.f32 %v9715_v11, %v9768_v56  ;;  %v4129_v26 = vmul.f32 %v9738_v1, %v9775_v35 }
 0x4ea   : > { %3724 = vst.msk [vmem:[#allocation2 + $0x1d] sm:$0xf0] %vm3719_vm5, %v3707_v6  ;;  %v4052_v14 = vadd.f32 %v4048_v15, %v4039_v38  ;;  %v3827_v4 = vadd.f32 %v3823_v47, %v3814_v29  ;;  %v9783_v18 = vld [vmem:[#allocation2 + $0xa] sm:$0xf]  ;;  %v4353_v51 = vmul.f32 %v9724_v23, %v9779_v43  ;;  %v9805_v44 = vld [vmem:[#allocation2 + $0x10] sm:$0xf]  ;;  %v4362_v7 = vmul.f32 %v9727_v42, %v9787_v16 }
 0x4eb   : > { %10791 = vst [vmem:[#allocation13_spill] sm:$0xff] %v9779_v43  ;;  %v3908_v39 = vadd.f32 %v3904_v19, %v3895_v8  ;;  %v3922_v61 = vmul.f32 %v9718_v3, %v9783_v18  ;;  %v4133_v6 = vadd.f32 %v4129_v26, %v4120_v57  ;;  %v3815_v38 = vmul.f32 %v9685_v21, %v9757_v59 }
 0x4ec   : > { %10792 = vst [vmem:[#allocation14_spill] sm:$0xff] %v9783_v18  ;;  %v4061_v40 = vadd.f32 %v4057_v24, %v4052_v14  ;;  %v3836_v2 = vadd.f32 %v3832_v22, %v3827_v4  ;;  %v4357_v25 = vadd.f32 %v4353_v51, %v4344_v5  ;;  %v4138_v24 = vmul.f32 %v9741_v9, %v9768_v56  ;;  %v9815_v22 = vld [vmem:[#allocation2 + $0x12] sm:$0xf]  ;;  %v9825_v4 = vld [vmem:[%s10682_s5 + $0x28] sm:$0xff] }
 0x4ed   : > { %10793 = vst [vmem:[#allocation15_spill] sm:$0xff] %v9787_v16  ;;  %v3917_v47 = vadd.f32 %v3913_v28, %v3908_v39  ;;  %v3824_v5 = vmul.f32 %v9698_v34, %v9805_v44  ;;  %v9820_v14 = vperm.slane %v9690_v13, 3  ;;  %v9829_v28 = vld [vmem:[#allocation2 + $0x8] sm:$0xf]  ;;  %v4274_v39 = vmul.f32 %v9798_v63, %v9805_v44 }
 0x4ee   : > { %v4070_v15 = vadd.f32 %v4066_v10, %v4061_v40  ;;  %v3845_v29 = vadd.f32 %v3841_v0, %v3836_v2  ;;  %10795 = vst [vmem:[#allocation17_spill] sm:$0xff] %v9815_v22  ;;  %v4366_v8 = vadd.f32 %v4362_v7, %v4357_v25  ;;  %v4142_v51 = vadd.f32 %v4138_v24, %v4133_v6  ;;  %v9831_v57 = vld [vmem:[#allocation2 + $0x19] sm:$0xf] }
 0x4ef   : > { %10796 = vst [vmem:[#allocation18_spill] sm:$0xff] %v9820_v14  ;;  %v3926_v19 = vadd.f32 %v3922_v61, %v3917_v47  ;;  %v3828_v26 = vadd.f32 %v3824_v5, %v3815_v38  ;;  %v3833_v40 = vmul.f32 %v9701_v62, %v9768_v56  ;;  %v4265_v2 = vmul.f32 %v9755_v41, %v9757_v59  ;;  %v9870_v27 = vld [vmem:[#allocation2 + $0x18] sm:$0xf] }
 0x4f0   : > { %10797 = vst [vmem:[#allocation19_spill] sm:$0xff] %v9825_v4  ;;  %v4074_v10 = vadd.f32 %v9803_v55, %v4070_v15  ;;  %v3849_v0 = vadd.f32 %v9803_v55, %v3845_v29  ;;  %v4371_v61 = vmul.f32 %v9730_v54, %v9815_v22  ;;  %v4147_v7 = vmul.f32 %v9752_v46, %v9783_v18 }
 0x4f1   : > { %10798 = vst [vmem:[#allocation20_spill] sm:$0xff] %v9829_v28  ;;  %v3930_v25 = vadd.f32 %v9803_v55, %v3926_v19  ;;  %v9847_v6 = vperm.slane %v9825_v4, 3  ;;  %v9849_v38 = vld [vmem:[#allocation2 + $0x21] sm:$0xf]  ;;  %v3837_v15 = vadd.f32 %v3833_v40, %v3828_v26  ;;  %v3842_v29 = vmul.f32 %v9704_v49, %v9829_v28 }
 0x4f2   : > { %4162 = vrot.lane.b32.xlu0 %v4074_v10, %s6919_s26  ;;  %3937 = vrot.lane.b32.xlu2 %v3849_v0, %s6919_s26  ;;  %v4283_v47 = vmul.f32 %v9820_v14, %v9831_v57  ;;  %v3912_v24 = vmul.f32 %v9715_v11, %v9709_v12  ;;  %v9857_v5 = vld [vmem:[#allocation2 + $0x20] sm:$0xf]  ;;  %v4375_v10 = vadd.f32 %v4371_v61, %v4366_v8  ;;  %v9877_v61 = vperm.slane %v9825_v4, 7 }
 0x4f3   : > { %10799 = vst [vmem:[#allocation21_spill] sm:$0xff] %v9857_v5  ;;  %3955 = vrot.lane.b32.xlu1 %v3930_v25, %s6919_s26  ;;  %v4151_v0 = vadd.f32 %v4147_v7, %v4142_v51  ;;  %v4264_v19 = vmul.f32 %v9755_v41, %v9743_v30  ;;  %v4273_v26 = vmul.f32 %v9798_v63, %v9745_v36  ;;  %v9893_v63 = vld [vmem:[#allocation2 + $0x19] sm:$0xf] }
 0x4f4   : > { %v3846_v40 = vadd.f32 %v3842_v29, %v3837_v15  ;;  %v4278_v18 = vadd.f32 %v4274_v39, %v4265_v2  ;;  %v3903_v20 = vmul.f32 %v9712_v17, %v9779_v43  ;;  %10801 = vst [vmem:[#allocation23_spill] sm:$0xff] %v9870_v27  ;;  %v3817_v51 = vmul.f32 %v9685_v21, %v9849_v38 }
 0x4f5   : > { %v4277_v8 = vadd.f32 %v4273_v26, %v4264_v19  ;;  %v3826_v25 = vmul.f32 %v9698_v34, %v9857_v5  ;;  %v9880_v39 = vperm.slane %v9690_v13, 7  ;;  %v4282_v7 = vmul.f32 %v9820_v14, %v9787_v16  ;;  %v9886_v26 = vld [vmem:[#allocation2 + $0x10] sm:$0xf]  ;;  %10804 = vst [vmem:[#allocation26_spill] sm:$0xff] %v9893_v63 }
 0x4f6   : > { %v4287_v2 = vadd.f32 %v4283_v47, %v4278_v18  ;;  %v3907_v15 = vadd.f32 %v3903_v20, %v3894_v45  ;;  %v4379_v29 = vadd.f32 %v9803_v55, %v4375_v10  ;;  %v3850_v19 = vadd.f32 %v9803_v55, %v3846_v40  ;;  %10803 = vst [vmem:[#allocation25_spill] sm:$0xff] %v9886_v26  ;;  %v9898_v45 = vld [vmem:[%s10682_s5 + $0x8] sm:$0xff] }
 0x4f7   : > { %10802 = vst [vmem:[#allocation24_spill] sm:$0xff] %v9880_v39  ;;  %v4155_v58 = vadd.f32 %v9803_v55, %v4151_v0  ;;  %v4292_v18 = vmul.f32 %v9880_v39, %v9870_v27  ;;  %v4286_v47 = vadd.f32 %v4282_v7, %v4277_v8  ;;  %v3830_v20 = vadd.f32 %v3826_v25, %v3817_v51  ;;  %v9913_v51 = vld [vmem:[#allocation2 + $0x18] sm:$0xf] }
 0x4f8   : > { %v3916_v13 = vadd.f32 %v3912_v24, %v3907_v15  ;;  %10805 = vst [vmem:[#allocation27_spill] sm:$0xff] %v9898_v45  ;;  %v4489_v10 = vmul.f32 %v9847_v6, %v9743_v30  ;;  %v4498_v0 = vmul.f32 %v9877_v61, %v9745_v36  ;;  %v4291_v24 = vmul.f32 %v9880_v39, %v9886_v26 }
 0x4f9   : > { %v4296_v40 = vadd.f32 %v4292_v18, %v4287_v2  ;;  %v4040_v8 = vmul.f32 %v9673_v48, %v9757_v59  ;;  %v4049_v7 = vmul.f32 %v9676_v50, %v9805_v44  ;;  %10806 = vst [vmem:[#allocation28_spill] sm:$0xff] %v9913_v51  ;;  %v3835_v25 = vmul.f32 %v9701_v62, %v9893_v63 }
 0x4fa   : > { %4403 = vrot.lane.b32.xlu0 %v4379_v29, %s6919_s26  ;;  %3939 = vrot.lane.b32.xlu2 %v3850_v19, %s6919_s26  ;;  %v3925_v15 = vadd.f32 %v3921_v32, %v3916_v13  ;;  %v9918_v29 = vperm.slane %v9898_v45, 3  ;;  %v4295_v2 = vadd.f32 %v4291_v24, %v4286_v47  ;;  %v9921_v19 = vperm.slane %v9898_v45, 7 }
 0x4fb   : > { %4180 = vrot.lane.b32.xlu1 %v4155_v58, %s6919_s26  ;;  %v4053_v18 = vadd.f32 %v4049_v7, %v4040_v8  ;;  %v9924_v36 = vperm.slane %v9825_v4, 5  ;;  %v3839_v39 = vadd.f32 %v3835_v25, %v3830_v20  ;;  %v4502_v27 = vadd.f32 %v4498_v0, %v4489_v10 }
 0x4fc   : > { %10807 = vst [vmem:[#allocation29_spill] sm:$0xff] %v9918_v29  ;;  %v4058_v58 = vmul.f32 %v9679_v60, %v9768_v56  ;;  %v9929_v32 = vperm.slane %v9825_v4, 1  ;;  %v4300_v13 = vadd.f32 %v9803_v55, %v4296_v40  ;;  %v3844_v47 = vmul.f32 %v9704_v49, %v9913_v51 }
 0x4fd   : > { %10808 = vst [vmem:[#allocation30_spill] sm:$0xff] %v9921_v19  ;;  %v4042_v24 = vmul.f32 %v9673_v48, %v9849_v38  ;;  %v4051_v8 = vmul.f32 %v9676_v50, %v9857_v5  ;;  %v3929_v20 = vadd.f32 %v9803_v55, %v3925_v15  ;;  %v4507_v10 = vmul.f32 %v9918_v29, %v9787_v16  ;;  %v9957_v29 = vld [vmem:[#allocation2 + $0x19] sm:$0xf] }
 0x4fe   : > { %v4062_v0 = vadd.f32 %v4058_v58, %v4053_v18  ;;  %v4119_v7 = vmul.f32 %v9735_v31, %v9743_v30  ;;  %v4299_v40 = vadd.f32 %v9803_v55, %v4295_v2  ;;  %v4128_v25 = vmul.f32 %v9738_v1, %v9779_v43 }
 0x4ff   : > { %v3848_v4 = vadd.f32 %v3844_v47, %v3839_v39  ;;  %v4511_v56 = vadd.f32 %v4507_v10, %v4502_v27  ;;  %v4067_v15 = vmul.f32 %v9682_v33, %v9829_v28  ;;  %v4055_v14 = vadd.f32 %v4051_v8, %v4042_v24  ;;  %v9964_v24 = vld [vmem:[#allocation2 + $0x1a] sm:$0xf] }
 0x500   : > { %v4570_v18 = vmul.f32 %v9924_v36, %v9757_v59  ;;  %v4579_v58 = vmul.f32 %v9929_v32, %v9775_v35  ;;  %v9955_v2 = vperm.slane %v9898_v45, 5  ;;  %v4516_v27 = vmul.f32 %v9921_v19, %v9886_v26  ;;  %v9973_v26 = vld [vmem:[#allocation2 + $0x18] sm:$0xf] }
 0x501   : > { %v4071_v39 = vadd.f32 %v4067_v15, %v4062_v0  ;;  %v4137_v47 = vmul.f32 %v9741_v9, %v9709_v12  ;;  %v4060_v8 = vmul.f32 %v9679_v60, %v9893_v63  ;;  %v3852_v10 = vadd.f32 %v9803_v55, %v3848_v4  ;;  %10809 = vst [vmem:[#allocation31_spill] sm:$0xff] %v9973_v26  ;;  %v9980_v19 = vld [vmem:[#allocation2 + $0x1a] sm:$0xf] }
 0x502   : > { %4389 = vrot.lane.b32.xlu0 %v4300_v13, %s6919_s26  ;;  %3953 = vrot.lane.b32.xlu2 %v3929_v20, %s6919_s26  ;;  %v4132_v13 = vadd.f32 %v4128_v25, %v4119_v7  ;;  %v4588_v20 = vmul.f32 %v9955_v2, %v9831_v57  ;;  %v4520_v28 = vadd.f32 %v4516_v27, %v4511_v56 }
 0x503   : > { %4387 = vrot.lane.b32.xlu1 %v4299_v40, %s6919_s26  ;;  %v4146_v40 = vmul.f32 %v9752_v46, %v9864_v53  ;;  %v4064_v0 = vadd.f32 %v4060_v8, %v4055_v14  ;;  %v4583_v7 = vadd.f32 %v4579_v58, %v4570_v18  ;;  %v4121_v25 = vmul.f32 %v9735_v31, %v9957_v29  ;;  %v10000_v8 = vld [vmem:[#allocation2 + $0x11] sm:$0xf] }
 0x504   : > { %v4130_v15 = vmul.f32 %v9738_v1, %v9964_v24  ;;  %v4075_v12 = vadd.f32 %v9803_v55, %v4071_v39  ;;  %v4141_v5 = vadd.f32 %v4137_v47, %v4132_v13  ;;  %v4569_v56 = vmul.f32 %v9924_v36, %v9743_v30  ;;  %10810 = vst [vmem:[#allocation32_spill] sm:$0xff] %v10000_v8 }
 0x505   : > { %v4578_v4 = vmul.f32 %v9929_v32, %v9779_v43  ;;  %v4592_v27 = vadd.f32 %v4588_v20, %v4583_v7  ;;  %v9987_v14 = vperm.slane %v9898_v45, 1  ;;  %v3816_v18 = vmul.f32 %v9685_v21, %v9957_v29  ;;  %v10002_v20 = vld [vmem:[#allocation2 + $0x22] sm:$0xf]  ;;  %v10005_v7 = vld [vmem:[#allocation2 + $0x12] sm:$0xf] }
 0x506   : > { %v3825_v58 = vmul.f32 %v9698_v34, %v9973_v26  ;;  %v4524_v39 = vadd.f32 %v9803_v55, %v4520_v28  ;;  %v4069_v13 = vmul.f32 %v9682_v33, %v9913_v51  ;;  %v4150_v34 = vadd.f32 %v4146_v40, %v4141_v5  ;;  %10811 = vst [vmem:[#allocation33_spill] sm:$0xff] %v10005_v7 }
 0x507   : > { %v4597_v47 = vmul.f32 %v9987_v14, %v9980_v19  ;;  %v4582_v28 = vadd.f32 %v4578_v4, %v4569_v56  ;;  %v4139_v51 = vmul.f32 %v9741_v9, %v10000_v8  ;;  %v4587_v53 = vmul.f32 %v9955_v2, %v9787_v16 }
 0x508   : > { %v4073_v21 = vadd.f32 %v4069_v13, %v4064_v0  ;;  %v4347_v43 = vmul.f32 %v9721_v37, %v9849_v38  ;;  %v4148_v5 = vmul.f32 %v9752_v46, %v10005_v7  ;;  %v3834_v40 = vmul.f32 %v9701_v62, %v10000_v8  ;;  %v10019_v0 = vld [vmem:[#allocation2 + $0x29] sm:$0xf] }
 0x509   : > { %v4601_v45 = vadd.f32 %v4597_v47, %v4592_v27  ;;  %10812 = vst [vmem:[#allocation34_spill] sm:$0xff] %v10019_v0  ;;  %v4154_v4 = vadd.f32 %v9803_v55, %v4150_v34  ;;  %v4345_v62 = vmul.f32 %v9721_v37, %v9757_v59  ;;  %v4354_v16 = vmul.f32 %v9724_v23, %v9775_v35  ;;  %v10042_v34 = vld [vmem:[#allocation2 + $0x2a] sm:$0xf] }
 0x50a   : > { %3943 = vrot.lane.b32.xlu0 %v3852_v10, %s6919_s26  ;;  %4164 = vrot.lane.b32.xlu2 %v4075_v12, %s6919_s26  ;;  %v4134_v10 = vadd.f32 %v4130_v15, %v4121_v25  ;;  %v3829_v12 = vadd.f32 %v3825_v58, %v3816_v18  ;;  %v3897_v25 = vmul.f32 %v9707_v52, %v9849_v38  ;;  %v10027_v18 = vld [vmem:[#allocation2 + $0x10] sm:$0xf] }
 0x50b   : > { %4612 = vrot.lane.b32.xlu1 %v4524_v39, %s6919_s26  ;;  %v4356_v39 = vmul.f32 %v9724_v23, %v10002_v20  ;;  %v3906_v15 = vmul.f32 %v9712_v17, %v10002_v20  ;;  %v4077_v56 = vadd.f32 %v9803_v55, %v4073_v21  ;;  %10813 = vst [vmem:[#allocation35_spill] sm:$0xff] %v10027_v18 }
 0x50c   : > { %v4143_v27 = vadd.f32 %v4139_v51, %v4134_v10  ;;  %v4591_v58 = vadd.f32 %v4587_v53, %v4582_v28  ;;  %v4605_v13 = vadd.f32 %v9803_v55, %v4601_v45  ;;  %v3838_v47 = vadd.f32 %v3834_v40, %v3829_v12  ;;  %10814 = vst [vmem:[#allocation36_spill] sm:$0xff] %v10042_v34 }
 0x50d   : > { %v4596_v21 = vmul.f32 %v9987_v14, %v9815_v22  ;;  %v4360_v51 = vadd.f32 %v4356_v39, %v4347_v43  ;;  %v4365_v53 = vmul.f32 %v9727_v42, %v10019_v0  ;;  %v3843_v45 = vmul.f32 %v9704_v49, %v10027_v18  ;;  %v10051_v49 = vld [vmem:[#allocation2 + $0x1a] sm:$0xf] }
 0x50e   : > { %v3910_v10 = vadd.f32 %v3906_v15, %v3897_v25  ;;  %v4363_v28 = vmul.f32 %v9727_v42, %v9831_v57  ;;  %v4152_v12 = vadd.f32 %v4148_v5, %v4143_v27  ;;  %v3915_v43 = vmul.f32 %v9715_v11, %v9893_v63  ;;  %10815 = vst [vmem:[#allocation37_spill] sm:$0xff] %v10051_v49 }
 0x50f   : > { %v4600_v40 = vadd.f32 %v4596_v21, %v4591_v58  ;;  %v4358_v39 = vadd.f32 %v4354_v16, %v4345_v62  ;;  %v4374_v22 = vmul.f32 %v9730_v54, %v10042_v34  ;;  %v4571_v25 = vmul.f32 %v9924_v36, %v9957_v29 }
 0x510   : > { %v4580_v15 = vmul.f32 %v9929_v32, %v9964_v24  ;;  %v3896_v27 = vmul.f32 %v9707_v52, %v9957_v29  ;;  %v3905_v16 = vmul.f32 %v9712_v17, %v9964_v24  ;;  %v4156_v58 = vadd.f32 %v9803_v55, %v4152_v12 }
 0x511   : > { %v4367_v5 = vadd.f32 %v4363_v28, %v4358_v39  ;;  %v3924_v62 = vmul.f32 %v9718_v3, %v10051_v49  ;;  %v4372_v21 = vmul.f32 %v9730_v54, %v9980_v19  ;;  %v4050_v52 = vmul.f32 %v9676_v50, %v9973_v26 }
 0x512   : > { %4168 = vrot.lane.b32.xlu0 %v4077_v56, %s6919_s26  ;;  %4178 = vrot.lane.b32.xlu2 %v4154_v4, %s6919_s26  ;;  %v3847_v56 = vadd.f32 %v3843_v45, %v3838_v47  ;;  %v4369_v4 = vadd.f32 %v4365_v53, %v4360_v51  ;;  %v4604_v47 = vadd.f32 %v9803_v55, %v4600_v40  ;;  %v10067_v51 = vld [vmem:[#allocation2 + $0x21] sm:$0xf] }
 0x513   : > { %4630 = vrot.lane.b32.xlu1 %v4605_v13, %s6919_s26  ;;  %v3919_v13 = vadd.f32 %v3915_v43, %v3910_v10  ;;  %10816 = vst [vmem:[#allocation38_spill] sm:$0xff] %v10067_v51  ;;  %v4041_v53 = vmul.f32 %v9673_v48, %v9957_v29  ;;  %v10076_v10 = vld [vmem:[#allocation2 + $0x22] sm:$0xf]  ;;  %v4584_v28 = vadd.f32 %v4580_v15, %v4571_v25 }
 0x514   : > { %v3851_v17 = vadd.f32 %v9803_v55, %v3847_v56  ;;  %v4378_v45 = vadd.f32 %v4374_v22, %v4369_v4  ;;  %10817 = vst [vmem:[#allocation39_spill] sm:$0xff] %v10076_v10  ;;  %v4376_v40 = vadd.f32 %v4372_v21, %v4367_v5  ;;  %v3909_v43 = vadd.f32 %v3905_v16, %v3896_v27 }
 0x515   : > { %v3928_v12 = vadd.f32 %v3924_v62, %v3919_v13  ;;  %v4346_v39 = vmul.f32 %v9721_v37, %v9957_v29  ;;  %v4589_v48 = vmul.f32 %v9955_v2, %v10067_v51  ;;  %v4355_v50 = vmul.f32 %v9724_v23, %v9964_v24 }
 0x516   : > { %v4598_v22 = vmul.f32 %v9987_v14, %v10076_v10  ;;  %v4054_v56 = vadd.f32 %v4050_v52, %v4041_v53  ;;  %v3914_v4 = vmul.f32 %v9715_v11, %v10000_v8  ;;  %v4382_v25 = vadd.f32 %v9803_v55, %v4378_v45  ;;  %v10819_v52 = vld [vmem:[#allocation16_spill] sm:$0xff] }
 0x517   : > { %v4593_v15 = vadd.f32 %v4589_v48, %v4584_v28  ;;  %v4359_v13 = vadd.f32 %v4355_v50, %v4346_v39  ;;  %v4364_v37 = vmul.f32 %v9727_v42, %v10067_v51  ;;  %v3932_v5 = vadd.f32 %v9803_v55, %v3928_v12  ;;  %v10119_v50 = vld [vmem:[#allocation2 + $0x28] sm:$0xf] }
 0x518   : > { %v4380_v27 = vadd.f32 %v9803_v55, %v4376_v40  ;;  %v4059_v23 = vmul.f32 %v9679_v60, %v10000_v8  ;;  %v3918_v16 = vadd.f32 %v3914_v4, %v3909_v43  ;;  %v4131_v11 = vmul.f32 %v9738_v1, %v10002_v20  ;;  %v10818_v1 = vld [vmem:[#allocation21_spill] sm:$0xff]  ;;  %v10822_v4 = vld [vmem:[#allocation18_spill] sm:$0xff] }
 0x519   : > { %v4373_v62 = vmul.f32 %v9730_v54, %v10076_v10  ;;  %v3923_v42 = vmul.f32 %v9718_v3, %v10005_v7  ;;  %v4490_v53 = vmul.f32 %v9847_v6, %v9757_v59  ;;  %v4499_v60 = vmul.f32 %v9877_v61, %v9805_v44  ;;  %v10820_v3 = vld [vmem:[#allocation29_spill] sm:$0xff]  ;;  %10821 = vst [vmem:[#allocation21_spill] sm:$0xff] %v10119_v50  ;;  %v10847_v7 = vld [vmem:[#allocation7_spill] sm:$0xff] }
 0x51a   : > { %4182 = vrot.lane.b32.xlu0 %v4156_v58, %s6919_s26  ;;  %4628 = vrot.lane.b32.xlu2 %v4604_v47, %s6919_s26  ;;  %v4122_v58 = vmul.f32 %v9735_v31, %v9849_v38  ;;  %v4368_v47 = vadd.f32 %v4364_v37, %v4359_v13  ;;  %v4063_v21 = vadd.f32 %v4059_v23, %v4054_v56  ;;  %v10823_v23 = vld [vmem:[#allocation23_spill] sm:$0xff] }
 0x51b   : > { %3941 = vrot.lane.b32.xlu1 %v3851_v17, %s6919_s26  ;;  %v4267_v31 = vmul.f32 %v9755_v41, %v9849_v38  ;;  %v4276_v54 = vmul.f32 %v10819_v52, %v10818_v1  ;;  %v4602_v45 = vadd.f32 %v4598_v22, %v4593_v15  ;;  %v4508_v28 = vmul.f32 %v10820_v3, %v9831_v57 }
 0x51c   : > { %v4377_v17 = vadd.f32 %v4373_v62, %v4368_v47  ;;  %v4068_v12 = vmul.f32 %v9682_v33, %v10027_v18  ;;  %v3927_v40 = vadd.f32 %v3923_v42, %v3918_v16  ;;  %v4135_v43 = vadd.f32 %v4131_v11, %v4122_v58  ;;  %v10824_v16 = vld [vmem:[#allocation30_spill] sm:$0xff]  ;;  %v10825_v11 = vld [vmem:[#allocation24_spill] sm:$0xff] }
 0x51d   : > { %v4503_v39 = vadd.f32 %v4499_v60, %v4490_v53  ;;  %v4280_v56 = vadd.f32 %v4276_v54, %v4267_v31  ;;  %v4140_v22 = vmul.f32 %v9741_v9, %v9893_v63  ;;  %v4606_v15 = vadd.f32 %v9803_v55, %v4602_v45  ;;  %v10141_v31 = vld [vmem:[#allocation2 + $0x20] sm:$0xf] }
 0x51e   : > { %v4072_v48 = vadd.f32 %v4068_v12, %v4063_v21  ;;  %v3931_v37 = vadd.f32 %v9803_v55, %v3927_v40  ;;  %v4266_v33 = vmul.f32 %v9755_v41, %v9957_v29  ;;  %v4517_v58 = vmul.f32 %v10824_v16, %v10823_v23  ;;  %10826 = vst [vmem:[#allocation16_spill] sm:$0xff] %v10141_v31 }
 0x51f   : > { %v4512_v13 = vadd.f32 %v4508_v28, %v4503_v39  ;;  %v4294_v47 = vmul.f32 %v10825_v11, %v10119_v50  ;;  %v4149_v21 = vmul.f32 %v9752_v46, %v10051_v49  ;;  %v4572_v12 = vmul.f32 %v9924_v36, %v9849_v38 }
 0x520   : > { %v4076_v9 = vadd.f32 %v9803_v55, %v4072_v48  ;;  %v4581_v46 = vmul.f32 %v9929_v32, %v10002_v20  ;;  %v4293_v40 = vmul.f32 %v10825_v11, %v10141_v31  ;;  %v4492_v39 = vmul.f32 %v9847_v6, %v9849_v38 }
 0x521   : > { %v4521_v41 = vadd.f32 %v4517_v58, %v4512_v13  ;;  %v4501_v48 = vmul.f32 %v9877_v61, %v10818_v1  ;;  %v4590_v32 = vmul.f32 %v9955_v2, %v10019_v0 }
 0x522   : > { %4409 = vrot.lane.b32.xlu0 %v4382_v25, %s6919_s26  ;;  %4405 = vrot.lane.b32.xlu2 %v4380_v27, %s6919_s26  ;;  %v4285_v25 = vmul.f32 %v10822_v4, %v10019_v0  ;;  %v4275_v27 = vmul.f32 %v10819_v52, %v9973_v26  ;;  %v4284_v52 = vmul.f32 %v10822_v4, %v10067_v51 }
 0x523   : > { %3959 = vrot.lane.b32.xlu1 %v3932_v5, %s6919_s26  ;;  %v4144_v5 = vadd.f32 %v4140_v22, %v4135_v43  ;;  %v4525_v54 = vadd.f32 %v9803_v55, %v4521_v41  ;;  %v4505_v4 = vadd.f32 %v4501_v48, %v4492_v39  ;;  %v4599_v22 = vmul.f32 %v9987_v14, %v10042_v34  ;;  %v10834_v48 = vld [vmem:[#allocation9_spill] sm:$0xff] }
 0x524   : > { %v4289_v62 = vadd.f32 %v4285_v25, %v4280_v56  ;;  %v4279_v53 = vadd.f32 %v4275_v27, %v4266_v33  ;;  %v4585_v56 = vadd.f32 %v4581_v46, %v4572_v12  ;;  %v4510_v25 = vmul.f32 %v10820_v3, %v10019_v0  ;;  %v10831_v46 = vld [vmem:[#allocation6_spill] sm:$0xff] }
 0x525   : > { %v4153_v42 = vadd.f32 %v4149_v21, %v4144_v5  ;;  %v4500_v5 = vmul.f32 %v9877_v61, %v9973_v26  ;;  %v4381_v33 = vadd.f32 %v9803_v55, %v4377_v17  ;;  %v4519_v27 = vmul.f32 %v10824_v16, %v10119_v50  ;;  %v10827_v21 = vld [vmem:[#allocation5_spill] sm:$0xff] }
 0x526   : > { %v4298_v60 = vadd.f32 %v4294_v47, %v4289_v62  ;;  %v4288_v28 = vadd.f32 %v4284_v52, %v4279_v53  ;;  %v4594_v13 = vadd.f32 %v4590_v32, %v4585_v56  ;;  %v4514_v2 = vadd.f32 %v4510_v25, %v4505_v4  ;;  %v10829_v52 = vld [vmem:[#allocation11_spill] sm:$0xff] }
 0x527   : > { %v4157_v45 = vadd.f32 %v9803_v55, %v4153_v42  ;;  %v4509_v47 = vmul.f32 %v10820_v3, %v10067_v51  ;;  %v4518_v17 = vmul.f32 %v10824_v16, %v10141_v31  ;;  %v10186_v41 = vperm.slane %v10827_v21, 2 }
 0x528   : > { %v4302_v43 = vadd.f32 %v9803_v55, %v4298_v60  ;;  %v4297_v36 = vadd.f32 %v4293_v40, %v4288_v28  ;;  %v4603_v14 = vadd.f32 %v4599_v22, %v4594_v13  ;;  %v4523_v11 = vadd.f32 %v4519_v27, %v4514_v2  ;;  %v10830_v28 = vld [vmem:[#allocation13_spill] sm:$0xff]  ;;  %v10838_v2 = vld [vmem:[#allocation10_spill] sm:$0xff] }
 0x529   : > { %v10189_v42 = vperm.slane %v10827_v21, 6  ;;  %v10192_v3 = vperm.slane %v10827_v21, 4  ;;  %v10195_v53 = vperm.slane %v10827_v21, 0  ;;  %v3771_v16 = vmul.f32 %v10186_v41, %v9743_v30 }
 0x52a   : > { %4632 = vrot.lane.b32.xlu0 %v4606_v15, %s6919_s26  ;;  %3957 = vrot.lane.b32.xlu2 %v3931_v37, %s6919_s26  ;;  %v4301_v15 = vadd.f32 %v9803_v55, %v4297_v36  ;;  %v4491_v37 = vmul.f32 %v9847_v6, %v9957_v29  ;;  %v4607_v6 = vadd.f32 %v9803_v55, %v4603_v14  ;;  %v10208_v40 = vperm.slane %v10831_v46, 2 }
 0x52b   : > { %4166 = vrot.lane.b32.xlu1 %v4076_v9, %s6919_s26  ;;  %v4527_v61 = vadd.f32 %v9803_v55, %v4523_v11  ;;  %10828 = vst [vmem:[#allocation29_spill] sm:$0xff] %v10189_v42  ;;  %v3863_v12 = vmul.f32 %v10195_v53, %v10830_v28  ;;  %v10213_v39 = vperm.slane %v10831_v46, 4  ;;  %v10220_v25 = vperm.slane %v10831_v46, 6  ;;  %v10839_v11 = vld [vmem:[#allocation22_spill] sm:$0xff] }
 0x52c   : > { %v4504_v58 = vadd.f32 %v4500_v5, %v4491_v37  ;;  %10832 = vst [vmem:[#allocation18_spill] sm:$0xff] %v10208_v40  ;;  %v3789_v36 = vmul.f32 %v10208_v40, %v10834_v48  ;;  %v3772_v22 = vmul.f32 %v10186_v41, %v9757_v59  ;;  %v10227_v13 = vperm.slane %v10831_v46, 0  ;;  %v10837_v37 = vld [vmem:[#allocation3_spill] sm:$0xff] }
 0x52d   : > { %10833 = vst [vmem:[#allocation23_spill] sm:$0xff] %v10213_v39  ;;  %v3872_v4 = vmul.f32 %v10213_v39, %v10834_v48  ;;  %v10230_v5 = vperm.slane %v10837_v37, 2  ;;  %v3798_v27 = vmul.f32 %v10220_v25, %v10838_v2  ;;  %v3864_v21 = vmul.f32 %v10195_v53, %v9775_v35 }
 0x52e   : > { %v4513_v9 = vadd.f32 %v4509_v47, %v4504_v58  ;;  %10835 = vst [vmem:[#allocation30_spill] sm:$0xff] %v10220_v25  ;;  %v3881_v47 = vmul.f32 %v10227_v13, %v10839_v11 }
 0x52f   : > { %10836 = vst [vmem:[#allocation24_spill] sm:$0xff] %v10227_v13  ;;  %v4000_v51 = vmul.f32 %v10230_v5, %v9757_v59 }
 0x530   : > { %v4522_v62 = vadd.f32 %v4518_v17, %v4513_v9 }
 0x532   : > { %4614 = vrot.lane.b32.xlu0 %v4525_v54, %s6919_s26  ;;  %4184 = vrot.lane.b32.xlu2 %v4157_v45, %s6919_s26  ;;  %v4526_v60 = vadd.f32 %v9803_v55, %v4522_v62  ;;  %v3780_v54 = vmul.f32 %v10189_v42, %v10829_v52  ;;  %v3854_v45 = vmul.f32 %v10192_v3, %v9743_v30 }
 0x533   : > { %4393 = vrot.lane.b32.xlu1 %v4302_v43, %s6919_s26  ;;  %v3855_v62 = vmul.f32 %v10192_v3, %v9757_v59 }
 0x534   : > { %v3784_v56 = vadd.f32 %v3780_v54, %v3771_v16  ;;  %v3867_v32 = vadd.f32 %v3863_v12, %v3854_v45  ;;  %v10840_v16 = vld [vmem:[#allocation12_spill] sm:$0xff] }
 0x535   : > { %v3790_v54 = vmul.f32 %v10208_v40, %v10840_v16  ;;  %v10841_v12 = vld [vmem:[#allocation4_spill] sm:$0xff]  ;;  %v3868_v50 = vadd.f32 %v3864_v21, %v3855_v62  ;;  %v10303_v40 = vperm.slane %v10847_v7, 4 }
 0x536   : > { %v3793_v14 = vadd.f32 %v3789_v36, %v3784_v56  ;;  %v3876_v58 = vadd.f32 %v3872_v4, %v3867_v32  ;;  %v10253_v46 = vperm.slane %v10841_v12, 2  ;;  %v10843_v36 = vld [vmem:[#allocation8_spill] sm:$0xff]  ;;  %v10307_v8 = vperm.slane %v10841_v12, 4 }
 0x537   : > { %v10256_v56 = vperm.slane %v10843_v36, 4  ;;  %v10259_v32 = vperm.slane %v10843_v36, 0  ;;  %v10844_v4 = vld [vmem:[#allocation20_spill] sm:$0xff]  ;;  %v10327_v26 = vperm.slane %v10843_v36, 2 }
 0x538   : > { %v3885_v45 = vadd.f32 %v3881_v47, %v3876_v58  ;;  %10842 = vst [vmem:[#allocation5_spill] sm:$0xff] %v10253_v46  ;;  %v4017_v47 = vmul.f32 %v10253_v46, %v10834_v48 }
 0x539   : > { %10849 = vst [vmem:[#allocation13_spill] sm:$0xff] %v10327_v26 }
 0x53a   : > { %4391 = vrot.lane.b32.xlu2 %v4301_v15, %s6919_s26  ;;  %v3781_v15 = vmul.f32 %v10189_v42, %v9805_v44  ;;  %v10848_v42 = vld [vmem:[#allocation15_spill] sm:$0xff] }
 0x53b   : > { %4407 = vrot.lane.b32.xlu1 %v4381_v33, %s6919_s26  ;;  %v10233_v33 = vperm.slane %v10837_v37, 6 }
 0x53d   : > { %v4008_v17 = vmul.f32 %v10233_v33, %v10829_v52  ;;  %v4009_v0 = vmul.f32 %v10233_v33, %v9805_v44 }
 0x542   : > { %4634 = vrot.lane.b32.xlu2 %v4607_v6, %s6919_s26  ;;  %v3785_v6 = vadd.f32 %v3781_v15, %v3772_v22  ;;  %v3799_v22 = vmul.f32 %v10220_v25, %v10844_v4  ;;  %v10267_v15 = vperm.slane %v10841_v12, 6  ;;  %v10846_v25 = vld [vmem:[#allocation14_spill] sm:$0xff] }
 0x543   : > { %4618 = vrot.lane.b32.xlu1 %v4527_v61, %s6919_s26  ;;  %v3999_v61 = vmul.f32 %v10230_v5, %v9743_v30  ;;  %v3882_v18 = vmul.f32 %v10227_v13, %v10846_v25 }
 0x544   : > { %10845 = vst [vmem:[#allocation11_spill] sm:$0xff] %v10267_v15  ;;  %v3794_v58 = vadd.f32 %v3790_v54, %v3785_v6  ;;  %v4026_v34 = vmul.f32 %v10267_v15, %v10838_v2  ;;  %v3873_v6 = vmul.f32 %v10213_v39, %v10840_v16  ;;  %v4013_v39 = vadd.f32 %v4009_v0, %v4000_v51 }
 0x545   : > { %v4012_v31 = vadd.f32 %v4008_v17, %v3999_v61  ;;  %v4304_v61 = vmul.f32 %v10256_v56, %v9743_v30  ;;  %v4313_v17 = vmul.f32 %v10259_v32, %v10830_v28 }
 0x546   : > { %v3877_v49 = vadd.f32 %v3873_v6, %v3868_v50  ;;  %v4018_v50 = vmul.f32 %v10253_v46, %v10840_v16  ;;  %v10317_v6 = vperm.slane %v10847_v7, 0 }
 0x548   : > { %v4022_v46 = vadd.f32 %v4018_v50, %v4013_v39  ;;  %v10852_v39 = vld [vmem:[#allocation17_spill] sm:$0xff] }
 0x54a   : > { %4616 = vrot.lane.b32.xlu2 %v4526_v60, %s6919_s26  ;;  %v3802_v60 = vadd.f32 %v3798_v27, %v3793_v14  ;;  %v10270_v27 = vperm.slane %v10837_v37, 4  ;;  %v10273_v14 = vperm.slane %v10837_v37, 0  ;;  %v3889_v37 = vadd.f32 %v9803_v55, %v3885_v45  ;;  %s6443_s26 = sshll.u32 %s10880_s25, 7 }
 0x54b   : > { %v4021_v45 = vadd.f32 %v4017_v47, %v4012_v31  ;;  %s10312_s12 = scalar_lea.vmem %s10684_s7, %s6443_s26  ;;  %v4317_v47 = vadd.f32 %v4313_v17, %v4304_v61  ;;  %v10330_v61 = vperm.slane %v10843_v36, 6  ;;  %v3886_v17 = vadd.f32 %v3882_v18, %v3877_v49 }
 0x54c   : > { %v10210_v43 = vpop.permute.xlu2 %3937  ;;  %v3809_v10 = vadd.f32 %v9803_v55, %v3802_v60  ;;  %v4080_v2 = vmul.f32 %v10270_v27, %v9757_v59  ;;  %v4089_v62 = vmul.f32 %v10273_v14, %v9775_v35  ;;  %v4079_v21 = vmul.f32 %v10270_v27, %v9743_v30 }
 0x54d   : > { %v4088_v60 = vmul.f32 %v10273_v14, %v10830_v28  ;;  %10850 = vst [vmem:[#allocation6_spill] sm:$0xff] %v10330_v61 }
 0x54e   : > { %v3965_v0 = vsel %vm2794_vm0, %v3809_v10, %v10210_v43  ;;  %v4093_v51 = vadd.f32 %v4089_v62, %v4080_v2  ;;  %v4098_v10 = vmul.f32 %v10307_v8, %v10840_v16  ;;  %v10336_v43 = vperm.slane %v10841_v12, 0 }
 0x54f   : > { %v4027_v2 = vmul.f32 %v10267_v15, %v10844_v4  ;;  %v4331_v16 = vmul.f32 %v10317_v6, %v10852_v39  ;;  %v4224_v12 = vmul.f32 %v10327_v26, %v9743_v30  ;;  %v4233_v4 = vmul.f32 %v10330_v61, %v10829_v52 }
 0x550   : > { %v4106_v36 = vmul.f32 %v10336_v43, %v10839_v11  ;;  %v3890_v11 = vadd.f32 %v9803_v55, %v3886_v17 }
 0x551   : > { %v4031_v50 = vadd.f32 %v4027_v2, %v4022_v46  ;;  %v4237_v46 = vadd.f32 %v4233_v4, %v4224_v12 }
 0x554   : > { %v10240_v9 = vpop.permute.xlu2 %3939 }
 0x55c   : > { %v3954_v54 = vpop.permute.xlu2 %3953 }
 0x55d   : > { %v3969_v63 = vsel %vm2794_vm0, %v3889_v37, %v3954_v54  ;;  %v4092_v37 = vadd.f32 %v4088_v60, %v4079_v21  ;;  %v4097_v54 = vmul.f32 %v10307_v8, %v10834_v48  ;;  %v3803_v48 = vadd.f32 %v3799_v22, %v3794_v58 }
 0x55e   : > { %v3981_v31 = vrot.slane %v3969_v63, 4  ;;  %v4322_v63 = vmul.f32 %v10303_v40, %v10848_v42  ;;  %v4102_v21 = vadd.f32 %v4098_v10, %v4093_v51  ;;  %v4030_v58 = vadd.f32 %v4026_v34, %v4021_v45 }
 0x55f   : > { %v4101_v60 = vadd.f32 %v4097_v54, %v4092_v37  ;;  %v10359_v54 = vperm.slane %v10847_v7, 2 }
 0x560   : > { %v3986_v13 = vsel %vm3985_vm6, %v3965_v0, %v3981_v31  ;;  %v4326_v62 = vadd.f32 %v4322_v63, %v4317_v47  ;;  %v10851_v31 = vld [vmem:[#allocation19_spill] sm:$0xff]  ;;  %v4107_v47 = vmul.f32 %v10336_v43, %v10846_v25  ;;  %v3810_v0 = vadd.f32 %v9803_v55, %v3803_v48 }
 0x561   : > { %3994 = vst [vmem:[%s10312_s12] sm:$0xff] %v3986_v13  ;;  %v10343_v13 = vperm.slane %v10851_v31, 4  ;;  %v10352_v22 = vperm.slane %v10851_v31, 0  ;;  %v4110_v15 = vadd.f32 %v4106_v36, %v4101_v60  ;;  %v10367_v17 = vperm.slane %v10851_v31, 2 }
 0x562   : > { %v4335_v37 = vadd.f32 %v4331_v16, %v4326_v62  ;;  %v4111_v10 = vadd.f32 %v4107_v47, %v4102_v21  ;;  %v3966_v48 = vsel %vm2794_vm0, %v3810_v0, %v10240_v9  ;;  %v4034_v2 = vadd.f32 %v9803_v55, %v4030_v58  ;;  %v10853_v16 = vld [vmem:[#allocation27_spill] sm:$0xff] }
 0x563   : > { %v4529_v34 = vmul.f32 %v10343_v13, %v9743_v30  ;;  %v4538_v25 = vmul.f32 %v10352_v22, %v10830_v28  ;;  %v4035_v62 = vadd.f32 %v9803_v55, %v4031_v50  ;;  %v10374_v21 = vperm.slane %v10851_v31, 6 }
 0x564   : > { %v4163_v18 = vpop.permute.xlu0 %4162  ;;  %v4165_v49 = vpop.permute.xlu2 %4164  ;;  %v10378_v36 = vperm.slane %v10847_v7, 6  ;;  %v4242_v28 = vmul.f32 %v10359_v54, %v10848_v42  ;;  %v10383_v12 = vperm.slane %v10853_v16, 4  ;;  %v4339_v9 = vadd.f32 %v9803_v55, %v4335_v37 }
 0x565   : > { %v3956_v51 = vpop.permute.xlu1 %3955  ;;  %v4114_v4 = vadd.f32 %v9803_v55, %v4110_v15  ;;  %v4225_v31 = vmul.f32 %v10327_v26, %v9757_v59  ;;  %v4234_v58 = vmul.f32 %v10330_v61, %v9805_v44  ;;  %v4115_v7 = vadd.f32 %v9803_v55, %v4111_v10 }
 0x566   : > { %v3970_v63 = vsel %vm2794_vm0, %v3890_v11, %v3956_v51  ;;  %v4246_v47 = vadd.f32 %v4242_v28, %v4237_v46  ;;  %v4542_v0 = vadd.f32 %v4538_v25, %v4529_v34  ;;  %v4449_v51 = vmul.f32 %v10367_v17, %v9743_v30 }
 0x567   : > { %v3982_v45 = vrot.slane %v3970_v63, 4  ;;  %v4458_v15 = vmul.f32 %v10374_v21, %v10829_v52  ;;  %v4305_v37 = vmul.f32 %v10256_v56, %v9757_v59  ;;  %v4314_v44 = vmul.f32 %v10259_v32, %v9775_v35 }
 0x568   : > { %v4547_v30 = vmul.f32 %v10383_v12, %v10848_v42  ;;  %v10407_v46 = vperm.slane %v10853_v16, 0  ;;  %v4190_v52 = vsel %vm2794_vm0, %v4034_v2, %v4163_v18  ;;  %v10412_v59 = vperm.slane %v10853_v16, 2 }
 0x569   : > { %v3987_v60 = vsel %vm3985_vm6, %v3966_v48, %v3982_v45  ;;  %v10854_v48 = vld [vmem:[#allocation25_spill] sm:$0xff]  ;;  %v4323_v35 = vmul.f32 %v10303_v40, %v9831_v57  ;;  %v4462_v2 = vadd.f32 %v4458_v15, %v4449_v51  ;;  %v4238_v61 = vadd.f32 %v4234_v58, %v4225_v31 }
 0x56a   : > { %3995 = vst [vmem:[%s10312_s12 + $0x8] sm:$0xff] %v3987_v60  ;;  %v4251_v34 = vmul.f32 %v10378_v36, %v10854_v48  ;;  %v4551_v18 = vadd.f32 %v4547_v30, %v4542_v0  ;;  %v4556_v26 = vmul.f32 %v10407_v46, %v10852_v39  ;;  %v4332_v39 = vmul.f32 %v10317_v6, %v9980_v19 }
 0x56b   : > { %v3856_v30 = vmul.f32 %v10192_v3, %v9957_v29 }
 0x56c   : > { %v4404_v11 = vpop.permute.xlu0 %4403  ;;  %v4179_v50 = vpop.permute.xlu2 %4178  ;;  %v4560_v31 = vadd.f32 %v4556_v26, %v4551_v18  ;;  %v3773_v18 = vmul.f32 %v10186_v41, %v9957_v29 }
 0x56d   : > { %v4194_v63 = vsel %vm2794_vm0, %v4114_v4, %v4179_v50  ;;  %v4181_v45 = vpop.permute.xlu1 %4180  ;;  %v4243_v4 = vmul.f32 %v10359_v54, %v9831_v57  ;;  %v4255_v50 = vadd.f32 %v4251_v34, %v4246_v47  ;;  %v10429_v57 = vperm.slane %v10853_v16, 6 }
 0x56e   : > { %v4206_v10 = vrot.slane %v4194_v63, 4  ;;  %v4195_v25 = vsel %vm2794_vm0, %v4115_v7, %v4181_v45  ;;  %v4191_v63 = vsel %vm2794_vm0, %v4035_v62, %v4165_v49  ;;  %v4318_v7 = vadd.f32 %v4314_v44, %v4305_v37 }
 0x56f   : > { %v4207_v60 = vrot.slane %v4195_v25, 4  ;;  %v4419_v25 = vsel %vm2794_vm0, %v4339_v9, %v4404_v11  ;;  %v4247_v62 = vadd.f32 %v4243_v4, %v4238_v61  ;;  %v4259_v51 = vadd.f32 %v9803_v55, %v4255_v50 }
 0x570   : > { %v4210_v28 = vsel %vm3985_vm6, %v4190_v52, %v4206_v10  ;;  %v4467_v10 = vmul.f32 %v10412_v59, %v10848_v42  ;;  %v4327_v49 = vadd.f32 %v4323_v35, %v4318_v7  ;;  %v4431_v9 = vrot.slane %v4419_v25, 4  ;;  %v10856_v7 = vld [vmem:[#allocation29_spill] sm:$0xff] }
 0x571   : > { %6429 = vst [vmem:[%s10312_s12 + $0x20] sm:$0xff] %v4210_v28  ;;  %v4211_v45 = vsel %vm3985_vm6, %v4191_v63, %v4207_v60  ;;  %v4252_v11 = vmul.f32 %v10378_v36, %v10823_v23  ;;  %v4476_v15 = vmul.f32 %v10429_v57, %v10854_v48  ;;  %v4564_v26 = vadd.f32 %v9803_v55, %v4560_v31 }
 0x572   : > { %6430 = vst [vmem:[%s10312_s12 + $0x28] sm:$0xff] %v4211_v45  ;;  %v4471_v58 = vadd.f32 %v4467_v10, %v4462_v2  ;;  %v4336_v61 = vadd.f32 %v4332_v39, %v4327_v49  ;;  %v3865_v23 = vmul.f32 %v10195_v53, %v9964_v24  ;;  %v4082_v48 = vmul.f32 %v10270_v27, %v9849_v38  ;;  %v10855_v2 = vld [vmem:[#allocation31_spill] sm:$0xff] }
 0x573   : > { %v4256_v37 = vadd.f32 %v4252_v11, %v4247_v62  ;;  %v4091_v60 = vmul.f32 %v10273_v14, %v10002_v20  ;;  %v4002_v50 = vmul.f32 %v10230_v5, %v9849_v38  ;;  %v4011_v63 = vmul.f32 %v10233_v33, %v10818_v1 }
 0x574   : > { %v4390_v47 = vpop.permute.xlu0 %4389  ;;  %v4629_v0 = vpop.permute.xlu2 %4628  ;;  %v4480_v34 = vadd.f32 %v4476_v15, %v4471_v58  ;;  %v4340_v35 = vadd.f32 %v9803_v55, %v4336_v61  ;;  %v3782_v45 = vmul.f32 %v10856_v7, %v10855_v2  ;;  %v3869_v62 = vadd.f32 %v3865_v23, %v3856_v30 }
 0x575   : > { %v4388_v42 = vpop.permute.xlu1 %4387  ;;  %v4644_v52 = vsel %vm2794_vm0, %v4564_v26, %v4629_v0  ;;  %v4260_v25 = vadd.f32 %v9803_v55, %v4256_v37  ;;  %v3783_v31 = vmul.f32 %v10856_v7, %v10818_v1  ;;  %v4095_v15 = vadd.f32 %v4091_v60, %v4082_v48  ;;  %v10862_v60 = vld [vmem:[#allocation33_spill] sm:$0xff] }
 0x576   : > { %v4415_v16 = vsel %vm2794_vm0, %v4259_v51, %v4388_v42  ;;  %v4484_v10 = vadd.f32 %v9803_v55, %v4480_v34  ;;  %v4656_v0 = vrot.slane %v4644_v52, 4  ;;  %v3774_v51 = vmul.f32 %v10186_v41, %v9849_v38  ;;  %v10857_v42 = vld [vmem:[#allocation32_spill] sm:$0xff]  ;;  %v10858_v55 = vld [vmem:[#allocation23_spill] sm:$0xff]  ;;  %v10859_v34 = vld [vmem:[#allocation26_spill] sm:$0xff] }
 0x577   : > { %v4435_v44 = vsel %vm3985_vm6, %v4415_v16, %v4431_v9  ;;  %v4416_v9 = vsel %vm2794_vm0, %v4260_v25, %v4390_v47  ;;  %v3874_v16 = vmul.f32 %v10858_v55, %v10857_v42  ;;  %v3786_v41 = vadd.f32 %v3782_v45, %v3773_v18  ;;  %v10860_v47 = vld [vmem:[#allocation5_spill] sm:$0xff]  ;;  %v10861_v52 = vld [vmem:[#allocation18_spill] sm:$0xff] }
 0x578   : > { %6433 = vst [vmem:[%s10312_s12 + $0x40] sm:$0xff] %v4435_v44  ;;  %v4015_v44 = vadd.f32 %v4011_v63, %v4002_v50  ;;  %v4100_v1 = vmul.f32 %v10307_v8, %v10859_v34  ;;  %v3787_v30 = vadd.f32 %v3783_v31, %v3774_v51  ;;  %v4020_v23 = vmul.f32 %v10860_v47, %v10859_v34 }
 0x579   : > { %v3878_v26 = vadd.f32 %v3874_v16, %v3869_v62  ;;  %v3792_v48 = vmul.f32 %v10861_v52, %v10859_v34  ;;  %v4081_v25 = vmul.f32 %v10270_v27, %v9957_v29  ;;  %v3857_v31 = vmul.f32 %v10192_v3, %v9849_v38  ;;  %v10867_v27 = vld [vmem:[#allocation35_spill] sm:$0xff] }
 0x57a   : > { %v4104_v63 = vadd.f32 %v4100_v1, %v4095_v15  ;;  %v4024_v18 = vadd.f32 %v4020_v23, %v4015_v44  ;;  %v10513_v23 = vld [vmem:[%s10683_s6] ss:$0 sm:$0xff] }
 0x57c   : > { %v10452_v28 = vpop.permute.xlu0 %3943  ;;  %v4406_v4 = vpop.permute.xlu2 %4405 }
 0x57d   : > { %v4420_v49 = vsel %vm2794_vm0, %v4340_v35, %v4406_v4  ;;  %v4613_v58 = vpop.permute.xlu1 %4612  ;;  %v3791_v35 = vmul.f32 %v10861_v52, %v10857_v42  ;;  %v10863_v4 = vld [vmem:[#allocation24_spill] sm:$0xff] }
 0x57e   : > { %v4432_v39 = vrot.slane %v4420_v49, 4  ;;  %v4640_v11 = vsel %vm2794_vm0, %v4484_v10, %v4613_v58  ;;  %v3883_v50 = vmul.f32 %v10863_v4, %v10862_v60  ;;  %v4090_v10 = vmul.f32 %v10273_v14, %v9964_v24 }
 0x57f   : > { %v4660_v61 = vsel %vm3985_vm6, %v4640_v11, %v4656_v0  ;;  %v3795_v49 = vadd.f32 %v3791_v35, %v3786_v41  ;;  %v10864_v0 = vld [vmem:[#allocation37_spill] sm:$0xff]  ;;  %v3866_v58 = vmul.f32 %v10195_v53, %v10002_v20  ;;  %v10866_v11 = vld [vmem:[#allocation11_spill] sm:$0xff] }
 0x580   : > { %v4436_v37 = vsel %vm3985_vm6, %v4416_v9, %v4432_v39  ;;  %6437 = vst [vmem:[%s10312_s12 + $0x60] sm:$0xff] %v4660_v61  ;;  %v3887_v62 = vadd.f32 %v3883_v50, %v3878_v26  ;;  %v4109_v51 = vmul.f32 %v10336_v43, %v10864_v0  ;;  %v3796_v39 = vadd.f32 %v3792_v48, %v3787_v30  ;;  %v10865_v9 = vld [vmem:[#allocation28_spill] sm:$0xff]  ;;  %v10868_v61 = vld [vmem:[#allocation30_spill] sm:$0xff]  ;;  %v6898_v41 = vld [vmem:[#allocation2 + $0x12] sm:$0xf] }
 0x581   : > { %6434 = vst [vmem:[%s10312_s12 + $0x48] sm:$0xff] %v4436_v37  ;;  %v4029_v16 = vmul.f32 %v10866_v11, %v10865_v9  ;;  %v3800_v14 = vmul.f32 %v10868_v61, %v10867_v27  ;;  %v10503_v37 = vld [vmem:[#allocation2 + $0x11] sm:$0xf]  ;;  %v4539_v38 = vmul.f32 %v6898_v41, %v10352_v22  ;;  %v3801_v53 = vmul.f32 %v10868_v61, %v10865_v9  ;;  %v10516_v50 = vld [vmem:[#allocation2 + $0x19] sm:$0xf] }
 0x582   : > { %v4530_v44 = vmul.f32 %v10503_v37, %v10343_v13  ;;  %v4113_v3 = vadd.f32 %v4109_v51, %v4104_v63  ;;  %v4094_v1 = vadd.f32 %v4090_v10, %v4081_v25  ;;  %v3891_v52 = vadd.f32 %v10513_v23, %v3887_v62 }
 0x583   : > { %v4033_v26 = vadd.f32 %v4029_v16, %v4024_v18  ;;  %v3804_v30 = vadd.f32 %v3800_v14, %v3795_v49  ;;  %v3870_v35 = vadd.f32 %v3866_v58, %v3857_v31  ;;  %v3805_v48 = vadd.f32 %v3801_v53, %v3796_v39  ;;  %v10530_v16 = vld [vmem:[#allocation2 + $0x21] sm:$0xf] }
 0x584   : > { %v4169_v7 = vpop.permute.xlu0 %4168  ;;  %v3958_v45 = vpop.permute.xlu2 %3957  ;;  %v4548_v63 = vmul.f32 %v10516_v50, %v10383_v12  ;;  %v4099_v51 = vmul.f32 %v10307_v8, %v10857_v42  ;;  %v4543_v18 = vadd.f32 %v4539_v38, %v4530_v44  ;;  %v4117_v10 = vadd.f32 %v10513_v23, %v4113_v3 }
 0x585   : > { %v10499_v15 = vpop.permute.xlu1 %4630  ;;  %v3971_v25 = vsel %vm2794_vm0, %v3891_v52, %v3958_v45  ;;  %v3875_v49 = vmul.f32 %v10858_v55, %v10859_v34  ;;  %v4037_v62 = vadd.f32 %v10513_v23, %v4033_v26  ;;  %v3811_v39 = vadd.f32 %v10513_v23, %v3804_v30 }
 0x586   : > { %v4103_v31 = vadd.f32 %v4099_v51, %v4094_v1  ;;  %v4307_v8 = vmul.f32 %v10530_v16, %v10256_v56  ;;  %v4001_v14 = vmul.f32 %v10230_v5, %v9957_v29  ;;  %v4010_v55 = vmul.f32 %v10233_v33, %v10855_v2 }
 0x587   : > { %v3879_v61 = vadd.f32 %v3875_v49, %v3870_v35  ;;  %v3983_v34 = vrot.slane %v3971_v25, 4  ;;  %v4316_v38 = vmul.f32 %v10259_v32, %v10002_v20  ;;  %v3884_v3 = vmul.f32 %v10863_v4, %v10864_v0 }
 0x588   : > { %v4193_v53 = vsel %vm2794_vm0, %v4037_v62, %v4169_v7  ;;  %v4531_v5 = vmul.f32 %v10343_v13, %v9957_v29  ;;  %v4540_v33 = vmul.f32 %v10352_v22, %v9964_v24  ;;  %v4552_v1 = vadd.f32 %v4548_v63, %v4543_v18  ;;  %v10869_v24 = vld [vmem:[#allocation34_spill] sm:$0xff] }
 0x589   : > { %v4108_v30 = vmul.f32 %v10336_v43, %v10862_v60  ;;  %v3812_v4 = vadd.f32 %v10513_v23, %v3805_v48  ;;  %v3888_v7 = vadd.f32 %v3884_v3, %v3879_v61  ;;  %v4014_v0 = vadd.f32 %v4010_v55, %v4001_v14  ;;  %v6903_v14 = vld [vmem:[#allocation2 + $0x10] sm:$0xf] }
 0x58a   : > { %v4557_v51 = vmul.f32 %v10407_v46, %v9980_v19  ;;  %v4325_v63 = vmul.f32 %v10303_v40, %v10869_v24  ;;  %v4544_v18 = vadd.f32 %v4540_v33, %v4531_v5  ;;  %v4019_v43 = vmul.f32 %v10860_v47, %v10857_v42  ;;  %v10872_v42 = vld [vmem:[#allocation6_spill] sm:$0xff] }
 0x58b   : > { %v4112_v25 = vadd.f32 %v4108_v30, %v4103_v31  ;;  %v4451_v60 = vmul.f32 %v10367_v17, %v9957_v29  ;;  %v4460_v48 = vmul.f32 %v10374_v21, %v10855_v2  ;;  %v10870_v31 = vld [vmem:[#allocation38_spill] sm:$0xff]  ;;  %v3892_v29 = vadd.f32 %v10513_v23, %v3888_v7  ;;  %v10874_v30 = vld [vmem:[#allocation39_spill] sm:$0xff] }
 0x58c   : > { %v10527_v58 = vpop.permute.xlu0 %4182  ;;  %v4185_v9 = vpop.permute.xlu2 %4184  ;;  %v4561_v49 = vadd.f32 %v4557_v51, %v4552_v1  ;;  %v4023_v61 = vadd.f32 %v4019_v43, %v4014_v0  ;;  %v4450_v2 = vmul.f32 %v10503_v37, %v10367_v17  ;;  %v4459_v55 = vmul.f32 %v6903_v14, %v10374_v21 }
 0x58d   : > { %v4197_v45 = vsel %vm2794_vm0, %v4117_v10, %v4185_v9  ;;  %v3942_v44 = vpop.permute.xlu1 %3941  ;;  %v4320_v10 = vadd.f32 %v4316_v38, %v4307_v8  ;;  %v10871_v9 = vld [vmem:[#allocation13_spill] sm:$0xff]  ;;  %v4468_v37 = vmul.f32 %v10516_v50, %v10412_v59  ;;  %v4464_v33 = vadd.f32 %v4460_v48, %v4451_v60 }
 0x58e   : > { %v4209_v41 = vrot.slane %v4197_v45, 4  ;;  %v3967_v26 = vsel %vm2794_vm0, %v3811_v39, %v3942_v44  ;;  %v4549_v39 = vmul.f32 %v10383_v12, %v10870_v31  ;;  %v4227_v8 = vmul.f32 %v10530_v16, %v10871_v9  ;;  %v10574_v45 = vld [vmem:[#allocation2 + $0x20] sm:$0xf] }
 0x58f   : > { %v3988_v52 = vsel %vm3985_vm6, %v3967_v26, %v3983_v34  ;;  %v4236_v47 = vmul.f32 %v10574_v45, %v10872_v42  ;;  %v4116_v34 = vadd.f32 %v10513_v23, %v4112_v25  ;;  %v4329_v44 = vadd.f32 %v4325_v63, %v4320_v10  ;;  %v6904_v10 = vld [vmem:[#allocation2 + $0x19] sm:$0xf] }
 0x590   : > { %v4213_v35 = vsel %vm3985_vm6, %v4193_v53, %v4209_v41  ;;  %3996 = vst [vmem:[%s10312_s12 + $0x10] sm:$0xff] %v3988_v52  ;;  %v10873_v41 = vld [vmem:[#allocation36_spill] sm:$0xff]  ;;  %v4028_v53 = vmul.f32 %v10866_v11, %v10867_v27  ;;  %v4553_v5 = vadd.f32 %v4549_v39, %v4544_v18  ;;  %v4558_v52 = vmul.f32 %v10407_v46, %v10874_v30 }
 0x591   : > { %6432 = vst [vmem:[%s10312_s12 + $0x38] sm:$0xff] %v4213_v35  ;;  %v4334_v38 = vmul.f32 %v10317_v6, %v10873_v41  ;;  %v4240_v35 = vadd.f32 %v4236_v47, %v4227_v8  ;;  %v4245_v7 = vmul.f32 %v10359_v54, %v10869_v24  ;;  %v3968_v0 = vsel %vm2794_vm0, %v3812_v4, %v10452_v28  ;;  %v6905_v8 = vld [vmem:[#allocation2 + $0x18] sm:$0xf] }
 0x592   : > { %v4032_v11 = vadd.f32 %v4028_v53, %v4023_v61  ;;  %v4463_v27 = vadd.f32 %v4459_v55, %v4450_v2  ;;  %v4469_v51 = vmul.f32 %v10412_v59, %v10870_v31  ;;  %v4565_v25 = vadd.f32 %v10513_v23, %v4561_v49  ;;  %v10876_v2 = vld [vmem:[#allocation16_spill] sm:$0xff] }
 0x593   : > { %v4226_v63 = vmul.f32 %v6904_v10, %v10871_v9  ;;  %v4196_v18 = vsel %vm2794_vm0, %v4116_v34, %v10527_v58  ;;  %v4562_v43 = vadd.f32 %v4558_v52, %v4553_v5  ;;  %v4338_v28 = vadd.f32 %v4334_v38, %v4329_v44  ;;  %v6906_v55 = vld [vmem:[#allocation2 + $0x1a] sm:$0xf] }
 0x594   : > { %v10566_v62 = vpop.permute.xlu0 %4409  ;;  %v10568_v19 = vpop.permute.xlu2 %4391  ;;  %v4472_v60 = vadd.f32 %v4468_v37, %v4463_v27  ;;  %v4473_v48 = vadd.f32 %v4469_v51, %v4464_v33  ;;  %v4477_v47 = vmul.f32 %v6905_v8, %v10429_v57  ;;  %v4249_v49 = vadd.f32 %v4245_v7, %v4240_v35  ;;  %v6907_v38 = vld [vmem:[#allocation2 + $0x18] sm:$0xf] }
 0x595   : > { %v3960_v3 = vpop.permute.xlu1 %3959  ;;  %v4036_v9 = vadd.f32 %v10513_v23, %v4032_v11  ;;  %v4478_v58 = vmul.f32 %v10429_v57, %v10876_v2  ;;  %v4306_v14 = vmul.f32 %v6904_v10, %v10256_v56  ;;  %v4315_v34 = vmul.f32 %v6906_v55, %v10259_v32 }
 0x596   : > { %v3972_v26 = vsel %vm2794_vm0, %v3892_v29, %v3960_v3  ;;  %v10875_v29 = vld [vmem:[#allocation21_spill] sm:$0xff]  ;;  %v4208_v44 = vrot.slane %v4196_v18, 4  ;;  %v4235_v3 = vmul.f32 %v6907_v38, %v10872_v42  ;;  %v4541_v5 = vmul.f32 %v10352_v22, %v10002_v20 }
 0x597   : > { %v3984_v1 = vrot.slane %v3972_v26, 4  ;;  %v4254_v61 = vmul.f32 %v10378_v36, %v10875_v29  ;;  %v4532_v26 = vmul.f32 %v10530_v16, %v10343_v13  ;;  %v4566_v37 = vadd.f32 %v10513_v23, %v4562_v43 }
 0x598   : > { %v4481_v56 = vadd.f32 %v4477_v47, %v4472_v60  ;;  %v4645_v35 = vsel %vm2794_vm0, %v4565_v25, %v10499_v15  ;;  %v4342_v42 = vadd.f32 %v10513_v23, %v4338_v28  ;;  %v4319_v13 = vadd.f32 %v4315_v34, %v4306_v14 }
 0x599   : > { %v3989_v50 = vsel %vm3985_vm6, %v3968_v0, %v3984_v1  ;;  %v4482_v1 = vadd.f32 %v4478_v58, %v4473_v48  ;;  %v4258_v52 = vadd.f32 %v4254_v61, %v4249_v49  ;;  %v4239_v0 = vadd.f32 %v4235_v3, %v4226_v63 }
 0x59a   : > { %3997 = vst [vmem:[%s10312_s12 + $0x18] sm:$0xff] %v3989_v50  ;;  %v4244_v20 = vmul.f32 %v10359_v54, %v10870_v31  ;;  %v4545_v22 = vadd.f32 %v4541_v5, %v4532_v26  ;;  %v4550_v11 = vmul.f32 %v10383_v12, %v10869_v24  ;;  %v4422_v27 = vsel %vm2794_vm0, %v4342_v42, %v10566_v62 }
 0x59b   : > { %v4485_v51 = vadd.f32 %v10513_v23, %v4481_v56  ;;  %v4486_v15 = vadd.f32 %v10513_v23, %v4482_v1  ;;  %v4324_v25 = vmul.f32 %v10303_v40, %v10870_v31  ;;  %v4657_v50 = vrot.slane %v4645_v35, 4 }
 0x59c   : > { %v4633_v4 = vpop.permute.xlu0 %4632  ;;  %v10604_v39 = vpop.permute.xlu2 %4634  ;;  %v4262_v54 = vadd.f32 %v10513_v23, %v4258_v52  ;;  %v4452_v12 = vmul.f32 %v10530_v16, %v10367_v17  ;;  %v4461_v40 = vmul.f32 %v10574_v45, %v10374_v21  ;;  %v4434_v31 = vrot.slane %v4422_v27, 4 }
 0x59d   : > { %v4167_v53 = vpop.permute.xlu1 %4166  ;;  %v4646_v7 = vsel %vm2794_vm0, %v4566_v37, %v4633_v4  ;;  %v4328_v43 = vadd.f32 %v4324_v25, %v4319_v13  ;;  %v4248_v4 = vadd.f32 %v4244_v20, %v4239_v0  ;;  %v4333_v16 = vmul.f32 %v10317_v6, %v10874_v30 }
 0x59e   : > { %v4192_v33 = vsel %vm2794_vm0, %v4036_v9, %v4167_v53  ;;  %v4658_v10 = vrot.slane %v4646_v7, 4  ;;  %v4253_v8 = vmul.f32 %v10378_v36, %v10876_v2  ;;  %v4559_v47 = vmul.f32 %v10407_v46, %v10873_v41  ;;  %v6908_v9 = vld [vmem:[#allocation2 + $0x29] sm:$0xf] }
 0x59f   : > { %v4212_v32 = vsel %vm3985_vm6, %v4192_v33, %v4208_v44  ;;  %v4554_v45 = vadd.f32 %v4550_v11, %v4545_v22  ;;  %v4337_v49 = vadd.f32 %v4333_v16, %v4328_v43  ;;  %v4465_v61 = vadd.f32 %v4461_v40, %v4452_v12 }
 0x5a0   : > { %6431 = vst [vmem:[%s10312_s12 + $0x30] sm:$0xff] %v4212_v32  ;;  %v4470_v58 = vmul.f32 %v6908_v9, %v10412_v59  ;;  %v4257_v14 = vadd.f32 %v4253_v8, %v4248_v4  ;;  %v4479_v36 = vmul.f32 %v10429_v57, %v10875_v29 }
 0x5a1   : > { %v4563_v55 = vadd.f32 %v4559_v47, %v4554_v45  ;;  %v4341_v6 = vadd.f32 %v10513_v23, %v4337_v49 }
 0x5a2   : > { %v4474_v30 = vadd.f32 %v4470_v58, %v4465_v61  ;;  %v4261_v41 = vadd.f32 %v10513_v23, %v4257_v14 }
 0x5a3   : > { %v4567_v59 = vadd.f32 %v10513_v23, %v4563_v55 }
 0x5a4   : > { %v4615_v63 = vpop.permute.xlu0 %4614  ;;  %v4617_v18 = vpop.permute.xlu2 %4616  ;;  %v4417_v44 = vsel %vm2794_vm0, %v4261_v41, %v10568_v19  ;;  %v4483_v38 = vadd.f32 %v4479_v36, %v4474_v30 }
 0x5a5   : > { %v4641_v24 = vsel %vm2794_vm0, %v4485_v51, %v4615_v63  ;;  %v4642_v62 = vsel %vm2794_vm0, %v4486_v15, %v4617_v18  ;;  %v4394_v48 = vpop.permute.xlu1 %4393  ;;  %v4647_v53 = vsel %vm2794_vm0, %v4567_v59, %v10604_v39 }
 0x5a6   : > { %v4661_v60 = vsel %vm3985_vm6, %v4641_v24, %v4657_v50  ;;  %v4662_v28 = vsel %vm3985_vm6, %v4642_v62, %v4658_v10  ;;  %v4418_v17 = vsel %vm2794_vm0, %v4262_v54, %v4394_v48  ;;  %v4487_v57 = vadd.f32 %v10513_v23, %v4483_v38 }
 0x5a7   : > { %6438 = vst [vmem:[%s10312_s12 + $0x68] sm:$0xff] %v4661_v60  ;;  %v4438_v21 = vsel %vm3985_vm6, %v4418_v17, %v4434_v31  ;;  %v4659_v29 = vrot.slane %v4647_v53, 4 }
 0x5a8   : > { %6439 = vst [vmem:[%s10312_s12 + $0x70] sm:$0xff] %v4662_v28 }
 0x5a9   : > { %6436 = vst [vmem:[%s10312_s12 + $0x58] sm:$0xff] %v4438_v21 }
 0x5ad   : > { %v4408_v46 = vpop.permute.xlu1 %4407 }
 0x5ae   : > { %v4421_v2 = vsel %vm2794_vm0, %v4341_v6, %v4408_v46 }
 0x5af   : > { %v4433_v34 = vrot.slane %v4421_v2, 4 }
 0x5b1   : > { %v4437_v3 = vsel %vm3985_vm6, %v4417_v44, %v4433_v34 }
 0x5b2   : > { %6435 = vst [vmem:[%s10312_s12 + $0x50] sm:$0xff] %v4437_v3 }
 0x5b5   : > { %v4619_v26 = vpop.permute.xlu1 %4618 }
 0x5b6   : > { %v4643_v5 = vsel %vm2794_vm0, %v4487_v57, %v4619_v26 }
 0x5b7   : > { %v4663_v37 = vsel %vm3985_vm6, %v4643_v5, %v4659_v29 }
 0x5b8   : > { %6440 = vst [vmem:[%s10312_s12 + $0x78] sm:$0xff] %v4663_v37 }
 0x5b9 PF: > { %s17_s24 = sadd.s32 1, %s6915_s24  }
 0x5ba   : > { %p14_p5 = scmp.ge.s32.totalorder %s17_s24, 4  }
 0x5bc   :  { %16 = sbr.rel (!%p14_p5) target bundleno = 1 (0x1), region = 85 }

</bundles_post_ra>
